<compile_context>
chip_gen: v7x
topology: tpu7x:2x2x1
jax: 0.10.0
libtpu: 0.0.40
codegen_flags: <defaults>
</compile_context>

<pallas_src>
import functools
import math

import jax
import jax.numpy as jnp
from jax import lax
from jax.experimental import pallas as pl
from jax.experimental.pallas import tpu as pltpu


def _mha_kernel(x_ref, w_in_ref, b_in_ref, wo_t_ref, b_o_ref, bias_ref, o_ref,
                *, n_heads, d_model):
    """One grid step: fused MHA for a (R = NBLK*S, D) slab of NBLK instances."""
    D = d_model
    hd = D // n_heads

    x = x_ref[...]                                                      # (R, D)
    # Fused QKV projection (weight pre-transposed, Q pre-scaled on host).
    qkv = jnp.dot(x, w_in_ref[...],
                  preferred_element_type=jnp.float32) + b_in_ref[...]   # (R, 3D)
    q = qkv[:, :D]
    k = qkv[:, D:2 * D]
    v = qkv[:, 2 * D:]

    bias = bias_ref[...]            # (R, R): 0 within an instance, -1e30 across
    wo_t = wo_t_ref[...]            # (D, D) pre-transposed output projection

    acc = None
    for h in range(n_heads):        # static unroll; H is small
        lo = h * hd
        qh = q[:, lo:lo + hd]                                           # (R, hd)
        kh = k[:, lo:lo + hd]
        vh = v[:, lo:lo + hd]
        # scores (contract last dims directly — no in-kernel transpose)
        s = lax.dot_general(qh, kh, (((1,), (1,)), ((), ())),
                            preferred_element_type=jnp.float32)         # (R, R)
        s = s + bias
        m = jnp.max(s, axis=-1, keepdims=True)
        p = jnp.exp(s - m)
        denom = jnp.sum(p, axis=-1, keepdims=True)
        o_h = jnp.dot(p, vh, preferred_element_type=jnp.float32)        # (R, hd)
        o_h = o_h * pl.reciprocal(denom, approx=True)
        # Fold the output projection per head: avoids concatenating heads.
        contrib = jnp.dot(o_h, wo_t[lo:lo + hd, :],
                          preferred_element_type=jnp.float32)           # (R, D)
        acc = contrib if acc is None else acc + contrib

    o_ref[...] = (acc + b_o_ref[...]).astype(o_ref.dtype)
    # TODO(synk): attention-weight dropout is training-only; no-op at inference.


def cross_sectional_self_attention(x, params, n_heads):
    """x: [B, T, S, D] float32 -> [B, T, S, D] float32."""
    B, T, S, D = x.shape
    assert D % n_heads == 0, "d_model must be divisible by n_heads"
    N = B * T
    hd = D // n_heads
    scale = 1.0 / math.sqrt(hd)

    # Batch enough instances per grid step for ~128 rows (MXU-friendly, amortizes
    # per-step overhead); keep the row block a multiple of the 8-sublane tile.
    nblk = max(1, 128 // S)
    while (nblk * S) % 8 != 0:
        nblk += 1
    n_pad = ((N + nblk - 1) // nblk) * nblk
    R = nblk * S

    xf = x.reshape(N * S, D)
    if n_pad != N:
        xf = jnp.pad(xf, ((0, (n_pad - N) * S), (0, 0)))

    # Host-side weight prep: fuse + pre-transpose QKV, fold 1/sqrt(hd) into Q.
    in_w = params["in_proj_weight"]                                   # (3D, D)
    in_b = params["in_proj_bias"]                                     # (3D,)
    w_in_t = jnp.concatenate([in_w[:D] * scale, in_w[D:]], axis=0).T  # (D, 3D)
    b_in = jnp.concatenate([in_b[:D] * scale, in_b[D:]]).reshape(1, 3 * D)
    wo_t = params["out_proj_weight"].T                                # (D, D)
    b_o = params["out_proj_bias"].reshape(1, D)

    # Block-diagonal additive mask keeping the NBLK instances independent.
    inst = jnp.arange(R, dtype=jnp.int32) // S
    mask_bias = jnp.where(inst[:, None] == inst[None, :],
                          0.0, -1e30).astype(jnp.float32)             # (R, R)

    steps = n_pad // nblk
    flops = steps * 2 * (R * D * 3 * D
                         + n_heads * (2 * R * R * hd + R * hd * D))
    transcendentals = steps * n_heads * R * R
    bytes_accessed = (2 * n_pad * S * D + 3 * D * D + 3 * D
                      + D * D + D + R * R) * 4

    out = pl.pallas_call(
        functools.partial(_mha_kernel, n_heads=n_heads, d_model=D),
        out_shape=jax.ShapeDtypeStruct((n_pad * S, D), x.dtype),
        grid_spec=pltpu.PrefetchScalarGridSpec(
            num_scalar_prefetch=0,
            grid=(steps,),
            in_specs=[
                pl.BlockSpec((R, D), lambda n: (n, 0)),        # x slab
                pl.BlockSpec((D, 3 * D), lambda n: (0, 0)),    # fused QKV weight
                pl.BlockSpec((1, 3 * D), lambda n: (0, 0)),    # fused QKV bias
                pl.BlockSpec((D, D), lambda n: (0, 0)),        # out-proj weight^T
                pl.BlockSpec((1, D), lambda n: (0, 0)),        # out-proj bias
                pl.BlockSpec((R, R), lambda n: (0, 0)),        # block-diag mask
            ],
            out_specs=pl.BlockSpec((R, D), lambda n: (n, 0)),
        ),
        compiler_params=pltpu.CompilerParams(
            dimension_semantics=("parallel",),
            vmem_limit_bytes=32 * 1024 * 1024,
        ),
        cost_estimate=pl.CostEstimate(
            flops=int(flops),
            transcendentals=int(transcendentals),
            bytes_accessed=int(bytes_accessed),
        ),
    )(xf, w_in_t, b_in, wo_t, b_o, mask_bias)

    return out[:N * S].reshape(B, T, S, D)


def _reference(x, params, n_heads):
    """Pure-JAX reference matching torch.nn.MultiheadAttention (eval)."""
    B, T, S, D = x.shape
    hd = D // n_heads
    xf = x.reshape(B * T, S, D)
    in_w = params["in_proj_weight"]
    in_b = params["in_proj_bias"]
    wq, wk, wv = in_w[:D], in_w[D:2 * D], in_w[2 * D:]
    bq, bk, bv = in_b[:D], in_b[D:2 * D], in_b[2 * D:]
    q = xf @ wq.T + bq
    k = xf @ wk.T + bk
    v = xf @ wv.T + bv

    def split(t):  # (N, S, D) -> (N, H, S, hd)
        n = t.shape[0]
        return t.reshape(n, S, n_heads, hd).transpose(0, 2, 1, 3)

    qh, kh, vh = split(q), split(k), split(v)
    s = jnp.einsum("nhqd,nhkd->nhqk", qh, kh) / math.sqrt(hd)
    p = jax.nn.softmax(s, axis=-1)
    o = jnp.einsum("nhqk,nhkd->nhqd", p, vh)
    o = o.transpose(0, 2, 1, 3).reshape(B * T, S, D)
    o = o @ params["out_proj_weight"].T + params["out_proj_bias"]
    return o.reshape(B, T, S, D)


def _init_params(key, d_model):
    k1, k2, k3, k4 = jax.random.split(key, 4)
    bound_in = math.sqrt(6.0 / (2 * d_model))            # xavier_uniform-ish
    bound_out = 1.0 / math.sqrt(d_model)
    return {
        "in_proj_weight": jax.random.uniform(
            k1, (3 * d_model, d_model), jnp.float32, -bound_in, bound_in),
        "in_proj_bias": jax.random.uniform(
            k2, (3 * d_model,), jnp.float32, -bound_out, bound_out),
        "out_proj_weight": jax.random.uniform(
            k3, (d_model, d_model), jnp.float32, -bound_out, bound_out),
        "out_proj_bias": jax.random.uniform(
            k4, (d_model,), jnp.float32, -bound_out, bound_out),
    }


if __name__ == "__main__":
    B, T, S, D, H = 2, 3, 8, 32, 4

    key = jax.random.PRNGKey(0)
    kx, kp = jax.random.split(key)
    x = jax.random.normal(kx, (B, T, S, D), dtype=jnp.float32)
    params = _init_params(kp, D)

    out = cross_sectional_self_attention(x, params, H)
    out = jax.block_until_ready(out)

    ref = _reference(x, params, H)
    assert out.shape == (B, T, S, D)
    assert jnp.allclose(out, ref, atol=2e-3, rtol=2e-3), (
        float(jnp.max(jnp.abs(out - ref))))

    print("KERNEL_OK")
</pallas_src>

<mosaic_0001>
module attributes {stable_mosaic.version = 11 : i64} {
  func.func @_mha_kernel(%arg0: i32, %arg1: memref<128x32xf32, #tpu.memory_space<vmem>>, %arg2: memref<32x96xf32, #tpu.memory_space<vmem>>, %arg3: memref<1x96xf32, #tpu.memory_space<vmem>>, %arg4: memref<32x32xf32, #tpu.memory_space<vmem>>, %arg5: memref<1x32xf32, #tpu.memory_space<vmem>>, %arg6: memref<128x128xf32, #tpu.memory_space<vmem>>, %arg7: memref<128x32xf32, #tpu.memory_space<vmem>>) attributes {dimension_semantics = [#tpu.dimension_semantics<parallel>], iteration_bounds = array<i64: 1>, scalar_prefetch = 0 : i64, scratch_operands = 0 : i64, tpu.core_type = #tpu.core_type<tc>, window_params = [{transform_indices = @transform_0, window_bounds = array<i64: 128, 32>}, {pipeline_mode = #tpu.pipeline_mode<synchronous>, transform_indices = @transform_1, window_bounds = array<i64: 32, 96>}, {pipeline_mode = #tpu.pipeline_mode<synchronous>, transform_indices = @transform_2, window_bounds = array<i64: 1, 96>}, {pipeline_mode = #tpu.pipeline_mode<synchronous>, transform_indices = @transform_3, window_bounds = array<i64: 32, 32>}, {pipeline_mode = #tpu.pipeline_mode<synchronous>, transform_indices = @transform_4, window_bounds = array<i64: 1, 32>}, {pipeline_mode = #tpu.pipeline_mode<synchronous>, transform_indices = @transform_5, window_bounds = array<i64: 128, 128>}, {transform_indices = @transform_6, window_bounds = array<i64: 128, 32>}]} {
    %c0 = arith.constant 0 : index
    %c0_0 = arith.constant 0 : index
    %0 = vector.load %arg1[%c0, %c0_0] : memref<128x32xf32, #tpu.memory_space<vmem>>, vector<128x32xf32>
    %c0_1 = arith.constant 0 : index
    %c0_2 = arith.constant 0 : index
    %1 = vector.load %arg2[%c0_1, %c0_2] : memref<32x96xf32, #tpu.memory_space<vmem>>, vector<32x96xf32>
    %cst = arith.constant dense<0.000000e+00> : vector<128x96xf32>
    %2 = tpu.matmul %0, %1, %cst {dimension_numbers = #tpu.dot_dimension_numbers<[1], [0], [0], [1], [0, 0, 1, 1], [], []>} : vector<128x32xf32>, vector<32x96xf32>, vector<128x96xf32> -> vector<128x96xf32>
    %c0_3 = arith.constant 0 : index
    %c0_4 = arith.constant 0 : index
    %3 = vector.load %arg3[%c0_3, %c0_4] : memref<1x96xf32, #tpu.memory_space<vmem>>, vector<1x96xf32>
    %4 = vector.broadcast %3 : vector<1x96xf32> to vector<128x96xf32>
    %5 = arith.addf %2, %4 : vector<128x96xf32>
    %6 = vector.extract_strided_slice %5 {offsets = [0, 0], sizes = [128, 32], strides = [1, 1]} : vector<128x96xf32> to vector<128x32xf32>
    %7 = vector.extract_strided_slice %5 {offsets = [0, 32], sizes = [128, 32], strides = [1, 1]} : vector<128x96xf32> to vector<128x32xf32>
    %8 = vector.extract_strided_slice %5 {offsets = [0, 64], sizes = [128, 32], strides = [1, 1]} : vector<128x96xf32> to vector<128x32xf32>
    %c0_5 = arith.constant 0 : index
    %c0_6 = arith.constant 0 : index
    %9 = vector.load %arg6[%c0_5, %c0_6] : memref<128x128xf32, #tpu.memory_space<vmem>>, vector<128x128xf32>
    %c0_7 = arith.constant 0 : index
    %c0_8 = arith.constant 0 : index
    %10 = vector.load %arg4[%c0_7, %c0_8] : memref<32x32xf32, #tpu.memory_space<vmem>>, vector<32x32xf32>
    %11 = vector.extract_strided_slice %6 {offsets = [0, 0], sizes = [128, 8], strides = [1, 1]} : vector<128x32xf32> to vector<128x8xf32>
    %12 = vector.extract_strided_slice %7 {offsets = [0, 0], sizes = [128, 8], strides = [1, 1]} : vector<128x32xf32> to vector<128x8xf32>
    %13 = vector.extract_strided_slice %8 {offsets = [0, 0], sizes = [128, 8], strides = [1, 1]} : vector<128x32xf32> to vector<128x8xf32>
    %cst_9 = arith.constant dense<0.000000e+00> : vector<128x128xf32>
    %14 = tpu.matmul %11, %12, %cst_9 {dimension_numbers = #tpu.dot_dimension_numbers<[1], [1], [0], [0], [0, 0, 1, 0], [], []>} : vector<128x8xf32>, vector<128x8xf32>, vector<128x128xf32> -> vector<128x128xf32>
    %15 = arith.addf %14, %9 : vector<128x128xf32>
    %cst_10 = arith.constant dense<0xFF800000> : vector<128xf32>
    %16 = vector.multi_reduction <maximumf>, %15, %cst_10 [1] : vector<128x128xf32> to vector<128xf32>
    %17 = vector.shape_cast %16 : vector<128xf32> to vector<128x1xf32>
    %18 = vector.broadcast %17 : vector<128x1xf32> to vector<128x128xf32>
    %19 = arith.subf %15, %18 : vector<128x128xf32>
    %20 = math.exp %19 : vector<128x128xf32>
    %cst_11 = arith.constant dense<0.000000e+00> : vector<128xf32>
    %21 = vector.multi_reduction <add>, %20, %cst_11 [1] : vector<128x128xf32> to vector<128xf32>
    %22 = vector.shape_cast %21 : vector<128xf32> to vector<128x1xf32>
    %cst_12 = arith.constant dense<0.000000e+00> : vector<128x8xf32>
    %23 = tpu.matmul %20, %13, %cst_12 {dimension_numbers = #tpu.dot_dimension_numbers<[1], [0], [0], [1], [0, 0, 1, 1], [], []>} : vector<128x128xf32>, vector<128x8xf32>, vector<128x8xf32> -> vector<128x8xf32>
    %24 = tpu.reciprocal %22 {approx = true} : vector<128x1xf32> -> vector<128x1xf32>
    %25 = vector.broadcast %24 : vector<128x1xf32> to vector<128x8xf32>
    %26 = arith.mulf %23, %25 : vector<128x8xf32>
    %27 = vector.extract_strided_slice %10 {offsets = [0, 0], sizes = [8, 32], strides = [1, 1]} : vector<32x32xf32> to vector<8x32xf32>
    %cst_13 = arith.constant dense<0.000000e+00> : vector<128x32xf32>
    %28 = tpu.matmul %26, %27, %cst_13 {dimension_numbers = #tpu.dot_dimension_numbers<[1], [0], [0], [1], [0, 0, 1, 1], [], []>} : vector<128x8xf32>, vector<8x32xf32>, vector<128x32xf32> -> vector<128x32xf32>
    %29 = vector.extract_strided_slice %6 {offsets = [0, 8], sizes = [128, 8], strides = [1, 1]} : vector<128x32xf32> to vector<128x8xf32>
    %30 = vector.extract_strided_slice %7 {offsets = [0, 8], sizes = [128, 8], strides = [1, 1]} : vector<128x32xf32> to vector<128x8xf32>
    %31 = vector.extract_strided_slice %8 {offsets = [0, 8], sizes = [128, 8], strides = [1, 1]} : vector<128x32xf32> to vector<128x8xf32>
    %cst_14 = arith.constant dense<0.000000e+00> : vector<128x128xf32>
    %32 = tpu.matmul %29, %30, %cst_14 {dimension_numbers = #tpu.dot_dimension_numbers<[1], [1], [0], [0], [0, 0, 1, 0], [], []>} : vector<128x8xf32>, vector<128x8xf32>, vector<128x128xf32> -> vector<128x128xf32>
    %33 = arith.addf %32, %9 : vector<128x128xf32>
    %cst_15 = arith.constant dense<0xFF800000> : vector<128xf32>
    %34 = vector.multi_reduction <maximumf>, %33, %cst_15 [1] : vector<128x128xf32> to vector<128xf32>
    %35 = vector.shape_cast %34 : vector<128xf32> to vector<128x1xf32>
    %36 = vector.broadcast %35 : vector<128x1xf32> to vector<128x128xf32>
    %37 = arith.subf %33, %36 : vector<128x128xf32>
    %38 = math.exp %37 : vector<128x128xf32>
    %cst_16 = arith.constant dense<0.000000e+00> : vector<128xf32>
    %39 = vector.multi_reduction <add>, %38, %cst_16 [1] : vector<128x128xf32> to vector<128xf32>
    %40 = vector.shape_cast %39 : vector<128xf32> to vector<128x1xf32>
    %cst_17 = arith.constant dense<0.000000e+00> : vector<128x8xf32>
    %41 = tpu.matmul %38, %31, %cst_17 {dimension_numbers = #tpu.dot_dimension_numbers<[1], [0], [0], [1], [0, 0, 1, 1], [], []>} : vector<128x128xf32>, vector<128x8xf32>, vector<128x8xf32> -> vector<128x8xf32>
    %42 = tpu.reciprocal %40 {approx = true} : vector<128x1xf32> -> vector<128x1xf32>
    %43 = vector.broadcast %42 : vector<128x1xf32> to vector<128x8xf32>
    %44 = arith.mulf %41, %43 : vector<128x8xf32>
    %45 = vector.extract_strided_slice %10 {offsets = [8, 0], sizes = [8, 32], strides = [1, 1]} : vector<32x32xf32> to vector<8x32xf32>
    %cst_18 = arith.constant dense<0.000000e+00> : vector<128x32xf32>
    %46 = tpu.matmul %44, %45, %cst_18 {dimension_numbers = #tpu.dot_dimension_numbers<[1], [0], [0], [1], [0, 0, 1, 1], [], []>} : vector<128x8xf32>, vector<8x32xf32>, vector<128x32xf32> -> vector<128x32xf32>
    %47 = arith.addf %28, %46 : vector<128x32xf32>
    %48 = vector.extract_strided_slice %6 {offsets = [0, 16], sizes = [128, 8], strides = [1, 1]} : vector<128x32xf32> to vector<128x8xf32>
    %49 = vector.extract_strided_slice %7 {offsets = [0, 16], sizes = [128, 8], strides = [1, 1]} : vector<128x32xf32> to vector<128x8xf32>
    %50 = vector.extract_strided_slice %8 {offsets = [0, 16], sizes = [128, 8], strides = [1, 1]} : vector<128x32xf32> to vector<128x8xf32>
    %cst_19 = arith.constant dense<0.000000e+00> : vector<128x128xf32>
    %51 = tpu.matmul %48, %49, %cst_19 {dimension_numbers = #tpu.dot_dimension_numbers<[1], [1], [0], [0], [0, 0, 1, 0], [], []>} : vector<128x8xf32>, vector<128x8xf32>, vector<128x128xf32> -> vector<128x128xf32>
    %52 = arith.addf %51, %9 : vector<128x128xf32>
    %cst_20 = arith.constant dense<0xFF800000> : vector<128xf32>
    %53 = vector.multi_reduction <maximumf>, %52, %cst_20 [1] : vector<128x128xf32> to vector<128xf32>
    %54 = vector.shape_cast %53 : vector<128xf32> to vector<128x1xf32>
    %55 = vector.broadcast %54 : vector<128x1xf32> to vector<128x128xf32>
    %56 = arith.subf %52, %55 : vector<128x128xf32>
    %57 = math.exp %56 : vector<128x128xf32>
    %cst_21 = arith.constant dense<0.000000e+00> : vector<128xf32>
    %58 = vector.multi_reduction <add>, %57, %cst_21 [1] : vector<128x128xf32> to vector<128xf32>
    %59 = vector.shape_cast %58 : vector<128xf32> to vector<128x1xf32>
    %cst_22 = arith.constant dense<0.000000e+00> : vector<128x8xf32>
    %60 = tpu.matmul %57, %50, %cst_22 {dimension_numbers = #tpu.dot_dimension_numbers<[1], [0], [0], [1], [0, 0, 1, 1], [], []>} : vector<128x128xf32>, vector<128x8xf32>, vector<128x8xf32> -> vector<128x8xf32>
    %61 = tpu.reciprocal %59 {approx = true} : vector<128x1xf32> -> vector<128x1xf32>
    %62 = vector.broadcast %61 : vector<128x1xf32> to vector<128x8xf32>
    %63 = arith.mulf %60, %62 : vector<128x8xf32>
    %64 = vector.extract_strided_slice %10 {offsets = [16, 0], sizes = [8, 32], strides = [1, 1]} : vector<32x32xf32> to vector<8x32xf32>
    %cst_23 = arith.constant dense<0.000000e+00> : vector<128x32xf32>
    %65 = tpu.matmul %63, %64, %cst_23 {dimension_numbers = #tpu.dot_dimension_numbers<[1], [0], [0], [1], [0, 0, 1, 1], [], []>} : vector<128x8xf32>, vector<8x32xf32>, vector<128x32xf32> -> vector<128x32xf32>
    %66 = arith.addf %47, %65 : vector<128x32xf32>
    %67 = vector.extract_strided_slice %6 {offsets = [0, 24], sizes = [128, 8], strides = [1, 1]} : vector<128x32xf32> to vector<128x8xf32>
    %68 = vector.extract_strided_slice %7 {offsets = [0, 24], sizes = [128, 8], strides = [1, 1]} : vector<128x32xf32> to vector<128x8xf32>
    %69 = vector.extract_strided_slice %8 {offsets = [0, 24], sizes = [128, 8], strides = [1, 1]} : vector<128x32xf32> to vector<128x8xf32>
    %cst_24 = arith.constant dense<0.000000e+00> : vector<128x128xf32>
    %70 = tpu.matmul %67, %68, %cst_24 {dimension_numbers = #tpu.dot_dimension_numbers<[1], [1], [0], [0], [0, 0, 1, 0], [], []>} : vector<128x8xf32>, vector<128x8xf32>, vector<128x128xf32> -> vector<128x128xf32>
    %71 = arith.addf %70, %9 : vector<128x128xf32>
    %cst_25 = arith.constant dense<0xFF800000> : vector<128xf32>
    %72 = vector.multi_reduction <maximumf>, %71, %cst_25 [1] : vector<128x128xf32> to vector<128xf32>
    %73 = vector.shape_cast %72 : vector<128xf32> to vector<128x1xf32>
    %74 = vector.broadcast %73 : vector<128x1xf32> to vector<128x128xf32>
    %75 = arith.subf %71, %74 : vector<128x128xf32>
    %76 = math.exp %75 : vector<128x128xf32>
    %cst_26 = arith.constant dense<0.000000e+00> : vector<128xf32>
    %77 = vector.multi_reduction <add>, %76, %cst_26 [1] : vector<128x128xf32> to vector<128xf32>
    %78 = vector.shape_cast %77 : vector<128xf32> to vector<128x1xf32>
    %cst_27 = arith.constant dense<0.000000e+00> : vector<128x8xf32>
    %79 = tpu.matmul %76, %69, %cst_27 {dimension_numbers = #tpu.dot_dimension_numbers<[1], [0], [0], [1], [0, 0, 1, 1], [], []>} : vector<128x128xf32>, vector<128x8xf32>, vector<128x8xf32> -> vector<128x8xf32>
    %80 = tpu.reciprocal %78 {approx = true} : vector<128x1xf32> -> vector<128x1xf32>
    %81 = vector.broadcast %80 : vector<128x1xf32> to vector<128x8xf32>
    %82 = arith.mulf %79, %81 : vector<128x8xf32>
    %83 = vector.extract_strided_slice %10 {offsets = [24, 0], sizes = [8, 32], strides = [1, 1]} : vector<32x32xf32> to vector<8x32xf32>
    %cst_28 = arith.constant dense<0.000000e+00> : vector<128x32xf32>
    %84 = tpu.matmul %82, %83, %cst_28 {dimension_numbers = #tpu.dot_dimension_numbers<[1], [0], [0], [1], [0, 0, 1, 1], [], []>} : vector<128x8xf32>, vector<8x32xf32>, vector<128x32xf32> -> vector<128x32xf32>
    %85 = arith.addf %66, %84 : vector<128x32xf32>
    %c0_29 = arith.constant 0 : index
    %c0_30 = arith.constant 0 : index
    %86 = vector.load %arg5[%c0_29, %c0_30] : memref<1x32xf32, #tpu.memory_space<vmem>>, vector<1x32xf32>
    %87 = vector.broadcast %86 : vector<1x32xf32> to vector<128x32xf32>
    %88 = arith.addf %85, %87 : vector<128x32xf32>
    %c0_31 = arith.constant 0 : index
    %c0_32 = arith.constant 0 : index
    %89 = vector.load %arg7[%c0_31, %c0_32] : memref<128x32xf32, #tpu.memory_space<vmem>>, vector<128x32xf32>
    tpu.vector_store %arg7[%c0_31, %c0_32], %88 {strides = array<i32>} : memref<128x32xf32, #tpu.memory_space<vmem>>, vector<128x32xf32>,
    return
  }
  func.func @transform_0(%arg0: i32) -> (i32, i32) {
    %c0_i32 = arith.constant 0 : i32
    %c0_i32_0 = arith.constant 0 : i32
    return %arg0, %c0_i32 : i32, i32
  }
  func.func @transform_1(%arg0: i32) -> (i32, i32) {
    %c0_i32 = arith.constant 0 : i32
    %c0_i32_0 = arith.constant 0 : i32
    %c0_i32_1 = arith.constant 0 : i32
    return %c0_i32, %c0_i32_0 : i32, i32
  }
  func.func @transform_2(%arg0: i32) -> (i32, i32) {
    %c0_i32 = arith.constant 0 : i32
    %c0_i32_0 = arith.constant 0 : i32
    %c0_i32_1 = arith.constant 0 : i32
    return %c0_i32, %c0_i32_0 : i32, i32
  }
  func.func @transform_3(%arg0: i32) -> (i32, i32) {
    %c0_i32 = arith.constant 0 : i32
    %c0_i32_0 = arith.constant 0 : i32
    %c0_i32_1 = arith.constant 0 : i32
    return %c0_i32, %c0_i32_0 : i32, i32
  }
  func.func @transform_4(%arg0: i32) -> (i32, i32) {
    %c0_i32 = arith.constant 0 : i32
    %c0_i32_0 = arith.constant 0 : i32
    %c0_i32_1 = arith.constant 0 : i32
    return %c0_i32, %c0_i32_0 : i32, i32
  }
  func.func @transform_5(%arg0: i32) -> (i32, i32) {
    %c0_i32 = arith.constant 0 : i32
    %c0_i32_0 = arith.constant 0 : i32
    %c0_i32_1 = arith.constant 0 : i32
    return %c0_i32, %c0_i32_0 : i32, i32
  }
  func.func @transform_6(%arg0: i32) -> (i32, i32) {
    %c0_i32 = arith.constant 0 : i32
    %c0_i32_0 = arith.constant 0 : i32
    return %arg0, %c0_i32 : i32, i32
  }
}

</mosaic_0001>

<bundles_post_ra>
// kernel: tpu_custom_call.1
= control target key start
LH: loop header
LB: loop body
LE: loop exit
PB: predicated region body
PF: predicated region fallthrough
CT: control target
= control target key end

     0   :  { %11 = vsyncpa [#allocation3], 0  ;;  %s5721_s21 = smov [#allocation2]   ;;  %s7437_s0 = inlined_call_operand.vmem [shape: f32[128,32], index: 0, kind: input, shape index: {}]   ;;  %s7438_s1 = inlined_call_operand.vmem [shape: f32[32,96], index: 1, kind: input, shape index: {}]   ;;  %s7439_s2 = inlined_call_operand.vmem [shape: f32[1,96], index: 2, kind: input, shape index: {}]   ;;  %s7440_s3 = inlined_call_operand.hbm [shape: f32[32,32], index: 3, kind: input, shape index: {}]   ;;  %s7441_s4 = inlined_call_operand.vmem [shape: f32[1,32], index: 4, kind: input, shape index: {}]   ;;  %s7442_s5 = inlined_call_operand.vmem [shape: f32[128,128], index: 5, kind: input, shape index: {}]   ;;  %s7443_s6 = inlined_call_operand.vmem [shape: f32[128,32], index: 6, kind: output, shape index: {}]  }
   0x1   :  { %s23_s22 = sshll.u32 %s5721_s21, 4  ;;  %s5697_s25 = scalar_lea.hbm %s7440_s3, 512  ;;  %s24_s22 = int_to_ptr.vmem [resolvable:$true] %s23_s22 }
   0x2   :  { %p5698_p0 = scmp.ne.s32.totalorder %s7440_s3, %s5697_s25  ;;  %p5701_p1 = scmp.lt.u32.totalorder %s5697_s25, %s7440_s3 }
   0x4   :  { %p5703_p2 = pnand %p5701_p1, %p5698_p0 }
   0x6   :  { %5706 = shalt.err (!%p5703_p2)
}
   0x7   :  { %s5707_s30 = scalar_lea.vmem %s24_s22, 512  ;;  %p5712_p4 = scmp.lt.s32.totalorder %s24_s22, %s24_s22 }
   0x8   :  { %p5708_p3 = scmp.ne.s32.totalorder %s24_s22, %s5707_s30  ;;  %p5713_p5 = scmp.lt.s32.totalorder %s5707_s30, %s5707_s30 }
   0xa   :  { %p5714_p6 = por %p5713_p5, %p5712_p4 }
   0xc   :  { %p5715_p7 = pnand %p5714_p6, %p5708_p3 }
   0xe   :  { %5718 = shalt.err (!%p5715_p7)
}
   0xf   :  { %s5722_s7 = smov 128   ;;  %s5723_s8 = smov 8  }
  0x10   :  { %29 = dma.hbm_to_vmem [thread:$0]  %s7440_s3, 512, %s24_s22, [#allocation3], %s5722_s7, %s5722_s7, %s5723_s8  }
  0x11   :  { %5719 = dma.done.wait [#allocation3], 512  }
  0x12   :  { %5720 = vsyncadd [#allocation3], 4294966784  ;;  %vm64_vm0 = vcmask 261120   ;;  %v53_v0 = vld [vmem:[%s7438_s1] sm:$0xff]  ;;  %v54_v1 = vld [vmem:[%s7438_s1 + $0x8] sm:$0xff]  ;;  %vm326_vm1 = vcmask 64512  }
  0x13   :  { %v55_v2 = vld [vmem:[%s7438_s1 + $0x10] sm:$0xff]  ;;  %v4689_v3 = vpack.c.bf16 %v54_v1, %v53_v0  ;;  %v56_v4 = vld [vmem:[%s7438_s1 + $0x18] sm:$0xff]  ;;  %v37_v5 = vld [vmem:[%s7437_s0] sm:$0xff]  ;;  %s5726_s25 = smov 88   ;;  %s5727_s7 = smov 120  }
  0x14   :  { %v4693_v6 = vpack.c.bf16 %v56_v4, %v55_v2  ;;  %4113 = vmatprep.mubr.msk.f32.mxu0 %vm64_vm0, %v37_v5  ;;  %v38_v7 = vld [vmem:[%s7437_s0 + $0x8] sm:$0xff]  ;;  %v39_v8 = vld [vmem:[%s7437_s0 + $0x10] sm:$0xff]  ;;  %v40_v9 = vld [vmem:[%s7437_s0 + $0x18] sm:$0xff]  ;;  %s5729_s8 = smov 56   ;;  %s5730_s9 = smov 112  }
  0x15   :  { %4690 = vmatprep.subr.bf16.mxu0 %v4689_v3  ;;  %v41_v10 = vld [vmem:[%s7437_s0 + $0x20] sm:$0xff]  ;;  %v42_v11 = vld [vmem:[%s7437_s0 + $0x28] sm:$0xff]  ;;  %v43_v12 = vld [vmem:[%s7437_s0 + $0x30] sm:$0xff]  ;;  %s5731_s10 = smov 72   ;;  %s5732_s11 = smov 104  }
  0x16   :  { %4692 = vmatpush3.bf16.msra.mxu0 %v4689_v3  ;;  %v44_v13 = vld [vmem:[%s7437_s0 + $0x38] sm:$0xff]  ;;  %v45_v14 = vld [vmem:[%s7437_s0 + $0x40] sm:$0xff]  ;;  %v46_v15 = vld [vmem:[%s7437_s0 + $0x48] sm:$0xff]  ;;  %s5733_s17 = smov 48  }
  0x17   :  { %4694 = vmatprep.subr.bf16.mxu0 %v4693_v6  ;;  %v47_v16 = vld [vmem:[%s7437_s0 + $0x50] sm:$0xff]  ;;  %v48_v17 = vld [vmem:[%s7437_s0 + $0x58] sm:$0xff]  ;;  %v49_v18 = vld [vmem:[%s7437_s0 + $0x60] sm:$0xff] }
  0x18   :  { %v50_v19 = vld [vmem:[%s7437_s0 + $0x68] sm:$0xff]  ;;  %v51_v20 = vld [vmem:[%s7437_s0 + $0x70] sm:$0xff]  ;;  %v52_v21 = vld [vmem:[%s7437_s0 + $0x78] sm:$0xff]  ;;  %s5724_s0 = smov 96  }
  0x19   :  { %v3551_v22 = vld [vmem:[%s7439_s2] ss:$0 sm:$0xff]  ;;  %s5725_s2 = smov 64   ;;  %vm5963_vm2 = vmpackc.low %vm326_vm1, %vm326_vm1 }
  0x1a   :  { %4696 = vmatpush3.bf16.msra.mxu0 %v4693_v6 }
  0x1d   :  { %4114 = vmatmul.mubr.msk.f32.vlgmr.msra.gmra.mrb[0].mxu0 %vm64_vm0, %v38_v7 }
  0x1e   :  { %4116 = vmatprep.mubr.msk.f32.mxu0 %vm64_vm0, %v39_v8 }
  0x21   :  { %4117 = vmatmul.mubr.msk.f32.gmra.mrb[2].mxu0 %vm64_vm0, %v40_v9 }
  0x22   :  { %4119 = vmatprep.mubr.msk.f32.mxu0 %vm64_vm0, %v41_v10 }
  0x25   :  { %4120 = vmatmul.mubr.msk.f32.gmra.mrb[4].mxu0 %vm64_vm0, %v42_v11 }
  0x26   :  { %4122 = vmatprep.mubr.msk.f32.mxu0 %vm64_vm0, %v43_v12 }
  0x29   :  { %4123 = vmatmul.mubr.msk.f32.gmra.mrb[6].mxu0 %vm64_vm0, %v44_v13 }
  0x2a   :  { %4125 = vmatprep.mubr.msk.f32.mxu0 %vm64_vm0, %v45_v14 }
  0x2d   :  { %4126 = vmatmul.mubr.msk.f32.gmra.mrb[8].mxu0 %vm64_vm0, %v46_v15 }
  0x2e   :  { %4128 = vmatprep.mubr.msk.f32.mxu0 %vm64_vm0, %v47_v16 }
  0x31   :  { %4129 = vmatmul.mubr.msk.f32.gmra.mrb[10].mxu0 %vm64_vm0, %v48_v17 }
  0x32   :  { %4131 = vmatprep.mubr.msk.f32.mxu0 %vm64_vm0, %v49_v18 }
  0x35   :  { %4132 = vmatmul.mubr.msk.f32.gmra.mrb[12].mxu0 %vm64_vm0, %v50_v19 }
  0x36   :  { %4134 = vmatprep.mubr.msk.f32.mxu0 %vm64_vm0, %v51_v20 }
  0x39   :  { %4135 = vmatmul.mubr.msk.f32.gmra.mrb[14].mxu0 %vm64_vm0, %v52_v21 }
  0xf0   :  { %v4115_v23 = vpop.f32.mrb[0].mxu0 }
  0xf1   :  { %v5861_v24 = vadd.f32 %v4115_v23, %v3551_v22  ;;  %v179_v25 = vpop.f32.mrb[1].mxu0 }
  0xf2   :  { %v5863_v26 = vadd.f32 %v3551_v22, %v179_v25 }
  0xf4   :  { %4169 = vmatprep.mubr.msk.f32.mxu1 %vm326_vm1, %v5863_v26  ;;  %v5869_v27 = vpack.i.bf16 %v5861_v24, %v5863_v26  ;;  %v4118_v28 = vpop.f32.mrb[2].mxu0 }
  0xf5   :  { %v5871_v29 = vadd.f32 %v4118_v28, %v3551_v22  ;;  %v189_v30 = vpop.f32.mrb[3].mxu0 }
  0xf6   :  { %5096 = vrot.lane.b32.xlu0 %v5869_v27, %s5724_s0  ;;  %v5875_v31 = vadd.f32 %v3551_v22, %v189_v30 }
  0xf8   :  { %v5879_v32 = vpack.i.bf16 %v5871_v29, %v5875_v31  ;;  %v4121_v33 = vpop.f32.mrb[4].mxu0 }
  0xf9   :  { %v5881_v34 = vadd.f32 %v4121_v33, %v3551_v22  ;;  %v199_v35 = vpop.f32.mrb[5].mxu0 }
  0xfa   :  { %5101 = vrot.lane.b32.xlu0 %v5879_v32, %s5724_s0  ;;  %v5885_v36 = vadd.f32 %v3551_v22, %v199_v35 }
  0xfc   :  { %v4124_v37 = vpop.f32.mrb[6].mxu0  ;;  %v5889_v38 = vpack.i.bf16 %v5881_v34, %v5885_v36 }
  0xfd   :  { %v5891_v39 = vadd.f32 %v4124_v37, %v3551_v22  ;;  %v209_v40 = vpop.f32.mrb[7].mxu0 }
  0xfe   :  { %v5893_v41 = vadd.f32 %v3551_v22, %v209_v40  ;;  %5106 = vrot.lane.b32.xlu1 %v5889_v38, %s5724_s0 }
 0x100   :  { %v4127_v42 = vpop.f32.mrb[8].mxu0  ;;  %v5899_v43 = vpack.i.bf16 %v5891_v39, %v5893_v41 }
 0x101   :  { %v5901_v44 = vadd.f32 %v4127_v42, %v3551_v22  ;;  %v219_v45 = vpop.f32.mrb[9].mxu0 }
 0x102   :  { %7464 = vst [vmem:[#allocation5_spill] sm:$0xff] %v5899_v43  ;;  %v5903_v46 = vadd.f32 %v3551_v22, %v219_v45  ;;  %5111 = vrot.lane.b32.xlu1 %v5899_v43, %s5724_s0 }
 0x104   :  { %v4130_v47 = vpop.f32.mrb[10].mxu0  ;;  %v5909_v48 = vpack.i.bf16 %v5901_v44, %v5903_v46 }
 0x105   :  { %v5911_v49 = vadd.f32 %v4130_v47, %v3551_v22  ;;  %v229_v50 = vpop.f32.mrb[11].mxu0 }
 0x106   :  { %v5913_v51 = vadd.f32 %v3551_v22, %v229_v50  ;;  %5116 = vrot.lane.b32.xlu0 %v5909_v48, %s5724_s0 }
 0x108   :  { %v4133_v52 = vpop.f32.mrb[12].mxu0  ;;  %v5919_v53 = vpack.i.bf16 %v5911_v49, %v5913_v51 }
 0x109   :  { %v5921_v54 = vadd.f32 %v4133_v52, %v3551_v22  ;;  %v239_v55 = vpop.f32.mrb[13].mxu0 }
 0x10a   :  { %7465 = vst [vmem:[#allocation6_spill] sm:$0xff] %v5919_v53  ;;  %v5923_v56 = vadd.f32 %v3551_v22, %v239_v55  ;;  %5121 = vrot.lane.b32.xlu1 %v5919_v53, %s5724_s0 }
 0x10c   :  { %v4136_v57 = vpop.f32.mrb[14].mxu0  ;;  %v5929_v58 = vpack.i.bf16 %v5921_v54, %v5923_v56 }
 0x10d   :  { %v5931_v59 = vadd.f32 %v4136_v57, %v3551_v22  ;;  %v249_v60 = vpop.f32.mrb[15].mxu0 }
 0x10e   :  { %7466 = vst [vmem:[#allocation7_spill] sm:$0xff] %v5929_v58  ;;  %v5933_v61 = vadd.f32 %v3551_v22, %v249_v60  ;;  %5126 = vrot.lane.b32.xlu0 %v5929_v58, %s5724_s0 }
 0x110   :  { %v5939_v62 = vpack.i.bf16 %v5931_v59, %v5933_v61 }
 0x112   :  { %7467 = vst [vmem:[#allocation8_spill] sm:$0xff] %v5939_v62  ;;  %5131 = vrot.lane.b32.xlu1 %v5939_v62, %s5724_s0  ;;  %5136 = vrot.lane.b32.xlu0 %v5869_v27, %s5725_s2 }
 0x116   :  { %5141 = vrot.lane.b32.xlu1 %v5879_v32, %s5725_s2  ;;  %5146 = vrot.lane.b32.xlu0 %v5889_v38, %s5725_s2 }
 0x11a   :  { %5156 = vrot.lane.b32.xlu1 %v5909_v48, %s5725_s2  ;;  %5151 = vrot.lane.b32.xlu0 %v5899_v43, %s5725_s2 }
 0x11e   :  { %5161 = vrot.lane.b32.xlu1 %v5919_v53, %s5725_s2  ;;  %5166 = vrot.lane.b32.xlu0 %v5929_v58, %s5725_s2 }
 0x122   :  { %5186 = vrot.lane.b32.xlu1 %v5899_v43, %s5726_s25  ;;  %5171 = vrot.lane.b32.xlu0 %v5869_v27, %s5726_s25 }
 0x126   :  { %5176 = vrot.lane.b32.xlu0 %v5879_v32, %s5726_s25  ;;  %5196 = vrot.lane.b32.xlu1 %v5939_v62, %s5725_s2 }
 0x12a   :  { %5181 = vrot.lane.b32.xlu0 %v5889_v38, %s5726_s25 }
 0x12e   :  { %5191 = vrot.lane.b32.xlu0 %v5909_v48, %s5726_s25 }
 0x168   :  { %v5097_v63 = vpop.permute.xlu0 %5096 }
 0x169   :  { %v5099_v0 = vunpack.i.h.bf16 %v5097_v63  ;;  %v5098_v1 = vunpack.i.l.bf16 %v5097_v63 }
 0x16b   :  { %v4697_v3 = vpack.c.bf16 %v5099_v0, %v5098_v1 }
 0x16c   :  { %v5102_v4 = vpop.permute.xlu0 %5101 }
 0x16d   :  { %4699 = vmatprep.subr.msk.bf16.mxu1 %vm5963_vm2, %v4697_v3  ;;  %v5104_v5 = vunpack.i.h.bf16 %v5102_v4  ;;  %v5103_v6 = vunpack.i.l.bf16 %v5102_v4 }
 0x16e   :  { %4702 = vmatpush3.bf16.xpose.msk.msra.mxu1 %vm5963_vm2, %v4697_v3 }
 0x16f   :  { %v4703_v7 = vpack.c.bf16 %v5104_v5, %v5103_v6 }
 0x170   :  { %v5107_v8 = vpop.permute.xlu1 %5106 }
 0x171   :  { %4705 = vmatprep.subr.msk.bf16.mxu1 %vm5963_vm2, %v4703_v7  ;;  %v5109_v9 = vunpack.i.h.bf16 %v5107_v8  ;;  %v5108_v10 = vunpack.i.l.bf16 %v5107_v8 }
 0x173   :  { %v4709_v11 = vpack.c.bf16 %v5109_v9, %v5108_v10 }
 0x174   :  { %v5112_v12 = vpop.permute.xlu1 %5111 }
 0x175   :  { %v5114_v13 = vunpack.i.h.bf16 %v5112_v12  ;;  %v5113_v14 = vunpack.i.l.bf16 %v5112_v12 }
 0x176   :  { %4708 = vmatpush3.bf16.xpose.msk.msra.mxu1 %vm5963_vm2, %v4703_v7 }
 0x177   :  { %4711 = vmatprep.subr.msk.bf16.mxu1 %vm5963_vm2, %v4709_v11  ;;  %v4715_v16 = vpack.c.bf16 %v5114_v13, %v5113_v14 }
 0x178   :  { %v5117_v15 = vpop.permute.xlu0 %5116 }
 0x179   :  { %v5119_v18 = vunpack.i.h.bf16 %v5117_v15  ;;  %v5118_v19 = vunpack.i.l.bf16 %v5117_v15 }
 0x17b   :  { %v4721_v21 = vpack.c.bf16 %v5119_v18, %v5118_v19 }
 0x17c   :  { %v5122_v17 = vpop.permute.xlu1 %5121 }
 0x17d   :  { %v5124_v30 = vunpack.i.h.bf16 %v5122_v17  ;;  %v5123_v33 = vunpack.i.l.bf16 %v5122_v17 }
 0x17e   :  { %4714 = vmatpush3.bf16.xpose.msk.msra.mxu1 %vm5963_vm2, %v4709_v11 }
 0x17f   :  { %4717 = vmatprep.subr.msk.bf16.mxu1 %vm5963_vm2, %v4715_v16  ;;  %v4727_v52 = vpack.c.bf16 %v5124_v30, %v5123_v33 }
 0x180   :  { %v5127_v20 = vpop.permute.xlu0 %5126 }
 0x181   :  { %v5129_v3 = vunpack.i.h.bf16 %v5127_v20  ;;  %v5128_v4 = vunpack.i.l.bf16 %v5127_v20 }
 0x183   :  { %v4733_v9 = vpack.c.bf16 %v5129_v3, %v5128_v4 }
 0x184   :  { %v5132_v22 = vpop.permute.xlu1 %5131  ;;  %v5137_v23 = vpop.permute.xlu0 %5136 }
 0x185   :  { %v5139_v25 = vunpack.i.h.bf16 %v5137_v23  ;;  %v5138_v28 = vunpack.i.l.bf16 %v5137_v23  ;;  %v5134_v14 = vunpack.i.h.bf16 %v5132_v22  ;;  %v5133_v15 = vunpack.i.l.bf16 %v5132_v22 }
 0x186   :  { %4720 = vmatpush3.bf16.xpose.msk.msra.mxu1 %vm5963_vm2, %v4715_v16 }
 0x187   :  { %v4745_v35 = vpack.c.bf16 %v5139_v25, %v5138_v28  ;;  %4723 = vmatprep.subr.msk.bf16.mxu1 %vm5963_vm2, %v4721_v21 }
 0x188   :  { %v5142_v37 = vpop.permute.xlu1 %5141  ;;  %v5147_v40 = vpop.permute.xlu0 %5146 }
 0x189   :  { %v5144_v42 = vunpack.i.h.bf16 %v5142_v37  ;;  %v5143_v45 = vunpack.i.l.bf16 %v5142_v37  ;;  %v5149_v47 = vunpack.i.h.bf16 %v5147_v40  ;;  %v5148_v50 = vunpack.i.l.bf16 %v5147_v40  ;;  %4746 = vmatprep.subr.bf16.mxu0 %v4745_v35  ;;  %v259_v40 = vld [vmem:[%s7442_s5 + $0x8] sm:$0xff] }
 0x18a   :  { %4748 = vmatpush3.bf16.msra.mxu0 %v4745_v35 }
 0x18b   :  { %v4749_v55 = vpack.c.bf16 %v5144_v42, %v5143_v45  ;;  %v4753_v1 = vpack.c.bf16 %v5149_v47, %v5148_v50  ;;  %v258_v42 = vld [vmem:[%s7442_s5] sm:$0xff] }
 0x18c   :  { %v5157_v57 = vpop.permute.xlu1 %5156  ;;  %v5152_v60 = vpop.permute.xlu0 %5151 }
 0x18d   :  { %v5154_v63 = vunpack.i.h.bf16 %v5152_v60  ;;  %v5153_v0 = vunpack.i.l.bf16 %v5152_v60  ;;  %4750 = vmatprep.subr.bf16.mxu0 %v4749_v55  ;;  %v5159_v6 = vunpack.i.h.bf16 %v5157_v57  ;;  %v5158_v7 = vunpack.i.l.bf16 %v5157_v57 }
 0x18e   :  { %4726 = vmatpush3.bf16.xpose.msk.msra.mxu1 %vm5963_vm2, %v4721_v21  ;;  %4752 = vmatpush3.bf16.msra.mxu0 %v4749_v55  ;;  %v4739_v21 = vpack.c.bf16 %v5134_v14, %v5133_v15 }
 0x18f   :  { %4754 = vmatprep.subr.bf16.mxu0 %v4753_v1  ;;  %4729 = vmatprep.subr.msk.bf16.mxu1 %vm5963_vm2, %v4727_v52  ;;  %v4757_v8 = vpack.c.bf16 %v5154_v63, %v5153_v0  ;;  %v4761_v13 = vpack.c.bf16 %v5159_v6, %v5158_v7 }
 0x190   :  { %v5162_v5 = vpop.permute.xlu1 %5161  ;;  %v5167_v16 = vpop.permute.xlu0 %5166 }
 0x191   :  { %v5164_v11 = vunpack.i.h.bf16 %v5162_v5  ;;  %v5163_v12 = vunpack.i.l.bf16 %v5162_v5  ;;  %v5169_v18 = vunpack.i.h.bf16 %v5167_v16  ;;  %v5168_v19 = vunpack.i.l.bf16 %v5167_v16  ;;  %v263_v16 = vld [vmem:[%s7442_s5 + $0x28] sm:$0xff] }
 0x192   :  { %4756 = vmatpush3.bf16.msra.mxu0 %v4753_v1 }
 0x193   :  { %4758 = vmatprep.subr.bf16.mxu0 %v4757_v8  ;;  %v4765_v20 = vpack.c.bf16 %v5164_v11, %v5163_v12  ;;  %v4769_v28 = vpack.c.bf16 %v5169_v18, %v5168_v19  ;;  %v261_v12 = vld [vmem:[%s7442_s5 + $0x18] sm:$0xff] }
 0x194   :  { %v5989_v10 = vpop.permute.xlu1 %5186  ;;  %v5172_v30 = vpop.permute.xlu0 %5171 }
 0x195   :  { %v5174_v33 = vunpack.i.h.bf16 %v5172_v30  ;;  %v5173_v35 = vunpack.i.l.bf16 %v5172_v30  ;;  %v264_v30 = vld [vmem:[%s7442_s5 + $0x30] sm:$0xff] }
 0x196   :  { %4732 = vmatpush3.bf16.xpose.msk.msra.mxu1 %vm5963_vm2, %v4727_v52  ;;  %4760 = vmatpush3.bf16.msra.mxu0 %v4757_v8 }
 0x197   :  { %4762 = vmatprep.subr.bf16.mxu0 %v4761_v13  ;;  %4735 = vmatprep.subr.msk.bf16.mxu1 %vm5963_vm2, %v4733_v9  ;;  %v5999_v37 = vpack.c.bf16 %v5174_v33, %v5173_v35  ;;  %v272_v35 = vld [vmem:[%s7442_s5 + $0x70] sm:$0xff] }
 0x198   :  { %v5197_v17 = vpop.permute.xlu1 %5196 }
 0x199   :  { %v5199_v23 = vunpack.i.h.bf16 %v5197_v17  ;;  %v5198_v25 = vunpack.i.l.bf16 %v5197_v17  ;;  %v262_v17 = vld [vmem:[%s7442_s5 + $0x20] sm:$0xff] }
 0x19a   :  { %4764 = vmatpush3.bf16.msra.mxu0 %v4761_v13  ;;  %v260_v13 = vld [vmem:[%s7442_s5 + $0x10] sm:$0xff] }
 0x19b   :  { %4766 = vmatprep.subr.bf16.mxu0 %v4765_v20  ;;  %v4773_v22 = vpack.c.bf16 %v5199_v23, %v5198_v25 }
 0x19e   :  { %4738 = vmatpush3.bf16.xpose.msk.msra.mxu1 %vm5963_vm2, %v4733_v9  ;;  %4768 = vmatpush3.bf16.msra.mxu0 %v4765_v20  ;;  %v269_v20 = vld [vmem:[%s7442_s5 + $0x58] sm:$0xff] }
 0x19f   :  { %4770 = vmatprep.subr.bf16.mxu0 %v4769_v28  ;;  %4741 = vmatprep.subr.msk.bf16.mxu1 %vm5963_vm2, %v4739_v21 }
 0x1a2   :  { %4772 = vmatpush3.bf16.msra.mxu0 %v4769_v28  ;;  %v271_v28 = vld [vmem:[%s7442_s5 + $0x68] sm:$0xff] }
 0x1a3   :  { %4774 = vmatprep.subr.bf16.mxu0 %v4773_v22 }
 0x1a6   :  { %4744 = vmatpush3.bf16.xpose.msk.msra.mxu1 %vm5963_vm2, %v4739_v21  ;;  %4776 = vmatpush3.bf16.msra.mxu0 %v4773_v22  ;;  %v265_v21 = vld [vmem:[%s7442_s5 + $0x38] sm:$0xff] }
 0x1a7   :  { %4779 = vmatprep.subr.msk.bf16.mxu0 %vm5963_vm2, %v5999_v37 }
 0x1ad   :  { %4170 = vmatmul.mubr.msk.f32.vlgmr.msra.gmra.mrb[0].mxu1 %vm326_vm1, %v5861_v24 }
 0x1ae   :  { %4172 = vmatprep.mubr.msk.f32.mxu1 %vm326_vm1, %v5875_v31 }
 0x1b1   :  { %4173 = vmatmul.mubr.msk.f32.gmra.mrb[2].mxu1 %vm326_vm1, %v5871_v29 }
 0x1b2   :  { %4175 = vmatprep.mubr.msk.f32.mxu1 %vm326_vm1, %v5885_v36 }
 0x1b5   :  { %4176 = vmatmul.mubr.msk.f32.gmra.mrb[4].mxu1 %vm326_vm1, %v5881_v34 }
 0x1b6   :  { %4178 = vmatprep.mubr.msk.f32.mxu1 %vm326_vm1, %v5893_v41 }
 0x1b9   :  { %4179 = vmatmul.mubr.msk.f32.gmra.mrb[6].mxu1 %vm326_vm1, %v5891_v39 }
 0x1ba   :  { %4181 = vmatprep.mubr.msk.f32.mxu1 %vm326_vm1, %v5903_v46 }
 0x1bd   :  { %4182 = vmatmul.mubr.msk.f32.gmra.mrb[8].mxu1 %vm326_vm1, %v5901_v44 }
 0x1be   :  { %4184 = vmatprep.mubr.msk.f32.mxu1 %vm326_vm1, %v5913_v51 }
 0x1c1   :  { %4185 = vmatmul.mubr.msk.f32.gmra.mrb[10].mxu1 %vm326_vm1, %v5911_v49 }
 0x1c2   :  { %4187 = vmatprep.mubr.msk.f32.mxu1 %vm326_vm1, %v5923_v56 }
 0x1c5   :  { %4188 = vmatmul.mubr.msk.f32.gmra.mrb[12].mxu1 %vm326_vm1, %v5921_v54 }
 0x1c6   :  { %4190 = vmatprep.mubr.msk.f32.mxu1 %vm326_vm1, %v5933_v61 }
 0x1c9   :  { %4191 = vmatmul.mubr.msk.f32.gmra.mrb[14].mxu1 %vm326_vm1, %v5931_v59 }
 0x280   :  { %v4171_v45 = vpop.f32.mrb[0].mxu1 }
 0x281   :  { %v6042_v47 = vadd.f32 %v4171_v45, %v259_v40  ;;  %v457_v50 = vpop.f32.mrb[1].mxu1  ;;  %v267_v40 = vld [vmem:[%s7442_s5 + $0x48] sm:$0xff] }
 0x282   :  { %v6044_v52 = vadd.f32 %v457_v50, %v258_v42  ;;  %v266_v50 = vld [vmem:[%s7442_s5 + $0x40] sm:$0xff] }
 0x283   :  { %538 = vmax.xlane.f32.xlu0 %v6042_v47 }
 0x284   :  { %v4174_v55 = vpop.f32.mrb[2].mxu1  ;;  %536 = vmax.xlane.f32.xlu1 %v6044_v52 }
 0x285   :  { %v467_v57 = vpop.f32.mrb[3].mxu1  ;;  %v6058_v14 = vadd.f32 %v4174_v55, %v261_v12 }
 0x286   :  { %v6060_v15 = vadd.f32 %v467_v57, %v260_v13  ;;  %v268_v57 = vld [vmem:[%s7442_s5 + $0x50] sm:$0xff] }
 0x288   :  { %v4177_v60 = vpop.f32.mrb[4].mxu1 }
 0x289   :  { %v477_v63 = vpop.f32.mrb[5].mxu1  ;;  %v6070_v18 = vadd.f32 %v4177_v60, %v263_v16 }
 0x28a   :  { %v6072_v19 = vadd.f32 %v477_v63, %v262_v17  ;;  %v270_v63 = vld [vmem:[%s7442_s5 + $0x60] sm:$0xff] }
 0x28c   :  { %v4180_v0 = vpop.f32.mrb[6].mxu1 }
 0x28d   :  { %v487_v1 = vpop.f32.mrb[7].mxu1  ;;  %v6084_v25 = vadd.f32 %v4180_v0, %v265_v21 }
 0x28e   :  { %v6096_v33 = vadd.f32 %v487_v1, %v264_v30  ;;  %v273_v1 = vld [vmem:[%s7442_s5 + $0x78] sm:$0xff] }
 0x290   :  { %v4183_v3 = vpop.f32.mrb[8].mxu1 }
 0x291   :  { %v497_v4 = vpop.f32.mrb[9].mxu1  ;;  %v6108_v45 = vadd.f32 %v4183_v3, %v267_v40 }
 0x292   :  { %v6115_v55 = vadd.f32 %v497_v4, %v266_v50  ;;  %v5177_v4 = vpop.permute.xlu0 %5176 }
 0x294   :  { %v4186_v5 = vpop.f32.mrb[10].mxu1 }
 0x295   :  { %v507_v6 = vpop.f32.mrb[11].mxu1  ;;  %5201 = vrot.lane.b32.xlu1 %v5919_v53, %s5726_s25  ;;  %v6082_v23 = vadd.f32 %v4186_v5, %v269_v20 }
 0x296   :  { %v6121_v60 = vadd.f32 %v507_v6, %v268_v57  ;;  %v5182_v5 = vpop.permute.xlu0 %5181 }
 0x297   :  { %v5184_v21 = vunpack.i.h.bf16 %v5182_v5 }
 0x298   :  { %v4189_v7 = vpop.f32.mrb[12].mxu1 }
 0x299   :  { %5206 = vrot.lane.b32.xlu0 %v5929_v58, %s5726_s25  ;;  %v517_v8 = vpop.f32.mrb[13].mxu1  ;;  %v6094_v22 = vadd.f32 %v4189_v7, %v271_v28  ;;  %v5183_v28 = vunpack.i.l.bf16 %v5182_v5 }
 0x29a   :  { %v6127_v0 = vadd.f32 %v517_v8, %v270_v63  ;;  %v5192_v6 = vpop.permute.xlu0 %5191 }
 0x29b   :  { %v4789_v30 = vpack.c.bf16 %v5184_v21, %v5183_v28  ;;  %v5193_v50 = vunpack.i.l.bf16 %v5192_v6 }
 0x29c   :  { %v4192_v9 = vpop.f32.mrb[14].mxu1 }
 0x29d   :  { %v527_v11 = vpop.f32.mrb[15].mxu1  ;;  %v6133_v3 = vadd.f32 %v4192_v9, %v273_v1 }
 0x29e   :  { %v6106_v42 = vadd.f32 %v527_v11, %v272_v35  ;;  %v5188_v35 = vunpack.i.l.bf16 %v5989_v10 }
 0x2b8   :  { %542 = vmax.xlane.f32.xlu0 %v6058_v14 }
 0x2b9   :  { %540 = vmax.xlane.f32.xlu1 %v6060_v15 }
 0x2bc   :  { %546 = vmax.xlane.f32.xlu0 %v6070_v18 }
 0x2bd   :  { %544 = vmax.xlane.f32.xlu1 %v6072_v19 }
 0x2c0   :  { %558 = vmax.xlane.f32.xlu0 %v6082_v23 }
 0x2c1   :  { %550 = vmax.xlane.f32.xlu1 %v6084_v25 }
 0x2c4   :  { %562 = vmax.xlane.f32.xlu0 %v6094_v22 }
 0x2c5   :  { %548 = vmax.xlane.f32.xlu1 %v6096_v33 }
 0x2c8   :  { %564 = vmax.xlane.f32.xlu0 %v6106_v42 }
 0x2c9   :  { %554 = vmax.xlane.f32.xlu1 %v6108_v45 }
 0x2cd   :  { %552 = vmax.xlane.f32.xlu1 %v6115_v55 }
 0x2d1   :  { %556 = vmax.xlane.f32.xlu1 %v6121_v60 }
 0x2d5   :  { %560 = vmax.xlane.f32.xlu1 %v6127_v0 }
 0x2d9   :  { %566 = vmax.xlane.f32.xlu1 %v6133_v3 }
 0x2de   :  { %5211 = vrot.lane.b32.xlu0 %v5939_v62, %s5726_s25  ;;  %s5728_s25 = smov 80  }
 0x2e2   :  { %873 = vrot.lane.b32.xlu0 %v5863_v26, %s5727_s7 }
 0x2e6   :  { %877 = vrot.lane.b32.xlu0 %v5875_v31, %s5727_s7 }
 0x2ea   :  { %881 = vrot.lane.b32.xlu0 %v5885_v36, %s5727_s7  ;;  %875 = vrot.lane.b32.xlu1 %v5861_v24, %s5727_s7 }
 0x2ee   :  { %885 = vrot.lane.b32.xlu0 %v5893_v41, %s5727_s7  ;;  %879 = vrot.lane.b32.xlu1 %v5871_v29, %s5727_s7 }
 0x2f2   :  { %889 = vrot.lane.b32.xlu0 %v5903_v46, %s5727_s7  ;;  %883 = vrot.lane.b32.xlu1 %v5881_v34, %s5727_s7 }
 0x2f6   :  { %893 = vrot.lane.b32.xlu0 %v5913_v51, %s5727_s7  ;;  %887 = vrot.lane.b32.xlu1 %v5891_v39, %s5727_s7 }
 0x2fa   :  { %897 = vrot.lane.b32.xlu0 %v5923_v56, %s5727_s7  ;;  %891 = vrot.lane.b32.xlu1 %v5901_v44, %s5727_s7 }
 0x2fe   :  { %901 = vrot.lane.b32.xlu0 %v5933_v61, %s5727_s7  ;;  %895 = vrot.lane.b32.xlu1 %v5911_v49, %s5727_s7 }
 0x302   :  { %5216 = vrot.lane.b32.xlu0 %v5869_v27, %s5728_s25  ;;  %899 = vrot.lane.b32.xlu1 %v5921_v54, %s5727_s7 }
 0x306   :  { %5226 = vrot.lane.b32.xlu0 %v5889_v38, %s5728_s25  ;;  %903 = vrot.lane.b32.xlu1 %v5931_v59, %s5727_s7 }
 0x30a   :  { %5236 = vrot.lane.b32.xlu0 %v5909_v48, %s5728_s25  ;;  %5221 = vrot.lane.b32.xlu1 %v5879_v32, %s5728_s25 }
 0x30e   :  { %5246 = vrot.lane.b32.xlu0 %v5929_v58, %s5728_s25  ;;  %5231 = vrot.lane.b32.xlu1 %v5899_v43, %s5728_s25 }
 0x310   :  { %v539_v7 = vpop.xlane.xlu0 %538 }
 0x311   :  { %v569_v8 = vsub.f32 %v6042_v47, %v539_v7  ;;  %v537_v9 = vpop.xlane.xlu1 %536  ;;  %v5179_v47 = vunpack.i.h.bf16 %v5177_v4 }
 0x312   :  { %v568_v11 = vsub.f32 %v6044_v52, %v537_v9  ;;  %5256 = vrot.lane.b32.xlu0 %v5939_v62, %s5728_s25  ;;  %5241 = vrot.lane.b32.xlu1 %v5919_v53, %s5728_s25  ;;  %v5178_v52 = vunpack.i.l.bf16 %v5177_v4 }
 0x313   :  { %v586_v12 = vmul.f32 1.442695, %v569_v8 }
 0x314   :  { %v584_v13 = vmul.f32 1.442695, %v568_v11  ;;  %v4783_v20 = vpack.c.bf16 %v5179_v47, %v5178_v52  ;;  %v5207_v5 = vpop.permute.xlu0 %5206 }
 0x315   :  { %v5202_v63 = vpop.permute.xlu1 %5201  ;;  %v5209_v9 = vunpack.i.h.bf16 %v5207_v5  ;;  %v5208_v11 = vunpack.i.l.bf16 %v5207_v5 }
 0x316   :  { %5415 = vpow2.f32 %v584_v13  ;;  %5261 = vrot.lane.b32.xlu0 %v5879_v32, %s5729_s8  ;;  %5251 = vrot.lane.b32.xlu1 %v5869_v27, %s5729_s8  ;;  %v5204_v1 = vunpack.i.h.bf16 %v5202_v63  ;;  %v5203_v4 = vunpack.i.l.bf16 %v5202_v63 }
 0x317   :  { %5417 = vpow2.f32 %v586_v12 }
 0x31a   :  { %5266 = vrot.lane.b32.xlu0 %v5889_v38, %s5729_s8  ;;  %1869 = vrot.lane.b32.xlu1 %v5863_v26, %s5730_s9 }
 0x31e   :  { %1871 = vrot.lane.b32.xlu0 %v5861_v24, %s5730_s9  ;;  %1873 = vrot.lane.b32.xlu1 %v5875_v31, %s5730_s9 }
 0x320   :  { %v6176_v16 = vpop.eup %5415 }
 0x321   :  { %4225 = vmatprep.mubr.f32.mxu0 %v6176_v16  ;;  %v6179_v17 = vpop.eup %5417 }
 0x322   :  { %5271 = vrot.lane.b32.xlu0 %v5899_v43, %s5729_s8  ;;  %1877 = vrot.lane.b32.xlu1 %v5885_v36, %s5730_s9 }
 0x323   :  { %4226 = vmatmul.mubr.f32.vlgmr.msra.gmra.mrb[16].mxu0 %v6179_v17 }
 0x324   :  { %4782 = vmatpush3.bf16.xpose.msk.msra.mxu0 %vm5963_vm2, %v5999_v37  ;;  %v5189_v37 = vunpack.i.h.bf16 %v5989_v10  ;;  %v5194_v10 = vunpack.i.h.bf16 %v5192_v6  ;;  %v4807_v6 = vpack.c.bf16 %v5204_v1, %v5203_v4 }
 0x325   :  { %4785 = vmatprep.subr.msk.bf16.mxu0 %vm5963_vm2, %v4783_v20 }
 0x326   :  { %1875 = vrot.lane.b32.xlu0 %v5871_v29, %s5730_s9  ;;  %1881 = vrot.lane.b32.xlu1 %v5893_v41, %s5730_s9  ;;  %v4795_v40 = vpack.c.bf16 %v5189_v37, %v5188_v35  ;;  %v4801_v57 = vpack.c.bf16 %v5194_v10, %v5193_v50 }
 0x32a   :  { %5276 = vrot.lane.b32.xlu0 %v5909_v48, %s5729_s8  ;;  %1885 = vrot.lane.b32.xlu1 %v5903_v46, %s5730_s9 }
 0x32c   :  { %4788 = vmatpush3.bf16.xpose.msk.msra.mxu0 %vm5963_vm2, %v4783_v20  ;;  %v4813_v20 = vpack.c.bf16 %v5209_v9, %v5208_v11 }
 0x32d   :  { %4791 = vmatprep.subr.msk.bf16.mxu0 %vm5963_vm2, %v4789_v30 }
 0x32e   :  { %1879 = vrot.lane.b32.xlu0 %v5881_v34, %s5730_s9  ;;  %1889 = vrot.lane.b32.xlu1 %v5913_v51, %s5730_s9 }
 0x332   :  { %5281 = vrot.lane.b32.xlu0 %v5919_v53, %s5729_s8  ;;  %1891 = vrot.lane.b32.xlu1 %v5911_v49, %s5730_s9 }
 0x334   :  { %4794 = vmatpush3.bf16.xpose.msk.msra.mxu0 %vm5963_vm2, %v4789_v30 }
 0x335   :  { %4797 = vmatprep.subr.msk.bf16.mxu0 %vm5963_vm2, %v4795_v40 }
 0x336   :  { %1883 = vrot.lane.b32.xlu0 %v5891_v39, %s5730_s9  ;;  %5301 = vrot.lane.b32.xlu1 %v5879_v32, %s5731_s10 }
 0x33a   :  { %5286 = vrot.lane.b32.xlu0 %v5929_v58, %s5729_s8  ;;  %5326 = vrot.lane.b32.xlu1 %v5929_v58, %s5731_s10 }
 0x33c   :  { %4800 = vmatpush3.bf16.xpose.msk.msra.mxu0 %vm5963_vm2, %v4795_v40 }
 0x33d   :  { %4803 = vmatprep.subr.msk.bf16.mxu0 %vm5963_vm2, %v4801_v57 }
 0x33e   :  { %1887 = vrot.lane.b32.xlu0 %v5901_v44, %s5730_s9  ;;  %2688 = vrot.lane.b32.xlu1 %v5863_v26, %s5732_s11 }
 0x342   :  { %5291 = vrot.lane.b32.xlu0 %v5939_v62, %s5729_s8  ;;  %2694 = vrot.lane.b32.xlu1 %v5871_v29, %s5732_s11 }
 0x344   :  { %4806 = vmatpush3.bf16.xpose.msk.msra.mxu0 %vm5963_vm2, %v4801_v57 }
 0x345   :  { %4809 = vmatprep.subr.msk.bf16.mxu0 %vm5963_vm2, %v4807_v6  ;;  %v543_v7 = vpop.xlane.xlu0 %542 }
 0x346   :  { %v571_v8 = vsub.f32 %v6058_v14, %v543_v7  ;;  %1893 = vrot.lane.b32.xlu0 %v5923_v56, %s5730_s9  ;;  %2700 = vrot.lane.b32.xlu1 %v5893_v41, %s5732_s11  ;;  %v541_v26 = vpop.xlane.xlu1 %540 }
 0x347   :  { %v570_v29 = vsub.f32 %v6060_v15, %v541_v26 }
 0x348   :  { %v590_v12 = vmul.f32 1.442695, %v571_v8 }
 0x349   :  { %v588_v13 = vmul.f32 1.442695, %v570_v29  ;;  %v547_v47 = vpop.xlane.xlu0 %546 }
 0x34a   :  { %v573_v52 = vsub.f32 %v6070_v18, %v547_v47  ;;  %1895 = vrot.lane.b32.xlu0 %v5921_v54, %s5730_s9  ;;  %2704 = vrot.lane.b32.xlu1 %v5903_v46, %s5732_s11  ;;  %v545_v14 = vpop.xlane.xlu1 %544 }
 0x34b   :  { %5419 = vpow2.f32 %v588_v13  ;;  %v572_v41 = vsub.f32 %v6072_v19, %v545_v14 }
 0x34c   :  { %5421 = vpow2.f32 %v590_v12  ;;  %v594_v21 = vmul.f32 1.442695, %v573_v52  ;;  %4812 = vmatpush3.bf16.xpose.msk.msra.mxu0 %vm5963_vm2, %v4807_v6 }
 0x34d   :  { %v592_v15 = vmul.f32 1.442695, %v572_v41  ;;  %4815 = vmatprep.subr.msk.bf16.mxu0 %vm5963_vm2, %v4813_v20  ;;  %v559_v18 = vpop.xlane.xlu0 %558 }
 0x34e   :  { %1897 = vrot.lane.b32.xlu0 %v5933_v61, %s5730_s9  ;;  %2708 = vrot.lane.b32.xlu1 %v5913_v51, %s5732_s11  ;;  %v551_v46 = vpop.xlane.xlu1 %550  ;;  %v579_v7 = vsub.f32 %v6082_v23, %v559_v18 }
 0x34f   :  { %5423 = vpow2.f32 %v592_v15  ;;  %v575_v19 = vsub.f32 %v6084_v25, %v551_v46 }
 0x350   :  { %5425 = vpow2.f32 %v594_v21 }
 0x351   :  { %v563_v28 = vpop.xlane.xlu0 %562  ;;  %v598_v35 = vmul.f32 1.442695, %v575_v19 }
 0x352   :  { %1899 = vrot.lane.b32.xlu0 %v5931_v59, %s5730_s9  ;;  %2712 = vrot.lane.b32.xlu1 %v5923_v56, %s5732_s11  ;;  %v549_v30 = vpop.xlane.xlu1 %548  ;;  %v581_v23 = vsub.f32 %v6094_v22, %v563_v28 }
 0x353   :  { %v574_v37 = vsub.f32 %v6096_v33, %v549_v30 }
 0x354   :  { %4818 = vmatpush3.bf16.xpose.msk.msra.mxu0 %vm5963_vm2, %v4813_v20  ;;  %v610_v22 = vmul.f32 1.442695, %v581_v23 }
 0x355   :  { %v6269_v51 = vpop.eup %5419  ;;  %v596_v40 = vmul.f32 1.442695, %v574_v37  ;;  %v565_v10 = vpop.xlane.xlu0 %564 }
 0x356   :  { %v6271_v50 = vpop.eup %5421  ;;  %5296 = vrot.lane.b32.xlu0 %v5869_v27, %s5731_s10  ;;  %4228 = vmatprep.mubr.f32.mxu0 %v6269_v51  ;;  %v555_v25 = vpop.xlane.xlu1 %554  ;;  %v582_v13 = vsub.f32 %v6106_v42, %v565_v10 }
 0x357   :  { %5427 = vpow2.f32 %v596_v40  ;;  %4229 = vmatmul.mubr.f32.gmra.mrb[18].mxu0 %v6271_v50  ;;  %v577_v56 = vsub.f32 %v6108_v45, %v555_v25 }
 0x358   :  { %5429 = vpow2.f32 %v598_v35  ;;  %v612_v41 = vmul.f32 1.442695, %v582_v13 }
 0x359   :  { %v6278_v33 = vpop.eup %5423  ;;  %v5212_v57 = vpop.permute.xlu0 %5211  ;;  %v602_v45 = vmul.f32 1.442695, %v577_v56 }
 0x35a   :  { %v6280_v63 = vpop.eup %5425  ;;  %v5214_v1 = vunpack.i.h.bf16 %v5212_v57  ;;  %v5213_v4 = vunpack.i.l.bf16 %v5212_v57  ;;  %5306 = vrot.lane.b32.xlu0 %v5889_v38, %s5731_s10  ;;  %4231 = vmatprep.mubr.f32.mxu0 %v6278_v33  ;;  %v553_v5 = vpop.xlane.xlu1 %552 }
 0x35b   :  { %v576_v6 = vsub.f32 %v6115_v55, %v553_v5  ;;  %4232 = vmatmul.mubr.f32.gmra.mrb[20].mxu0 %v6280_v63  ;;  %v606_v55 = vmul.f32 1.442695, %v579_v7 }
 0x35c   :  { %v4819_v8 = vpack.c.bf16 %v5214_v1, %v5213_v4 }
 0x35d   :  { %v600_v26 = vmul.f32 1.442695, %v576_v6  ;;  %v6288_v9 = vpop.permute.xlu0 %873 }
 0x35e   :  { %5311 = vrot.lane.b32.xlu0 %v5899_v43, %s5731_s10  ;;  %v557_v11 = vpop.xlane.xlu1 %556  ;;  %4821 = vmatprep.subr.msk.bf16.mxu0 %vm5963_vm2, %v4819_v8 }
 0x35f   :  { %5431 = vpow2.f32 %v600_v26  ;;  %v578_v29 = vsub.f32 %v6121_v60, %v557_v11  ;;  %4824 = vmatpush3.bf16.xpose.msk.msra.mxu0 %vm5963_vm2, %v4819_v8 }
 0x360   :  { %5433 = vpow2.f32 %v602_v45 }
 0x361   :  { %v6298_v12 = vpop.eup %5427  ;;  %v604_v47 = vmul.f32 1.442695, %v578_v29  ;;  %v878_v52 = vpop.permute.xlu0 %877 }
 0x362   :  { %v6301_v14 = vpop.eup %5429  ;;  %5316 = vrot.lane.b32.xlu0 %v5909_v48, %s5731_s10  ;;  %4234 = vmatprep.mubr.f32.mxu0 %v6298_v12  ;;  %v561_v60 = vpop.xlane.xlu1 %560 }
 0x363   :  { %5435 = vpow2.f32 %v604_v47  ;;  %v580_v20 = vsub.f32 %v6127_v0, %v561_v60  ;;  %4235 = vmatmul.mubr.f32.gmra.mrb[22].mxu0 %v6301_v14 }
 0x364   :  { %5437 = vpow2.f32 %v606_v55 }
 0x365   :  { %v608_v21 = vmul.f32 1.442695, %v580_v20  ;;  %v882_v42 = vpop.permute.xlu0 %881 }
 0x366   :  { %5321 = vrot.lane.b32.xlu0 %v5919_v53, %s5731_s10  ;;  %v567_v15 = vpop.xlane.xlu1 %566 }
 0x367   :  { %5439 = vpow2.f32 %v608_v21  ;;  %v583_v18 = vsub.f32 %v6133_v3, %v567_v15 }
 0x368   :  { %5441 = vpow2.f32 %v610_v22 }
 0x369   :  { %v6311_v46 = vpop.eup %5431  ;;  %5443 = vpow2.f32 %v612_v41  ;;  %v614_v19 = vmul.f32 1.442695, %v583_v18  ;;  %v886_v0 = vpop.permute.xlu0 %885 }
 0x36a   :  { %v6313_v28 = vpop.eup %5433  ;;  %5331 = vrot.lane.b32.xlu0 %v5939_v62, %s5731_s10  ;;  %4237 = vmatprep.mubr.f32.mxu0 %v6311_v46  ;;  %v876_v30 = vpop.permute.xlu1 %875 }
 0x36b   :  { %5445 = vpow2.f32 %v614_v19  ;;  %4238 = vmatmul.mubr.f32.gmra.mrb[24].mxu0 %v6313_v28 }
 0x36d   :  { %v6319_v37 = vpop.eup %5435  ;;  %v890_v3 = vpop.permute.xlu0 %889 }
 0x36e   :  { %v6321_v35 = vpop.eup %5437  ;;  %2690 = vrot.lane.b32.xlu0 %v5861_v24, %s5732_s11  ;;  %4240 = vmatprep.mubr.f32.mxu0 %v6319_v37  ;;  %v880_v40 = vpop.permute.xlu1 %879 }
 0x36f   :  { %4241 = vmatmul.mubr.f32.gmra.mrb[26].mxu0 %v6321_v35 }
 0x371   :  { %v6327_v10 = vpop.eup %5439  ;;  %v894_v25 = vpop.permute.xlu0 %893 }
 0x372   :  { %v6329_v56 = vpop.eup %5441  ;;  %2692 = vrot.lane.b32.xlu0 %v5875_v31, %s5732_s11  ;;  %4243 = vmatprep.mubr.f32.mxu0 %v6327_v10  ;;  %v884_v57 = vpop.permute.xlu1 %883 }
 0x373   :  { %v6334_v1 = vpop.eup %5443  ;;  %4244 = vmatmul.mubr.f32.gmra.mrb[28].mxu0 %v6329_v56 }
 0x374   :  { %4246 = vmatprep.mubr.f32.mxu0 %v6334_v1 }
 0x375   :  { %v6338_v24 = vpop.eup %5445  ;;  %v898_v4 = vpop.permute.xlu0 %897 }
 0x376   :  { %2696 = vrot.lane.b32.xlu0 %v5885_v36, %s5732_s11  ;;  %618 = vadd.xlane.f32.xlu1 %v6179_v17  ;;  %v888_v5 = vpop.permute.xlu1 %887 }
 0x377   :  { %4247 = vmatmul.mubr.f32.gmra.mrb[30].mxu0 %v6338_v24 }
 0x378   :  { %4281 = vmatprep.mubr.msk.f32.mxu0 %vm326_vm1, %v6288_v9 }
 0x379   :  { %v902_v31 = vpop.permute.xlu0 %901 }
 0x37a   :  { %2698 = vrot.lane.b32.xlu0 %v5881_v34, %s5732_s11  ;;  %v892_v6 = vpop.permute.xlu1 %891 }
 0x37b   :  { %4282 = vmatmul.mubr.msk.f32.vlgmr.msra.gmra.mrb[32].mxu0 %vm326_vm1, %v876_v30 }
 0x37c   :  { %4284 = vmatprep.mubr.msk.f32.mxu0 %vm326_vm1, %v878_v52 }
 0x37d   :  { %v5217_v7 = vpop.permute.xlu0 %5216 }
 0x37e   :  { %v5219_v45 = vunpack.i.h.bf16 %v5217_v7  ;;  %v5218_v36 = vunpack.i.l.bf16 %v5217_v7  ;;  %2702 = vrot.lane.b32.xlu0 %v5891_v39, %s5732_s11  ;;  %v896_v17 = vpop.permute.xlu1 %895 }
 0x37f   :  { %4285 = vmatmul.mubr.msk.f32.gmra.mrb[34].mxu0 %vm326_vm1, %v880_v40 }
 0x380   :  { %v4857_v8 = vpack.c.bf16 %v5219_v45, %v5218_v36  ;;  %4287 = vmatprep.mubr.msk.f32.mxu0 %vm326_vm1, %v882_v42 }
 0x381   :  { %v5227_v26 = vpop.permute.xlu0 %5226 }
 0x382   :  { %2706 = vrot.lane.b32.xlu0 %v5901_v44, %s5732_s11  ;;  %v900_v34 = vpop.permute.xlu1 %899  ;;  %4859 = vmatprep.subr.msk.bf16.mxu0 %vm5963_vm2, %v4857_v8  ;;  %v5229_v29 = vunpack.i.h.bf16 %v5227_v26  ;;  %v5228_v55 = vunpack.i.l.bf16 %v5227_v26 }
 0x383   :  { %4288 = vmatmul.mubr.msk.f32.gmra.mrb[36].mxu0 %vm326_vm1, %v884_v57 }
 0x384   :  { %4862 = vmatpush3.bf16.xpose.msk.msra.mxu0 %vm5963_vm2, %v4857_v8  ;;  %4290 = vmatprep.mubr.msk.f32.mxu0 %vm326_vm1, %v886_v0  ;;  %v4869_v60 = vpack.c.bf16 %v5229_v29, %v5228_v55 }
 0x385   :  { %v5237_v39 = vpop.permute.xlu0 %5236 }
 0x386   :  { %2710 = vrot.lane.b32.xlu0 %v5911_v49, %s5732_s11  ;;  %v904_v9 = vpop.permute.xlu1 %903  ;;  %v5239_v57 = vunpack.i.h.bf16 %v5237_v39 }
 0x387   :  { %4291 = vmatmul.mubr.msk.f32.gmra.mrb[38].mxu0 %vm326_vm1, %v888_v5  ;;  %v5238_v5 = vunpack.i.l.bf16 %v5237_v39 }
 0x388   :  { %4293 = vmatprep.mubr.msk.f32.mxu0 %vm326_vm1, %v890_v3 }
 0x389   :  { %v6366_v44 = vpop.permute.xlu0 %5246  ;;  %v4881_v36 = vpack.c.bf16 %v5239_v57, %v5238_v5 }
 0x38a   :  { %v5222_v11 = vpop.permute.xlu1 %5221 }
 0x38b   :  { %v5224_v23 = vunpack.i.h.bf16 %v5222_v11  ;;  %v5223_v13 = vunpack.i.l.bf16 %v5222_v11  ;;  %4294 = vmatmul.mubr.msk.f32.gmra.mrb[40].mxu0 %vm326_vm1, %v892_v6 }
 0x38c   :  { %4296 = vmatprep.mubr.msk.f32.mxu0 %vm326_vm1, %v894_v25 }
 0x38d   :  { %v4863_v47 = vpack.c.bf16 %v5224_v23, %v5223_v13  ;;  %v6370_v52 = vpop.permute.xlu0 %5256 }
 0x38e   :  { %v5232_v49 = vpop.permute.xlu1 %5231 }
 0x38f   :  { %4297 = vmatmul.mubr.msk.f32.gmra.mrb[42].mxu0 %vm326_vm1, %v896_v17  ;;  %4865 = vmatprep.subr.msk.bf16.mxu0 %vm5963_vm2, %v4863_v47  ;;  %v5234_v22 = vunpack.i.h.bf16 %v5232_v49  ;;  %v5233_v41 = vunpack.i.l.bf16 %v5232_v49 }
 0x390   :  { %4299 = vmatprep.mubr.msk.f32.mxu0 %vm326_vm1, %v898_v4  ;;  %4868 = vmatpush3.bf16.xpose.msk.msra.mxu0 %vm5963_vm2, %v4863_v47 }
 0x391   :  { %v5262_v20 = vpop.permute.xlu0 %5261  ;;  %4871 = vmatprep.subr.msk.bf16.mxu0 %vm5963_vm2, %v4869_v60  ;;  %v4875_v15 = vpack.c.bf16 %v5234_v22, %v5233_v41 }
 0x392   :  { %v5242_v21 = vpop.permute.xlu1 %5241  ;;  %v5264_v19 = vunpack.i.h.bf16 %v5262_v20  ;;  %v5263_v0 = vunpack.i.l.bf16 %v5262_v20  ;;  %v5248_v20 = vunpack.i.l.bf16 %v6366_v44 }
 0x393   :  { %4300 = vmatmul.mubr.msk.f32.gmra.mrb[44].mxu0 %vm326_vm1, %v900_v34  ;;  %v5244_v39 = vunpack.i.h.bf16 %v5242_v21 }
 0x394   :  { %4302 = vmatprep.mubr.msk.f32.mxu0 %vm326_vm1, %v902_v31  ;;  %v4829_v7 = vpack.c.bf16 %v5264_v19, %v5263_v0  ;;  %v5259_v0 = vunpack.i.h.bf16 %v6370_v52 }
 0x395   :  { %v5267_v42 = vpop.permute.xlu0 %5266 }
 0x396   :  { %v5252_v18 = vpop.permute.xlu1 %5251  ;;  %v5269_v31 = vunpack.i.h.bf16 %v5267_v42  ;;  %v5268_v6 = vunpack.i.l.bf16 %v5267_v42 }
 0x397   :  { %v5254_v30 = vunpack.i.h.bf16 %v5252_v18  ;;  %v5253_v3 = vunpack.i.l.bf16 %v5252_v18  ;;  %4303 = vmatmul.mubr.msk.f32.gmra.mrb[46].mxu0 %vm326_vm1, %v904_v9  ;;  %v5243_v9 = vunpack.i.l.bf16 %v5242_v21 }
 0x398   :  { %4874 = vmatpush3.bf16.xpose.msk.msra.mxu0 %vm5963_vm2, %v4869_v60  ;;  %v4833_v26 = vpack.c.bf16 %v5269_v31, %v5268_v6  ;;  %v5249_v60 = vunpack.i.h.bf16 %v6366_v44  ;;  %v5258_v44 = vunpack.i.l.bf16 %v6370_v52 }
 0x399   :  { %v6385_v40 = vpop.permute.xlu0 %1871  ;;  %4877 = vmatprep.subr.msk.bf16.mxu0 %vm5963_vm2, %v4875_v15  ;;  %v4825_v25 = vpack.c.bf16 %v5254_v30, %v5253_v3  ;;  %v4887_v13 = vpack.c.bf16 %v5244_v39, %v5243_v9 }
 0x39a   :  { %v1870_v4 = vpop.permute.xlu1 %1869  ;;  %v4893_v42 = vpack.c.bf16 %v5249_v60, %v5248_v20  ;;  %v4899_v57 = vpack.c.bf16 %v5259_v0, %v5258_v44 }
 0x39b   :  { %4826 = vmatprep.subr.bf16.mxu1 %v4825_v25  ;;  %4445 = vmatprep.mubr.msk.f32.mxu0 %vm326_vm1, %v1870_v4 }
 0x39c   :  { %4828 = vmatpush3.bf16.msra.mxu1 %v4825_v25 }
 0x39d   :  { %v5272_v45 = vpop.permute.xlu0 %5271  ;;  %4830 = vmatprep.subr.bf16.mxu1 %v4829_v7 }
 0x39e   :  { %v5274_v17 = vunpack.i.h.bf16 %v5272_v45  ;;  %v5273_v8 = vunpack.i.l.bf16 %v5272_v45  ;;  %v1874_v22 = vpop.permute.xlu1 %1873 }
 0x3a0   :  { %4832 = vmatpush3.bf16.msra.mxu1 %v4829_v7  ;;  %4880 = vmatpush3.bf16.xpose.msk.msra.mxu0 %vm5963_vm2, %v4875_v15  ;;  %v4837_v11 = vpack.c.bf16 %v5274_v17, %v5273_v8 }
 0x3a1   :  { %v1876_v34 = vpop.permute.xlu0 %1875  ;;  %4834 = vmatprep.subr.bf16.mxu1 %v4833_v26  ;;  %4883 = vmatprep.subr.msk.bf16.mxu0 %vm5963_vm2, %v4881_v36 }
 0x3a2   :  { %v1878_v19 = vpop.permute.xlu1 %1877 }
 0x3a4   :  { %4836 = vmatpush3.bf16.msra.mxu1 %v4833_v26 }
 0x3a5   :  { %v5277_v29 = vpop.permute.xlu0 %5276  ;;  %616 = vadd.xlane.f32.xlu0 %v6176_v16  ;;  %4838 = vmatprep.subr.bf16.mxu1 %v4837_v11 }
 0x3a6   :  { %v5279_v55 = vunpack.i.h.bf16 %v5277_v29  ;;  %v5278_v23 = vunpack.i.l.bf16 %v5277_v29  ;;  %v1882_v4 = vpop.permute.xlu1 %1881 }
 0x3a8   :  { %4840 = vmatpush3.bf16.msra.mxu1 %v4837_v11  ;;  %4886 = vmatpush3.bf16.xpose.msk.msra.mxu0 %vm5963_vm2, %v4881_v36  ;;  %v4841_v47 = vpack.c.bf16 %v5279_v55, %v5278_v23 }
 0x3a9   :  { %v1880_v49 = vpop.permute.xlu0 %1879  ;;  %4889 = vmatprep.subr.msk.bf16.mxu0 %vm5963_vm2, %v4887_v13 }
 0x3aa   :  { %4842 = vmatprep.subr.bf16.mxu1 %v4841_v47  ;;  %v1886_v7 = vpop.permute.xlu1 %1885 }
 0x3ac   :  { %4844 = vmatpush3.bf16.msra.mxu1 %v4841_v47 }
 0x3ad   :  { %v5282_v16 = vpop.permute.xlu0 %5281 }
 0x3ae   :  { %v5284_v41 = vunpack.i.h.bf16 %v5282_v16  ;;  %v5283_v21 = vunpack.i.l.bf16 %v5282_v16  ;;  %v1890_v8 = vpop.permute.xlu1 %1889 }
 0x3b0   :  { %4892 = vmatpush3.bf16.xpose.msk.msra.mxu0 %vm5963_vm2, %v4887_v13  ;;  %v4845_v15 = vpack.c.bf16 %v5284_v41, %v5283_v21 }
 0x3b1   :  { %v1884_v18 = vpop.permute.xlu0 %1883  ;;  %4895 = vmatprep.subr.msk.bf16.mxu0 %vm5963_vm2, %v4893_v42 }
 0x3b2   :  { %4846 = vmatprep.subr.bf16.mxu1 %v4845_v15  ;;  %v1892_v9 = vpop.permute.xlu1 %1891 }
 0x3b3   :  { %4848 = vmatpush3.bf16.msra.mxu1 %v4845_v15 }
 0x3b5   :  { %v5287_v30 = vpop.permute.xlu0 %5286 }
 0x3b6   :  { %v5289_v3 = vunpack.i.h.bf16 %v5287_v30  ;;  %v5288_v25 = vunpack.i.l.bf16 %v5287_v30  ;;  %v5302_v29 = vpop.permute.xlu1 %5301 }
 0x3b7   :  { %v5304_v47 = vunpack.i.h.bf16 %v5302_v29  ;;  %v5303_v60 = vunpack.i.l.bf16 %v5302_v29 }
 0x3b8   :  { %4898 = vmatpush3.bf16.xpose.msk.msra.mxu0 %vm5963_vm2, %v4893_v42  ;;  %v4849_v5 = vpack.c.bf16 %v5289_v3, %v5288_v25 }
 0x3b9   :  { %v1888_v31 = vpop.permute.xlu0 %1887  ;;  %4901 = vmatprep.subr.msk.bf16.mxu0 %vm5963_vm2, %v4899_v57 }
 0x3ba   :  { %4850 = vmatprep.subr.bf16.mxu1 %v4849_v5  ;;  %v5327_v16 = vpop.permute.xlu1 %5326 }
 0x3bb   :  { %4852 = vmatpush3.bf16.msra.mxu1 %v4849_v5 }
 0x3bd   :  { %v5292_v6 = vpop.permute.xlu0 %5291 }
 0x3be   :  { %v5294_v45 = vunpack.i.h.bf16 %v5292_v6  ;;  %v5293_v52 = vunpack.i.l.bf16 %v5292_v6  ;;  %v2689_v42 = vpop.permute.xlu1 %2688 }
 0x3c0   :  { %4904 = vmatpush3.bf16.xpose.msk.msra.mxu0 %vm5963_vm2, %v4899_v57  ;;  %v4853_v36 = vpack.c.bf16 %v5294_v45, %v5293_v52  ;;  %v5328_v45 = vunpack.i.l.bf16 %v5327_v16 }
 0x3c1   :  { %v1894_v17 = vpop.permute.xlu0 %1893 }
 0x3c2   :  { %4854 = vmatprep.subr.bf16.mxu1 %v4853_v36  ;;  %v2695_v29 = vpop.permute.xlu1 %2694 }
 0x3c3   :  { %4856 = vmatpush3.bf16.msra.mxu1 %v4853_v36 }
 0x3c5   :  { %v1896_v26 = vpop.permute.xlu0 %1895 }
 0x3c7   :  { %4446 = vmatmul.mubr.msk.f32.vlgmr.msra.gmra.mrb[48].mxu0 %vm326_vm1, %v6385_v40 }
 0x3c8   :  { %4448 = vmatprep.mubr.msk.f32.mxu0 %vm326_vm1, %v1874_v22 }
 0x3c9   :  { %v1898_v39 = vpop.permute.xlu0 %1897 }
 0x3cb   :  { %4449 = vmatmul.mubr.msk.f32.gmra.mrb[50].mxu0 %vm326_vm1, %v1876_v34  ;;  %v4943_v34 = vpack.c.bf16 %v5304_v47, %v5303_v60 }
 0x3cc   :  { %4451 = vmatprep.mubr.msk.f32.mxu0 %vm326_vm1, %v1878_v19 }
 0x3cd   :  { %v1900_v11 = vpop.permute.xlu0 %1899 }
 0x3cf   :  { %4452 = vmatmul.mubr.msk.f32.gmra.mrb[52].mxu0 %vm326_vm1, %v1880_v49 }
 0x3d0   :  { %4454 = vmatprep.mubr.msk.f32.mxu0 %vm326_vm1, %v1882_v4 }
 0x3d1   :  { %v5297_v55 = vpop.permute.xlu0 %5296 }
 0x3d2   :  { %v5299_v23 = vunpack.i.h.bf16 %v5297_v55  ;;  %v5298_v13 = vunpack.i.l.bf16 %v5297_v55 }
 0x3d3   :  { %4455 = vmatmul.mubr.msk.f32.gmra.mrb[54].mxu0 %vm326_vm1, %v1884_v18 }
 0x3d4   :  { %v4937_v40 = vpack.c.bf16 %v5299_v23, %v5298_v13  ;;  %4457 = vmatprep.mubr.msk.f32.mxu0 %vm326_vm1, %v1886_v7  ;;  %v5329_v7 = vunpack.i.h.bf16 %v5327_v16  ;;  %v2701_v23 = vpop.permute.xlu1 %2700 }
 0x3d5   :  { %v5307_v49 = vpop.permute.xlu0 %5306 }
 0x3d6   :  { %4939 = vmatprep.subr.msk.bf16.mxu0 %vm5963_vm2, %v4937_v40  ;;  %v5309_v20 = vunpack.i.h.bf16 %v5307_v49  ;;  %v5308_v22 = vunpack.i.l.bf16 %v5307_v49  ;;  %v4973_v52 = vpack.c.bf16 %v5329_v7, %v5328_v45  ;;  %v6517_v7 = vld [vmem:[%s7442_s5] sm:$0xff] }
 0x3d7   :  { %4458 = vmatmul.mubr.msk.f32.gmra.mrb[56].mxu0 %vm326_vm1, %v1888_v31 }
 0x3d8   :  { %4942 = vmatpush3.bf16.xpose.msk.msra.mxu0 %vm5963_vm2, %v4937_v40  ;;  %4460 = vmatprep.mubr.msk.f32.mxu0 %vm326_vm1, %v1890_v8  ;;  %v4949_v41 = vpack.c.bf16 %v5309_v20, %v5308_v22  ;;  %v2705_v47 = vpop.permute.xlu1 %2704 }
 0x3d9   :  { %4945 = vmatprep.subr.msk.bf16.mxu0 %vm5963_vm2, %v4943_v34  ;;  %v5312_v21 = vpop.permute.xlu0 %5311 }
 0x3da   :  { %v5314_v15 = vunpack.i.h.bf16 %v5312_v21  ;;  %v5313_v18 = vunpack.i.l.bf16 %v5312_v21 }
 0x3db   :  { %4461 = vmatmul.mubr.msk.f32.gmra.mrb[58].mxu0 %vm326_vm1, %v1892_v9 }
 0x3dc   :  { %4463 = vmatprep.mubr.msk.f32.mxu0 %vm326_vm1, %v1894_v17  ;;  %v4955_v19 = vpack.c.bf16 %v5314_v15, %v5313_v18  ;;  %v2709_v60 = vpop.permute.xlu1 %2708 }
 0x3dd   :  { %v5317_v0 = vpop.permute.xlu0 %5316 }
 0x3de   :  { %v5319_v44 = vunpack.i.h.bf16 %v5317_v0  ;;  %v5318_v30 = vunpack.i.l.bf16 %v5317_v0 }
 0x3df   :  { %4464 = vmatmul.mubr.msk.f32.gmra.mrb[60].mxu0 %vm326_vm1, %v1896_v26 }
 0x3e0   :  { %4948 = vmatpush3.bf16.xpose.msk.msra.mxu0 %vm5963_vm2, %v4943_v34  ;;  %4466 = vmatprep.mubr.msk.f32.mxu0 %vm326_vm1, %v1898_v39  ;;  %v4961_v3 = vpack.c.bf16 %v5319_v44, %v5318_v30  ;;  %v2713_v49 = vpop.permute.xlu1 %2712 }
 0x3e1   :  { %4951 = vmatprep.subr.msk.bf16.mxu0 %vm5963_vm2, %v4949_v41  ;;  %v5322_v25 = vpop.permute.xlu0 %5321 }
 0x3e2   :  { %v5324_v57 = vunpack.i.h.bf16 %v5322_v25  ;;  %v5323_v4 = vunpack.i.l.bf16 %v5322_v25 }
 0x3e3   :  { %4467 = vmatmul.mubr.msk.f32.gmra.mrb[62].mxu0 %vm326_vm1, %v1900_v11 }
 0x3e4   :  { %4583 = vmatprep.mubr.msk.f32.mxu0 %vm326_vm1, %v2689_v42  ;;  %v4967_v31 = vpack.c.bf16 %v5324_v57, %v5323_v4  ;;  %v6509_v57 = vld [vmem:[%s7442_s5 + $0x8] sm:$0xff] }
 0x3e5   :  { %v5332_v36 = vpop.permute.xlu0 %5331 }
 0x3e6   :  { %v5334_v17 = vunpack.i.h.bf16 %v5332_v36  ;;  %v5333_v8 = vunpack.i.l.bf16 %v5332_v36  ;;  %v6527_v36 = vld [vmem:[%s7442_s5 + $0x18] sm:$0xff] }
 0x3e8   :  { %4954 = vmatpush3.bf16.xpose.msk.msra.mxu0 %vm5963_vm2, %v4949_v41  ;;  %v4979_v39 = vpack.c.bf16 %v5334_v17, %v5333_v8 }
 0x3e9   :  { %4957 = vmatprep.subr.msk.bf16.mxu0 %vm5963_vm2, %v4955_v19  ;;  %v2691_v26 = vpop.permute.xlu0 %2690 }
 0x3ed   :  { %v2693_v9 = vpop.permute.xlu0 %2692 }
 0x3f0   :  { %4960 = vmatpush3.bf16.xpose.msk.msra.mxu0 %vm5963_vm2, %v4955_v19 }
 0x3f1   :  { %4963 = vmatprep.subr.msk.bf16.mxu0 %vm5963_vm2, %v4961_v3  ;;  %v2697_v11 = vpop.permute.xlu0 %2696 }
 0x3f5   :  { %v2699_v55 = vpop.permute.xlu0 %2698 }
 0x3f6   :  { %v6448_v5 = vpop.f32.mrb[16].mxu0 }
 0x3f7   :  { %7470 = vst [vmem:[#allocation9_spill] sm:$0xff] %v6448_v5  ;;  %v6450_v6 = vpop.f32.mrb[17].mxu0 }
 0x3f8   :  { %7471 = vst [vmem:[#allocation10_spill] sm:$0xff] %v6450_v6  ;;  %4966 = vmatpush3.bf16.xpose.msk.msra.mxu0 %vm5963_vm2, %v4961_v3 }
 0x3f9   :  { %4969 = vmatprep.subr.msk.bf16.mxu0 %vm5963_vm2, %v4967_v31  ;;  %v2703_v13 = vpop.permute.xlu0 %2702 }
 0x3fd   :  { %v2707_v2 = vpop.permute.xlu0 %2706 }
 0x400   :  { %4972 = vmatpush3.bf16.xpose.msk.msra.mxu0 %vm5963_vm2, %v4967_v31 }
 0x401   :  { %4975 = vmatprep.subr.msk.bf16.mxu0 %vm5963_vm2, %v4973_v52  ;;  %v2711_v40 = vpop.permute.xlu0 %2710 }
 0x408   :  { %4978 = vmatpush3.bf16.xpose.msk.msra.mxu0 %vm5963_vm2, %v4973_v52 }
 0x409   :  { %4981 = vmatprep.subr.msk.bf16.mxu0 %vm5963_vm2, %v4979_v39 }
 0x410   :  { %4984 = vmatpush3.bf16.xpose.msk.msra.mxu0 %vm5963_vm2, %v4979_v39  ;;  %v6536_v39 = vld [vmem:[%s7442_s5 + $0x28] sm:$0xff] }
 0x417   :  { %4584 = vmatmul.mubr.msk.f32.vlgmr.msra.gmra.mrb[64].mxu0 %vm326_vm1, %v2691_v26 }
 0x418   :  { %4586 = vmatprep.mubr.msk.f32.mxu0 %vm326_vm1, %v2693_v9 }
 0x41b   :  { %4587 = vmatmul.mubr.msk.f32.gmra.mrb[66].mxu0 %vm326_vm1, %v2695_v29  ;;  %v6544_v29 = vld [vmem:[%s7442_s5 + $0x10] sm:$0xff] }
 0x41c   :  { %4589 = vmatprep.mubr.msk.f32.mxu0 %vm326_vm1, %v2697_v11 }
 0x41f   :  { %4590 = vmatmul.mubr.msk.f32.gmra.mrb[68].mxu0 %vm326_vm1, %v2699_v55 }
 0x420   :  { %4592 = vmatprep.mubr.msk.f32.mxu0 %vm326_vm1, %v2701_v23 }
 0x423   :  { %4593 = vmatmul.mubr.msk.f32.gmra.mrb[70].mxu0 %vm326_vm1, %v2703_v13  ;;  %v6554_v13 = vld [vmem:[%s7442_s5 + $0x38] sm:$0xff] }
 0x424   :  { %4595 = vmatprep.mubr.msk.f32.mxu0 %vm326_vm1, %v2705_v47 }
 0x427   :  { %4596 = vmatmul.mubr.msk.f32.gmra.mrb[72].mxu0 %vm326_vm1, %v2707_v2 }
 0x428   :  { %4598 = vmatprep.mubr.msk.f32.mxu0 %vm326_vm1, %v2709_v60  ;;  %v6562_v60 = vld [vmem:[%s7442_s5 + $0x20] sm:$0xff] }
 0x42a   :  { %v6476_v34 = vpop.f32.mrb[18].mxu0 }
 0x42b   :  { %7472 = vst [vmem:[#allocation11_spill] sm:$0xff] %v6476_v34  ;;  %4599 = vmatmul.mubr.msk.f32.gmra.mrb[74].mxu0 %vm326_vm1, %v2711_v40  ;;  %v6479_v20 = vpop.f32.mrb[19].mxu0  ;;  %v6634_v34 = vld [vmem:[%s7442_s5 + $0x70] sm:$0xff] }
 0x42c   :  { %7473 = vst [vmem:[#allocation12_spill] sm:$0xff] %v6479_v20  ;;  %4601 = vmatprep.mubr.msk.f32.mxu0 %vm326_vm1, %v2713_v49  ;;  %7488 = vst [vmem:[#allocation27_spill] sm:$0xff] %v6634_v34  ;;  %v6644_v20 = vld [vmem:[%s7442_s5 + $0x78] sm:$0xff] }
 0x42d   :  { %7489 = vst [vmem:[#allocation28_spill] sm:$0xff] %v6644_v20 }
 0x42e   :  { %v6482_v22 = vpop.f32.mrb[20].mxu0 }
 0x42f   :  { %7474 = vst [vmem:[#allocation13_spill] sm:$0xff] %v6482_v22  ;;  %v6484_v16 = vpop.f32.mrb[21].mxu0 }
 0x430   :  { %7475 = vst [vmem:[#allocation14_spill] sm:$0xff] %v6484_v16 }
 0x436   :  { %v6486_v41 = vpop.f32.mrb[22].mxu0 }
 0x437   :  { %7476 = vst [vmem:[#allocation15_spill] sm:$0xff] %v6486_v41  ;;  %v6488_v21 = vpop.f32.mrb[23].mxu0 }
 0x438   :  { %7477 = vst [vmem:[#allocation16_spill] sm:$0xff] %v6488_v21 }
 0x43e   :  { %v6490_v42 = vpop.f32.mrb[24].mxu0 }
 0x43f   :  { %7478 = vst [vmem:[#allocation17_spill] sm:$0xff] %v6490_v42  ;;  %v6492_v15 = vpop.f32.mrb[25].mxu0 }
 0x440   :  { %7479 = vst [vmem:[#allocation18_spill] sm:$0xff] %v6492_v15  ;;  %v6616_v15 = vld [vmem:[%s7442_s5 + $0x50] sm:$0xff] }
 0x442   :  { %v6494_v18 = vpop.f32.mrb[26].mxu0 }
 0x443   :  { %7480 = vst [vmem:[#allocation19_spill] sm:$0xff] %v6494_v18  ;;  %v6496_v19 = vpop.f32.mrb[27].mxu0  ;;  %v6608_v18 = vld [vmem:[%s7442_s5 + $0x68] sm:$0xff] }
 0x444   :  { %7481 = vst [vmem:[#allocation20_spill] sm:$0xff] %v6496_v19  ;;  %7487 = vst [vmem:[#allocation26_spill] sm:$0xff] %v6608_v18 }
 0x446   :  { %v6498_v0 = vpop.f32.mrb[28].mxu0 }
 0x447   :  { %7482 = vst [vmem:[#allocation21_spill] sm:$0xff] %v6498_v0  ;;  %v6500_v44 = vpop.f32.mrb[29].mxu0 }
 0x448   :  { %7483 = vst [vmem:[#allocation22_spill] sm:$0xff] %v6500_v44 }
 0x44a   :  { %v6502_v30 = vpop.f32.mrb[30].mxu0 }
 0x44b   :  { %7484 = vst [vmem:[#allocation23_spill] sm:$0xff] %v6502_v30  ;;  %v6504_v3 = vpop.f32.mrb[31].mxu0 }
 0x44c   :  { %7485 = vst [vmem:[#allocation24_spill] sm:$0xff] %v6504_v3  ;;  %v6598_v3 = vld [vmem:[%s7442_s5 + $0x40] sm:$0xff] }
 0x44e   :  { %v4283_v25 = vpop.f32.mrb[32].mxu0 }
 0x44f   :  { %v6512_v4 = vadd.f32 %v6509_v57, %v4283_v25  ;;  %v1067_v31 = vpop.f32.mrb[33].mxu0  ;;  %v6572_v25 = vld [vmem:[%s7442_s5 + $0x48] sm:$0xff] }
 0x450   :  { %v6520_v45 = vadd.f32 %v6517_v7, %v1067_v31 }
 0x451   :  { %1148 = vmax.xlane.f32.xlu0 %v6512_v4 }
 0x452   :  { %v4286_v52 = vpop.f32.mrb[34].mxu0  ;;  %1146 = vmax.xlane.f32.xlu1 %v6520_v45 }
 0x453   :  { %v6530_v17 = vadd.f32 %v6527_v36, %v4286_v52  ;;  %v1077_v8 = vpop.f32.mrb[35].mxu0 }
 0x454   :  { %v6547_v55 = vadd.f32 %v6544_v29, %v1077_v8  ;;  %v6580_v8 = vld [vmem:[%s7442_s5 + $0x30] sm:$0xff] }
 0x456   :  { %v4289_v26 = vpop.f32.mrb[36].mxu0  ;;  %1152 = vmax.xlane.f32.xlu1 %v6530_v17 }
 0x457   :  { %v6539_v9 = vadd.f32 %v6536_v39, %v4289_v26  ;;  %v1087_v11 = vpop.f32.mrb[37].mxu0 }
 0x458   :  { %v6565_v40 = vadd.f32 %v6562_v60, %v1087_v11 }
 0x459   :  { %1156 = vmax.xlane.f32.xlu0 %v6539_v9 }
 0x45a   :  { %v4292_v23 = vpop.f32.mrb[38].mxu0  ;;  %1150 = vmax.xlane.f32.xlu1 %v6547_v55 }
 0x45b   :  { %v6557_v47 = vadd.f32 %v6554_v13, %v4292_v23  ;;  %v1097_v2 = vpop.f32.mrb[39].mxu0  ;;  %v6590_v23 = vld [vmem:[%s7442_s5 + $0x58] sm:$0xff] }
 0x45c   :  { %v6583_v26 = vadd.f32 %v6580_v8, %v1097_v2  ;;  %7486 = vst [vmem:[#allocation25_spill] sm:$0xff] %v6590_v23 }
 0x45d   :  { %1160 = vmax.xlane.f32.xlu0 %v6557_v47 }
 0x45e   :  { %v4295_v49 = vpop.f32.mrb[40].mxu0  ;;  %1154 = vmax.xlane.f32.xlu1 %v6565_v40 }
 0x45f   :  { %v6575_v31 = vadd.f32 %v6572_v25, %v4295_v49  ;;  %v1107_v52 = vpop.f32.mrb[41].mxu0 }
 0x460   :  { %v6601_v2 = vadd.f32 %v6598_v3, %v1107_v52 }
 0x461   :  { %1164 = vmax.xlane.f32.xlu0 %v6575_v31 }
 0x462   :  { %v4298_v11 = vpop.f32.mrb[42].mxu0  ;;  %1158 = vmax.xlane.f32.xlu1 %v6583_v26 }
 0x463   :  { %v6593_v49 = vadd.f32 %v6590_v23, %v4298_v11  ;;  %v1117_v30 = vpop.f32.mrb[43].mxu0 }
 0x464   :  { %v6619_v52 = vadd.f32 %v6616_v15, %v1117_v30 }
 0x465   :  { %1168 = vmax.xlane.f32.xlu0 %v6593_v49 }
 0x466   :  { %v4301_v0 = vpop.f32.mrb[44].mxu0  ;;  %1162 = vmax.xlane.f32.xlu1 %v6601_v2 }
 0x467   :  { %v6611_v11 = vadd.f32 %v6608_v18, %v4301_v0  ;;  %v1127_v42 = vpop.f32.mrb[45].mxu0  ;;  %v6626_v0 = vld [vmem:[%s7442_s5 + $0x60] sm:$0xff] }
 0x468   :  { %v6629_v22 = vadd.f32 %v6626_v0, %v1127_v42 }
 0x469   :  { %1172 = vmax.xlane.f32.xlu0 %v6611_v11 }
 0x46a   :  { %v4304_v41 = vpop.f32.mrb[46].mxu0  ;;  %1166 = vmax.xlane.f32.xlu1 %v6619_v52 }
 0x46b   :  { %v1137_v21 = vpop.f32.mrb[47].mxu0  ;;  %v6647_v42 = vadd.f32 %v6644_v20, %v4304_v41 }
 0x46c   :  { %v6637_v30 = vadd.f32 %v6634_v34, %v1137_v21 }
 0x46e   :  { %1174 = vmax.xlane.f32.xlu0 %v6637_v30  ;;  %1170 = vmax.xlane.f32.xlu1 %v6629_v22 }
 0x472   :  { %1176 = vmax.xlane.f32.xlu1 %v6647_v42 }
 0x483   :  { %2716 = vrot.lane.b32.xlu1 %v5933_v61, %s5732_s11 }
 0x484   :  { %2714 = vrot.lane.b32.xlu0 %v5921_v54, %s5732_s11 }
 0x49a   :  { %v6654_v21 = vpop.f32.mrb[48].mxu0 }
 0x49b   :  { %v6656_v5 = vpop.f32.mrb[49].mxu0 }
 0x49e   :  { %v6658_v6 = vpop.f32.mrb[50].mxu0 }
 0x49f   :  { %v6660_v34 = vpop.f32.mrb[51].mxu0 }
 0x4a2   :  { %v6662_v44 = vpop.f32.mrb[52].mxu0 }
 0x4a3   :  { %v6664_v41 = vpop.f32.mrb[53].mxu0  ;;  %620 = vadd.xlane.f32.xlu0 %v6269_v51 }
 0x4a6   :  { %v6667_v19 = vpop.f32.mrb[54].mxu0 }
 0x4a7   :  { %v6669_v61 = vpop.f32.mrb[55].mxu0  ;;  %622 = vadd.xlane.f32.xlu1 %v6271_v50 }
 0x4aa   :  { %v6672_v54 = vpop.f32.mrb[56].mxu0 }
 0x4ab   :  { %v6674_v20 = vpop.f32.mrb[57].mxu0  ;;  %626 = vadd.xlane.f32.xlu1 %v6280_v63  ;;  %v6700_v63 = vpop.xlane.xlu0 %616 }
 0x4ac   :  { %7490 = vst [vmem:[#allocation29_spill] sm:$0xff] %v6700_v63 }
 0x4ae   :  { %v6677_v16 = vpop.f32.mrb[58].mxu0 }
 0x4af   :  { %v6679_v18 = vpop.f32.mrb[59].mxu0  ;;  %628 = vadd.xlane.f32.xlu1 %v6298_v12  ;;  %v6702_v12 = vpop.xlane.xlu1 %618 }
 0x4b0   :  { %7491 = vst [vmem:[#allocation30_spill] sm:$0xff] %v6702_v12 }
 0x4b2   :  { %v6682_v62 = vpop.f32.mrb[60].mxu0 }
 0x4b3   :  { %v6684_v51 = vpop.f32.mrb[61].mxu0  ;;  %630 = vadd.xlane.f32.xlu1 %v6301_v14 }
 0x4b6   :  { %v6687_v23 = vpop.f32.mrb[62].mxu0 }
 0x4b7   :  { %v6689_v50 = vpop.f32.mrb[63].mxu0  ;;  %632 = vadd.xlane.f32.xlu1 %v6311_v46 }
 0x4b9   :  { %2718 = vrot.lane.b32.xlu0 %v5931_v59, %s5732_s11  ;;  %s5734_s11 = smov 40  }
 0x4bb   :  { %634 = vadd.xlane.f32.xlu1 %v6313_v28 }
 0x4bf   :  { %638 = vadd.xlane.f32.xlu1 %v6321_v35 }
 0x4c3   :  { %642 = vadd.xlane.f32.xlu1 %v6329_v56 }
 0x4c7   :  { %644 = vadd.xlane.f32.xlu1 %v6334_v1 }
 0x4cb   :  { %646 = vadd.xlane.f32.xlu1 %v6338_v24 }
 0x4d8   :  { %624 = vadd.xlane.f32.xlu0 %v6278_v33 }
 0x4dc   :  { %636 = vadd.xlane.f32.xlu0 %v6319_v37  ;;  %5341 = vrot.lane.b32.xlu1 %v5879_v32, %s5733_s17 }
 0x4de   :  { %v1149_v59 = vpop.xlane.xlu0 %1148 }
 0x4df   :  { %v1179_v14 = vsub.f32 %v6512_v4, %v1149_v59  ;;  %v1147_v46 = vpop.xlane.xlu1 %1146 }
 0x4e0   :  { %v1178_v28 = vsub.f32 %v6520_v45, %v1147_v46  ;;  %640 = vadd.xlane.f32.xlu0 %v6327_v10  ;;  %5356 = vrot.lane.b32.xlu1 %v5909_v48, %s5733_s17 }
 0x4e1   :  { %v1196_v33 = vmul.f32 1.442695, %v1179_v14 }
 0x4e2   :  { %v1194_v35 = vmul.f32 1.442695, %v1178_v28 }
 0x4e3   :  { %v1153_v56 = vpop.xlane.xlu1 %1152 }
 0x4e4   :  { %5447 = vpow2.f32 %v1194_v35  ;;  %v1181_v37 = vsub.f32 %v6530_v17, %v1153_v56 }
 0x4e5   :  { %5449 = vpow2.f32 %v1196_v33 }
 0x4e6   :  { %v1157_v1 = vpop.xlane.xlu0 %1156  ;;  %v1200_v4 = vmul.f32 1.442695, %v1181_v37 }
 0x4e7   :  { %v1151_v24 = vpop.xlane.xlu1 %1150  ;;  %v1183_v59 = vsub.f32 %v6539_v9, %v1157_v1 }
 0x4e8   :  { %v1180_v12 = vsub.f32 %v6547_v55, %v1151_v24 }
 0x4e9   :  { %v1204_v33 = vmul.f32 1.442695, %v1183_v59 }
 0x4ea   :  { %v1198_v45 = vmul.f32 1.442695, %v1180_v12  ;;  %v6715_v46 = vpop.f32.mrb[64].mxu0  ;;  %v1161_v10 = vpop.xlane.xlu0 %1160 }
 0x4eb   :  { %v6717_v63 = vpop.f32.mrb[65].mxu0  ;;  %v1155_v14 = vpop.xlane.xlu1 %1154  ;;  %v1185_v17 = vsub.f32 %v6557_v47, %v1161_v10 }
 0x4ec   :  { %5451 = vpow2.f32 %v1198_v45  ;;  %v1182_v28 = vsub.f32 %v6565_v40, %v1155_v14 }
 0x4ed   :  { %5453 = vpow2.f32 %v1200_v4  ;;  %v1208_v47 = vmul.f32 1.442695, %v1185_v17 }
 0x4ee   :  { %v6721_v35 = vpop.eup %5447  ;;  %v1202_v55 = vmul.f32 1.442695, %v1182_v28  ;;  %v6723_v56 = vpop.f32.mrb[66].mxu0 }
 0x4ef   :  { %v1165_v9 = vpop.xlane.xlu0 %1164  ;;  %v6725_v12 = vpop.eup %5449  ;;  %4337 = vmatprep.mubr.f32.mxu1 %v6721_v35 }
 0x4f0   :  { %v6727_v37 = vpop.f32.mrb[67].mxu0  ;;  %v1159_v1 = vpop.xlane.xlu1 %1158  ;;  %5455 = vpow2.f32 %v1202_v55  ;;  %4338 = vmatmul.mubr.f32.vlgmr.msra.gmra.mrb[16].mxu1 %v6725_v12  ;;  %v1187_v24 = vsub.f32 %v6575_v31, %v1165_v9 }
 0x4f1   :  { %v1184_v40 = vsub.f32 %v6583_v26, %v1159_v1  ;;  %5457 = vpow2.f32 %v1204_v33 }
 0x4f2   :  { %v6733_v59 = vpop.f32.mrb[68].mxu0  ;;  %v1212_v55 = vmul.f32 1.442695, %v1187_v24 }
 0x4f3   :  { %v1206_v4 = vmul.f32 1.442695, %v1184_v40  ;;  %v1169_v45 = vpop.xlane.xlu0 %1168  ;;  %v6735_v10 = vpop.f32.mrb[69].mxu0 }
 0x4f4   :  { %v1163_v14 = vpop.xlane.xlu1 %1162  ;;  %v1189_v26 = vsub.f32 %v6593_v49, %v1169_v45 }
 0x4f5   :  { %5459 = vpow2.f32 %v1206_v4  ;;  %v1186_v28 = vsub.f32 %v6601_v2, %v1163_v14 }
 0x4f6   :  { %5461 = vpow2.f32 %v1208_v47  ;;  %v6739_v1 = vpop.eup %5451  ;;  %v6741_v17 = vpop.f32.mrb[70].mxu0  ;;  %5336 = vrot.lane.b32.xlu0 %v5869_v27, %s5733_s17  ;;  %v1216_v49 = vmul.f32 1.442695, %v1189_v26 }
 0x4f7   :  { %v1210_v33 = vmul.f32 1.442695, %v1186_v28  ;;  %7492 = vst [vmem:[#allocation31_spill] sm:$0xff] %v6741_v17  ;;  %v1173_v31 = vpop.xlane.xlu0 %1172  ;;  %v6745_v9 = vpop.eup %5453  ;;  %4340 = vmatprep.mubr.f32.mxu1 %v6739_v1 }
 0x4f8   :  { %v6747_v40 = vpop.f32.mrb[71].mxu0  ;;  %v1167_v2 = vpop.xlane.xlu1 %1166  ;;  %4341 = vmatmul.mubr.f32.gmra.mrb[18].mxu1 %v6745_v9  ;;  %v1191_v4 = vsub.f32 %v6611_v11, %v1173_v31 }
 0x4f9   :  { %5463 = vpow2.f32 %v1210_v33  ;;  %v1188_v47 = vsub.f32 %v6619_v52, %v1167_v2 }
 0x4fa   :  { %5465 = vpow2.f32 %v1212_v55  ;;  %v6752_v24 = vpop.eup %5455  ;;  %v6755_v14 = vpop.f32.mrb[72].mxu0  ;;  %5346 = vrot.lane.b32.xlu0 %v5889_v38, %s5733_s17  ;;  %v1220_v31 = vmul.f32 1.442695, %v1191_v4  ;;  %v6780_v4 = vadd.f32 %v6517_v7, %v6656_v5  ;;  %v6788_v5 = vadd.f32 %v6527_v36, %v6658_v6 }
 0x4fb   :  { %v1214_v45 = vmul.f32 1.442695, %v1188_v47  ;;  %7493 = vst [vmem:[#allocation32_spill] sm:$0xff] %v6755_v14  ;;  %v6759_v28 = vpop.eup %5457  ;;  %v6761_v17 = vpop.f32.mrb[73].mxu0  ;;  %4343 = vmatprep.mubr.f32.mxu1 %v6752_v24  ;;  %v6798_v6 = vadd.f32 %v6536_v39, %v6662_v44  ;;  %v6813_v44 = vadd.f32 %v6572_v25, %v6672_v54 }
 0x4fc   :  { %7494 = vst [vmem:[#allocation33_spill] sm:$0xff] %v6761_v17  ;;  %v1175_v33 = vpop.xlane.xlu0 %1174  ;;  %v1171_v55 = vpop.xlane.xlu1 %1170  ;;  %4344 = vmatmul.mubr.f32.gmra.mrb[20].mxu1 %v6759_v28 }
 0x4fd   :  { %5467 = vpow2.f32 %v1214_v45  ;;  %v1192_v52 = vsub.f32 %v6637_v30, %v1175_v33  ;;  %v1190_v11 = vsub.f32 %v6629_v22, %v1171_v55 }
 0x4fe   :  { %5469 = vpow2.f32 %v1216_v49  ;;  %v6767_v2 = vpop.f32.mrb[74].mxu0  ;;  %5351 = vrot.lane.b32.xlu0 %v5899_v43, %s5733_s17 }
 0x4ff   :  { %v5460_v26 = vpop.eup %5459  ;;  %7495 = vst [vmem:[#allocation34_spill] sm:$0xff] %v6767_v2  ;;  %v1222_v17 = vmul.f32 1.442695, %v1192_v52  ;;  %v1218_v14 = vmul.f32 1.442695, %v1190_v11  ;;  %v6773_v45 = vpop.f32.mrb[75].mxu0 }
 0x500   :  { %v6771_v47 = vpop.eup %5461  ;;  %7496 = vst [vmem:[#allocation35_spill] sm:$0xff] %v6773_v45  ;;  %v2715_v30 = vpop.permute.xlu0 %2714  ;;  %4346 = vmatprep.mubr.f32.mxu1 %v5460_v26 }
 0x501   :  { %v1177_v33 = vpop.xlane.xlu1 %1176  ;;  %4347 = vmatmul.mubr.f32.gmra.mrb[22].mxu1 %v6771_v47  ;;  %4602 = vmatmul.mubr.msk.f32.gmra.mrb[76].mxu0 %vm326_vm1, %v2715_v30  ;;  %5471 = vpow2.f32 %v1218_v14 }
 0x502   :  { %v1193_v22 = vsub.f32 %v6647_v42, %v1177_v33  ;;  %5473 = vpow2.f32 %v1220_v31  ;;  %5361 = vrot.lane.b32.xlu0 %v5919_v53, %s5733_s17 }
 0x503   :  { %v5464_v49 = vpop.eup %5463  ;;  %5475 = vpow2.f32 %v1222_v17  ;;  %v6793_v17 = vadd.f32 %v6544_v29, %v6660_v34  ;;  %v6803_v34 = vadd.f32 %v6562_v60, %v6664_v41  ;;  %v6835_v60 = vadd.f32 %v6616_v15, %v6679_v18  ;;  %v6850_v18 = vld [vmem:[#allocation2] sm:$0xff] }
 0x504   :  { %v5466_v52 = vpop.eup %5465  ;;  %v1224_v55 = vmul.f32 1.442695, %v1193_v22  ;;  %4349 = vmatprep.mubr.f32.mxu1 %v5464_v49  ;;  %2142 = vmax.xlane.f32.xlu1 %v6780_v4  ;;  %v6857_v41 = vadd.f32 %v6626_v0, %v6684_v51  ;;  %v7501_v0 = vld [vmem:[#allocation8_spill] sm:$0xff] }
 0x505   :  { %v2717_v11 = vpop.permute.xlu1 %2716  ;;  %4350 = vmatmul.mubr.f32.gmra.mrb[24].mxu1 %v5466_v52  ;;  %7497 = vst [vmem:[#allocation36_spill] sm:$0xff] %v6835_v60 }
 0x506   :  { %5477 = vpow2.f32 %v1224_v55  ;;  %4604 = vmatprep.mubr.msk.f32.mxu0 %vm326_vm1, %v2717_v11  ;;  %v6808_v55 = vadd.f32 %v6554_v13, %v6667_v19  ;;  %v6818_v11 = vadd.f32 %v6509_v57, %v6654_v21  ;;  %v6824_v19 = vadd.f32 %v6580_v8, %v6669_v61  ;;  %7498 = vst [vmem:[#allocation37_spill] sm:$0xff] %v6857_v41 }
 0x507   :  { %v5468_v42 = vpop.eup %5467  ;;  %v6830_v13 = vadd.f32 %v6598_v3, %v6674_v20  ;;  %v275_v20 = vld [vmem:[#allocation2 + $0x8] sm:$0xff] }
 0x508   :  { %v5470_v14 = vpop.eup %5469  ;;  %4352 = vmatprep.mubr.f32.mxu1 %v5468_v42  ;;  %2148 = vmax.xlane.f32.xlu1 %v6788_v5 }
 0x509   :  { %4353 = vmatmul.mubr.f32.gmra.mrb[26].mxu1 %v5470_v14  ;;  %4361 = vmatprep.subr.mxu1 %v275_v20 }
 0x50a   :  { %4362 = vmatpush3.msra.mxu1 %v275_v20  ;;  %v7508_v20 = vld [vmem:[#allocation22_spill] sm:$0xff] }
 0x50b   :  { %v5472_v31 = vpop.eup %5471  ;;  %4387 = vmatprep.subr.mxu1 %v6850_v18 }
 0x50c   :  { %v5474_v30 = vpop.eup %5473  ;;  %4355 = vmatprep.mubr.f32.mxu1 %v5472_v31  ;;  %2146 = vmax.xlane.f32.xlu1 %v6793_v17 }
 0x50d   :  { %v5476_v33 = vpop.eup %5475  ;;  %4356 = vmatmul.mubr.f32.gmra.mrb[28].mxu1 %v5474_v30 }
 0x50e   :  { %4358 = vmatprep.mubr.f32.mxu1 %v5476_v33 }
 0x510   :  { %v5478_v22 = vpop.eup %5477  ;;  %2152 = vmax.xlane.f32.xlu1 %v6798_v6 }
 0x511   :  { %4359 = vmatmul.mubr.f32.gmra.mrb[30].mxu1 %v5478_v22 }
 0x514   :  { %2150 = vmax.xlane.f32.xlu1 %v6803_v34 }
 0x518   :  { %2156 = vmax.xlane.f32.xlu1 %v6808_v55 }
 0x51c   :  { %2160 = vmax.xlane.f32.xlu1 %v6813_v44 }
 0x520   :  { %1226 = vadd.xlane.f32.xlu1 %v6721_v35 }
 0x521   :  { %2144 = vmax.xlane.f32.xlu0 %v6818_v11 }
 0x524   :  { %1232 = vadd.xlane.f32.xlu1 %v6745_v9 }
 0x525   :  { %2154 = vmax.xlane.f32.xlu0 %v6824_v19 }
 0x528   :  { %1238 = vadd.xlane.f32.xlu1 %v5460_v26  ;;  %v7502_v26 = vld [vmem:[#allocation26_spill] sm:$0xff] }
 0x529   :  { %2158 = vmax.xlane.f32.xlu0 %v6830_v13 }
 0x52c   :  { %1244 = vadd.xlane.f32.xlu1 %v5466_v52 }
 0x52d   :  { %2162 = vmax.xlane.f32.xlu0 %v6835_v60 }
 0x530   :  { %v6838_v25 = vpop.xlane.xlu0 %620  ;;  %1248 = vadd.xlane.f32.xlu1 %v5470_v14 }
 0x531   :  { %1228 = vadd.xlane.f32.xlu0 %v6725_v12 }
 0x534   :  { %v2719_v21 = vpop.permute.xlu0 %2718  ;;  %1252 = vadd.xlane.f32.xlu1 %v5474_v30  ;;  %v6848_v15 = vpop.xlane.xlu1 %622 }
 0x535   :  { %1230 = vadd.xlane.f32.xlu0 %v6739_v1  ;;  %4605 = vmatmul.mubr.msk.f32.gmra.mrb[78].mxu0 %vm326_vm1, %v2719_v21 }
 0x538   :  { %1256 = vadd.xlane.f32.xlu1 %v5478_v22  ;;  %v6853_v3 = vpop.xlane.xlu1 %626  ;;  %v7507_v22 = vld [vmem:[#allocation20_spill] sm:$0xff] }
 0x539   :  { %1236 = vadd.xlane.f32.xlu0 %v6759_v28 }
 0x53c   :  { %v6860_v61 = vpop.xlane.xlu1 %628 }
 0x53d   :  { %1234 = vadd.xlane.f32.xlu0 %v6752_v24  ;;  %v7499_v24 = vld [vmem:[#allocation25_spill] sm:$0xff] }
 0x53e   :  { %v6870_v28 = vadd.f32 %v7499_v24, %v6677_v16  ;;  %v7505_v16 = vld [vmem:[#allocation28_spill] sm:$0xff] }
 0x540   :  { %v6862_v54 = vpop.xlane.xlu1 %630  ;;  %7500 = vst [vmem:[#allocation25_spill] sm:$0xff] %v6870_v28 }
 0x541   :  { %1240 = vadd.xlane.f32.xlu0 %v6771_v47  ;;  %v6877_v47 = vadd.f32 %v7502_v26, %v6682_v62 }
 0x543   :  { %7503 = vst [vmem:[#allocation26_spill] sm:$0xff] %v6877_v47 }
 0x544   :  { %v6864_v35 = vpop.xlane.xlu1 %632 }
 0x545   :  { %1242 = vadd.xlane.f32.xlu0 %v5464_v49 }
 0x548   :  { %v6866_v1 = vpop.xlane.xlu1 %634 }
 0x549   :  { %1246 = vadd.xlane.f32.xlu0 %v5468_v42  ;;  %5366 = vrot.lane.b32.xlu1 %v5929_v58, %s5733_s17  ;;  %v7504_v42 = vld [vmem:[#allocation14_spill] sm:$0xff] }
 0x54c   :  { %v6879_v49 = vpop.xlane.xlu1 %638 }
 0x54d   :  { %1250 = vadd.xlane.f32.xlu0 %v5472_v31  ;;  %v6887_v31 = vadd.f32 %v7505_v16, %v6687_v23 }
 0x54f   :  { %7506 = vst [vmem:[#allocation14_spill] sm:$0xff] %v6887_v31 }
 0x551   :  { %1254 = vadd.xlane.f32.xlu0 %v5476_v33  ;;  %v6889_v33 = vpop.xlane.xlu1 %642 }
 0x555   :  { %2166 = vmax.xlane.f32.xlu0 %v6857_v41 }
 0x565   :  { %v625_v12 = vpop.xlane.xlu0 %624 }
 0x566   :  { %5479 = vrcp.f32 %v625_v12 }
 0x569   :  { %v637_v9 = vpop.xlane.xlu0 %636 }
 0x56a   :  { %5481 = vrcp.f32 %v637_v9  ;;  %v6898_v9 = vpop.xlane.xlu1 %644 }
 0x56b   :  { %5371 = vrot.lane.b32.xlu0 %v7501_v0, %s5733_s17 }
 0x56d   :  { %v641_v51 = vpop.xlane.xlu0 %640  ;;  %2164 = vmax.xlane.f32.xlu1 %v6870_v28 }
 0x56e   :  { %5483 = vrcp.f32 %v641_v51  ;;  %v6900_v24 = vpop.xlane.xlu1 %646  ;;  %v7509_v51 = vld [vmem:[#allocation27_spill] sm:$0xff] }
 0x56f   :  { %v6908_v26 = vadd.f32 %v7509_v51, %v6689_v50 }
 0x570   :  { %v5480_v52 = vpop.eup %5479 }
 0x571   :  { %2168 = vmax.xlane.f32.xlu1 %v6877_v47  ;;  %v6883_v14 = vmul.f32 %v5480_v52, %v7504_v42  ;;  %7510 = vst [vmem:[#allocation28_spill] sm:$0xff] %v6908_v26 }
 0x572   :  { %v6904_v23 = vpop.permute.xlu1 %5341 }
 0x574   :  { %v5482_v30 = vpop.eup %5481 }
 0x575   :  { %2172 = vmax.xlane.f32.xlu1 %v6887_v31  ;;  %v6893_v62 = vmul.f32 %v5482_v30, %v7507_v22  ;;  %v5337_v22 = vpop.permute.xlu0 %5336  ;;  %v6947_v31 = vadd.f32 %v6544_v29, %v6727_v37 }
 0x576   :  { %v6911_v52 = vpop.permute.xlu1 %5356 }
 0x577   :  { %7513 = vst [vmem:[#allocation27_spill] sm:$0xff] %v6947_v31 }
 0x578   :  { %v5484_v21 = vpop.eup %5483 }
 0x579   :  { %v6896_v12 = vmul.f32 %v5484_v21, %v7508_v20  ;;  %v6916_v0 = vpop.permute.xlu0 %5346 }
 0x57d   :  { %v6921_v51 = vpop.permute.xlu0 %5351 }
 0x586   :  { %5376 = vrot.lane.b32.xlu1 %v5869_v27, %s5734_s11 }
 0x58a   :  { %2170 = vmax.xlane.f32.xlu0 %v6908_v26 }
 0x591   :  { %v2143_v42 = vpop.xlane.xlu1 %2142 }
 0x592   :  { %v2174_v30 = vsub.f32 %v6780_v4, %v2143_v42  ;;  %v6927_v4 = vpop.permute.xlu0 %5361 }
 0x594   :  { %v2190_v20 = vmul.f32 1.442695, %v2174_v30  ;;  %v6934_v30 = vadd.f32 %v6509_v57, %v6715_v46 }
 0x595   :  { %v2149_v16 = vpop.xlane.xlu1 %2148 }
 0x596   :  { %5485 = vpow2.f32 %v2190_v20  ;;  %v2177_v27 = vsub.f32 %v6788_v5, %v2149_v16  ;;  %7511 = vst [vmem:[#allocation20_spill] sm:$0xff] %v6934_v30 }
 0x598   :  { %v2196_v50 = vmul.f32 1.442695, %v2177_v27 }
 0x599   :  { %v6914_v21 = vpop.xlane.xlu1 %2146 }
 0x59a   :  { %5487 = vpow2.f32 %v2196_v50 }
 0x59d   :  { %v6919_v2 = vpop.xlane.xlu1 %2152 }
 0x5a0   :  { %v6925_v58 = vpop.eup %5485 }
 0x5a1   :  { %v6923_v53 = vpop.xlane.xlu1 %2150 }
 0x5a4   :  { %v6938_v20 = vpop.eup %5487 }
 0x5a5   :  { %v6930_v42 = vpop.xlane.xlu1 %2156  ;;  %7512 = vst [vmem:[#allocation22_spill] sm:$0xff] %v6938_v20 }
 0x5a9   :  { %v6940_v27 = vpop.xlane.xlu1 %2160 }
 0x5aa   :  { %2222 = vadd.xlane.f32.xlu1 %v6925_v58 }
 0x5ad   :  { %v1227_v46 = vpop.xlane.xlu1 %1226 }
 0x5ae   :  { %v2145_v5 = vpop.xlane.xlu0 %2144  ;;  %2963 = vmax.xlane.f32.xlu1 %v6934_v30 }
 0x5af   :  { %v2175_v16 = vsub.f32 %v6818_v11, %v2145_v5 }
 0x5b1   :  { %v2192_v50 = vmul.f32 1.442695, %v2175_v16  ;;  %v1233_v30 = vpop.xlane.xlu1 %1232 }
 0x5b2   :  { %v6942_v45 = vpop.xlane.xlu0 %2154  ;;  %2228 = vadd.xlane.f32.xlu1 %v6938_v20  ;;  %v5339_v20 = vunpack.i.h.bf16 %v5337_v22 }
 0x5b3   :  { %5489 = vpow2.f32 %v2192_v50  ;;  %v6959_v50 = vadd.f32 %v6517_v7, %v6717_v63  ;;  %v5338_v7 = vunpack.i.l.bf16 %v5337_v22 }
 0x5b4   :  { %5491 = vrcp.f32 %v1227_v46 }
 0x5b5   :  { %7515 = vst [vmem:[#allocation39_spill] sm:$0xff] %v6959_v50  ;;  %v1239_v43 = vpop.xlane.xlu1 %1238 }
 0x5b6   :  { %v6949_v57 = vpop.xlane.xlu0 %2158  ;;  %2965 = vmax.xlane.f32.xlu1 %v6947_v31 }
 0x5b9   :  { %v1245_v41 = vpop.xlane.xlu1 %1244 }
 0x5ba   :  { %v6952_v11 = vpop.xlane.xlu0 %2162 }
 0x5bd   :  { %v6954_v5 = vpop.eup %5489 }
 0x5be   :  { %7514 = vst [vmem:[#allocation38_spill] sm:$0xff] %v6954_v5  ;;  %v1229_v16 = vpop.xlane.xlu0 %1228  ;;  %2224 = vadd.xlane.f32.xlu0 %v6954_v5  ;;  %v5492_v31 = vpop.eup %5491  ;;  %v6965_v5 = vpack.c.bf16 %v5339_v20, %v5338_v7 }
 0x5bf   :  { %5493 = vrcp.f32 %v1229_v16 }
 0x5c2   :  { %v1231_v29 = vpop.xlane.xlu0 %1230  ;;  %2961 = vmax.xlane.f32.xlu0 %v6959_v50 }
 0x5c3   :  { %5495 = vrcp.f32 %v1231_v29  ;;  %v4339_v37 = vpop.f32.mrb[16].mxu1 }
 0x5c4   :  { %5497 = vrcp.f32 %v1233_v30  ;;  %v1372_v46 = vpop.f32.mrb[17].mxu1 }
 0x5c5   :  { %v1467_v26 = vmul.f32 %v5492_v31, %v1372_v46  ;;  %v1249_v46 = vpop.xlane.xlu1 %1248 }
 0x5c6   :  { %v1237_v47 = vpop.xlane.xlu0 %1236 }
 0x5c7   :  { %5386 = vrot.lane.b32.xlu1 %v5889_v38, %s5734_s11  ;;  %4363 = vmatprep.mubr.msk.f32.mxu1 %vm326_vm1, %v1467_v26  ;;  %5499 = vrcp.f32 %v1237_v47 }
 0x5c9   :  { %v5494_v63 = vpop.eup %5493 }
 0x5ca   :  { %v1235_v16 = vpop.xlane.xlu0 %1234  ;;  %v1468_v50 = vmul.f32 %v5494_v63, %v4339_v37 }
 0x5cb   :  { %5501 = vrcp.f32 %v1235_v16  ;;  %v4342_v29 = vpop.f32.mrb[18].mxu1 }
 0x5cc   :  { %v1382_v28 = vpop.f32.mrb[19].mxu1  ;;  %5503 = vrcp.f32 %v1239_v43  ;;  %4364 = vmatmul.mubr.msk.f32.vlgmr.msra.gmra.mrb[32].mxu1 %vm326_vm1, %v1468_v50 }
 0x5cd   :  { %v5496_v30 = vpop.eup %5495  ;;  %4388 = vmatpush3.msra.mxu1 %v6850_v18 }
 0x5ce   :  { %v5498_v31 = vpop.eup %5497  ;;  %v1469_v38 = vmul.f32 %v5496_v30, %v1382_v28  ;;  %v1241_v26 = vpop.xlane.xlu0 %1240  ;;  %4906 = vmatprep.subr.bf16.mxu1 %v6965_v5 }
 0x5cf   :  { %v1470_v22 = vmul.f32 %v5498_v31, %v4342_v29  ;;  %5505 = vrcp.f32 %v1241_v26  ;;  %v4345_v47 = vpop.f32.mrb[20].mxu1  ;;  %v1253_v31 = vpop.xlane.xlu1 %1252 }
 0x5d0   :  { %v1392_v37 = vpop.f32.mrb[21].mxu1  ;;  %4366 = vmatprep.mubr.msk.f32.mxu1 %vm326_vm1, %v1469_v38 }
 0x5d1   :  { %4367 = vmatmul.mubr.msk.f32.gmra.mrb[34].mxu1 %vm326_vm1, %v1470_v22  ;;  %v5500_v28 = vpop.eup %5499 }
 0x5d2   :  { %v1243_v20 = vpop.xlane.xlu0 %1242  ;;  %v1472_v26 = vmul.f32 %v5500_v28, %v4345_v47 }
 0x5d3   :  { %5507 = vrcp.f32 %v1243_v20 }
 0x5d4   :  { %v4348_v43 = vpop.f32.mrb[22].mxu1  ;;  %v6972_v50 = vpop.f32.mrb[76].mxu0  ;;  %5509 = vrcp.f32 %v1245_v41 }
 0x5d5   :  { %v1402_v18 = vpop.f32.mrb[23].mxu1  ;;  %v6974_v7 = vpop.f32.mrb[77].mxu0 }
 0x5d6   :  { %7516 = vst [vmem:[#allocation40_spill] sm:$0xff] %v6974_v7  ;;  %v5502_v63 = vpop.eup %5501  ;;  %v1247_v29 = vpop.xlane.xlu0 %1246 }
 0x5d7   :  { %v1471_v16 = vmul.f32 %v5502_v63, %v1392_v37  ;;  %v5504_v30 = vpop.eup %5503  ;;  %5511 = vrcp.f32 %v1247_v29  ;;  %v7517_v63 = vld [vmem:[#allocation29_spill] sm:$0xff] }
 0x5d8   :  { %v4351_v38 = vpop.f32.mrb[24].mxu1  ;;  %5513 = vrcp.f32 %v1249_v46  ;;  %v1473_v22 = vmul.f32 %v5504_v30, %v1402_v18  ;;  %5381 = vrot.lane.b32.xlu0 %v5879_v32, %s5734_s11  ;;  %v1257_v46 = vpop.xlane.xlu1 %1256 }
 0x5d9   :  { %v1412_v60 = vpop.f32.mrb[25].mxu1  ;;  %4369 = vmatprep.mubr.msk.f32.mxu1 %vm326_vm1, %v1471_v16  ;;  %v5506_v41 = vpop.eup %5505 }
 0x5da   :  { %4370 = vmatmul.mubr.msk.f32.gmra.mrb[36].mxu1 %vm326_vm1, %v1472_v26  ;;  %v1474_v20 = vmul.f32 %v5506_v41, %v4348_v43  ;;  %v1251_v7 = vpop.xlane.xlu0 %1250  ;;  %v2181_v43 = vsub.f32 %v6808_v55, %v6930_v42 }
 0x5db   :  { %4372 = vmatprep.mubr.msk.f32.mxu1 %vm326_vm1, %v1473_v22  ;;  %5515 = vrcp.f32 %v1251_v7  ;;  %v7518_v22 = vld [vmem:[#allocation30_spill] sm:$0xff] }
 0x5dc   :  { %v4354_v37 = vpop.f32.mrb[26].mxu1  ;;  %5517 = vrcp.f32 %v1253_v31 }
 0x5dd   :  { %v1422_v47 = vpop.f32.mrb[27].mxu1  ;;  %v5508_v28 = vpop.eup %5507  ;;  %5519 = vrcp.f32 %v7517_v63 }
 0x5de   :  { %4373 = vmatmul.mubr.msk.f32.gmra.mrb[38].mxu1 %vm326_vm1, %v1474_v20  ;;  %v5510_v18 = vpop.eup %5509  ;;  %v1475_v32 = vmul.f32 %v5508_v28, %v1412_v60  ;;  %v1255_v16 = vpop.xlane.xlu0 %1254  ;;  %v2204_v20 = vmul.f32 1.442695, %v2181_v43 }
 0x5df   :  { %v1476_v29 = vmul.f32 %v5510_v18, %v4351_v38  ;;  %5521 = vrcp.f32 %v1255_v16  ;;  %v2176_v38 = vsub.f32 %v6793_v17, %v6914_v21  ;;  %v6999_v21 = vadd.f32 %v6527_v36, %v6723_v56  ;;  %v7519_v36 = vld [vmem:[#allocation10_spill] sm:$0xff] }
 0x5e0   :  { %5523 = vrcp.f32 %v1257_v46  ;;  %v4357_v30 = vpop.f32.mrb[28].mxu1  ;;  %4375 = vmatprep.mubr.msk.f32.mxu1 %vm326_vm1, %v1475_v32 }
 0x5e1   :  { %v5512_v7 = vpop.eup %5511  ;;  %v1432_v31 = vpop.f32.mrb[29].mxu1  ;;  %5525 = vrcp.f32 %v7518_v22  ;;  %v2194_v32 = vmul.f32 1.442695, %v2176_v38 }
 0x5e2   :  { %4376 = vmatmul.mubr.msk.f32.gmra.mrb[40].mxu1 %vm326_vm1, %v1476_v29  ;;  %v5514_v26 = vpop.eup %5513  ;;  %v1477_v41 = vmul.f32 %v5512_v7, %v1422_v47  ;;  %5527 = vrcp.f32 %v6838_v25  ;;  %v2178_v25 = vsub.f32 %v6803_v34, %v6923_v53  ;;  %v2179_v34 = vsub.f32 %v6798_v6, %v6919_v2  ;;  %v7520_v2 = vld [vmem:[#allocation9_spill] sm:$0xff] }
 0x5e3   :  { %v1478_v60 = vmul.f32 %v5514_v26, %v4354_v37  ;;  %5529 = vrcp.f32 %v6848_v15  ;;  %v5349_v26 = vunpack.i.h.bf16 %v6916_v0 }
 0x5e4   :  { %v4360_v55 = vpop.f32.mrb[30].mxu1  ;;  %4378 = vmatprep.mubr.msk.f32.mxu1 %vm326_vm1, %v1477_v41  ;;  %5531 = vpow2.f32 %v2204_v20  ;;  %v2198_v29 = vmul.f32 1.442695, %v2178_v25  ;;  %v5354_v20 = vunpack.i.h.bf16 %v6921_v51  ;;  %v7525_v25 = vld [vmem:[#allocation15_spill] sm:$0xff] }
 0x5e5   :  { %v5516_v42 = vpop.eup %5515  ;;  %v1442_v28 = vpop.f32.mrb[31].mxu1  ;;  %5533 = vrcp.f32 %v6853_v3  ;;  %v7011_v3 = vadd.f32 %v6536_v39, %v6733_v59  ;;  %v7521_v39 = vld [vmem:[#allocation12_spill] sm:$0xff] }
 0x5e6   :  { %4379 = vmatmul.mubr.msk.f32.gmra.mrb[42].mxu1 %vm326_vm1, %v1478_v60  ;;  %v5518_v46 = vpop.eup %5517  ;;  %v1479_v18 = vmul.f32 %v5516_v42, %v1432_v31  ;;  %5535 = vrcp.f32 %v6860_v61  ;;  %v5344_v61 = vunpack.i.h.bf16 %v6904_v23  ;;  %v2200_v31 = vmul.f32 1.442695, %v2179_v34  ;;  %v5367_v42 = vpop.permute.xlu1 %5366 }
 0x5e7   :  { %v1480_v63 = vmul.f32 %v5518_v46, %v4357_v30  ;;  %v5520_v47 = vpop.eup %5519  ;;  %5537 = vpow2.f32 %v2194_v32  ;;  %v5343_v30 = vunpack.i.l.bf16 %v6904_v23  ;;  %v5348_v23 = vunpack.i.l.bf16 %v6916_v0 }
 0x5e8   :  { %4381 = vmatprep.mubr.msk.f32.mxu1 %vm326_vm1, %v1479_v18  ;;  %v857_v56 = vmul.f32 %v5520_v47, %v7519_v36  ;;  %5539 = vrcp.f32 %v6862_v54  ;;  %v7524_v18 = vld [vmem:[#allocation16_spill] sm:$0xff]  ;;  %v7527_v36 = vld [vmem:[#allocation17_spill] sm:$0xff] }
 0x5e9   :  { %v5522_v17 = vpop.eup %5521  ;;  %5541 = vrcp.f32 %v6864_v35  ;;  %v4909_v54 = vpack.c.bf16 %v5344_v61, %v5343_v30  ;;  %v7522_v35 = vld [vmem:[#allocation11_spill] sm:$0xff]  ;;  %v4913_v0 = vpack.c.bf16 %v5349_v26, %v5348_v23 }
 0x5ea   :  { %4382 = vmatmul.mubr.msk.f32.gmra.mrb[44].mxu1 %vm326_vm1, %v1480_v63  ;;  %v5524_v37 = vpop.eup %5523  ;;  %v1481_v15 = vmul.f32 %v5522_v17, %v1442_v28  ;;  %5543 = vpow2.f32 %v2198_v29  ;;  %v7523_v28 = vld [vmem:[#allocation13_spill] sm:$0xff] }
 0x5eb   :  { %v1482_v16 = vmul.f32 %v5524_v37, %v4360_v55  ;;  %2967 = vmax.xlane.f32.xlu1 %v6999_v21  ;;  %v5526_v53 = vpop.eup %5525  ;;  %5545 = vrcp.f32 %v6866_v1  ;;  %v5353_v55 = vunpack.i.l.bf16 %v6921_v51  ;;  %v7060_v37 = vpop.xlane.xlu0 %2166 }
 0x5ec   :  { %4384 = vmatprep.mubr.msk.f32.mxu1 %vm326_vm1, %v1481_v15  ;;  %v5528_v43 = vpop.eup %5527  ;;  %v858_v6 = vmul.f32 %v5526_v53, %v7520_v2  ;;  %5547 = vpow2.f32 %v2200_v31  ;;  %v7526_v15 = vld [vmem:[#allocation18_spill] sm:$0xff]  ;;  %v5364_v53 = vunpack.i.h.bf16 %v6927_v4  ;;  %v5368_v2 = vunpack.i.l.bf16 %v5367_v42  ;;  %v7528_v31 = vld [vmem:[#allocation19_spill] sm:$0xff] }
 0x5ed   :  { %v5530_v7 = vpop.eup %5529  ;;  %v859_v59 = vmul.f32 %v5528_v43, %v7521_v39  ;;  %5549 = vrcp.f32 %v6879_v49  ;;  %v4917_v49 = vpack.c.bf16 %v5354_v20, %v5353_v55 }
 0x5ee   :  { %4385 = vmatmul.mubr.msk.f32.gmra.mrb[46].mxu1 %vm326_vm1, %v1482_v16  ;;  %v7025_v22 = vpop.eup %5531  ;;  %v860_v41 = vmul.f32 %v5530_v7, %v7522_v35  ;;  %5551 = vrcp.f32 %v6889_v33  ;;  %v5363_v33 = vunpack.i.l.bf16 %v6927_v4  ;;  %v5687_v4 = vld [vmem:[%s7442_s5 + $0x20] sm:$0xff] }
 0x5ef   :  { %4389 = vmatprep.mubr.msk.f32.mxu1 %vm326_vm1, %v857_v56  ;;  %2971 = vmax.xlane.f32.xlu1 %v7011_v3  ;;  %v5534_v60 = vpop.eup %5533  ;;  %5553 = vrcp.f32 %v6898_v9  ;;  %v7078_v61 = vadd.f32 %v5687_v4, %v6735_v10 }
 0x5f0   :  { %v5536_v38 = vpop.eup %5535  ;;  %v862_v51 = vmul.f32 %v5534_v60, %v7523_v28  ;;  %5555 = vrcp.f32 %v6900_v24  ;;  %v4925_v30 = vpack.c.bf16 %v5364_v53, %v5363_v33  ;;  %v5369_v24 = vunpack.i.h.bf16 %v5367_v42  ;;  %v7530_v42 = vld [vmem:[#allocation24_spill] sm:$0xff] }
 0x5f1   :  { %v7035_v1 = vpop.eup %5537  ;;  %v863_v63 = vmul.f32 %v5536_v38, %v7524_v18  ;;  %v7529_v38 = vld [vmem:[#allocation21_spill] sm:$0xff]  ;;  %v7531_v18 = vld [vmem:[#allocation23_spill] sm:$0xff] }
 0x5f2   :  { %4390 = vmatmul.mubr.msk.f32.vlgmr.msra.gmra.mrb[32].mxu1 %vm326_vm1, %v858_v6  ;;  %v5540_v46 = vpop.eup %5539  ;;  %v5372_v6 = vpop.permute.xlu0 %5371  ;;  %v4929_v26 = vpack.c.bf16 %v5369_v24, %v5368_v2 }
 0x5f3   :  { %4908 = vmatpush3.bf16.msra.mxu1 %v6965_v5  ;;  %4392 = vmatprep.mubr.msk.f32.mxu1 %vm326_vm1, %v859_v59  ;;  %v7039_v5 = vadd.f32 %v6580_v8, %v6747_v40  ;;  %v5542_v47 = vpop.eup %5541  ;;  %v5359_v8 = vunpack.i.h.bf16 %v6911_v52  ;;  %v5358_v40 = vunpack.i.l.bf16 %v6911_v52  ;;  %v864_v17 = vmul.f32 %v5540_v46, %v7525_v25  ;;  %v7534_v25 = vld [vmem:[#allocation25_spill] sm:$0xff] }
 0x5f4   :  { %4910 = vmatprep.subr.bf16.mxu1 %v4909_v54  ;;  %2236 = vadd.xlane.f32.xlu1 %v7025_v22  ;;  %v7051_v32 = vpop.eup %5543  ;;  %v865_v16 = vmul.f32 %v5542_v47, %v7526_v15  ;;  %v5374_v23 = vunpack.i.h.bf16 %v5372_v6  ;;  %v276_v47 = vld [vmem:[#allocation2 + $0x10] sm:$0xff]  ;;  %v7537_v15 = vld [vmem:[#allocation26_spill] sm:$0xff] }
 0x5f5   :  { %v5546_v52 = vpop.eup %5545  ;;  %v4921_v34 = vpack.c.bf16 %v5359_v8, %v5358_v40  ;;  %v7533_v40 = vld [vmem:[#allocation38_spill] sm:$0xff] }
 0x5f6   :  { %4393 = vmatmul.mubr.msk.f32.gmra.mrb[34].mxu1 %vm326_vm1, %v860_v41  ;;  %v7066_v29 = vpop.eup %5547  ;;  %v866_v56 = vmul.f32 %v5546_v52, %v7527_v36  ;;  %v7536_v52 = vld [vmem:[#allocation22_spill] sm:$0xff]  ;;  %v7539_v36 = vld [vmem:[#allocation5_spill] sm:$0xff] }
 0x5f7   :  { %4912 = vmatpush3.bf16.msra.mxu1 %v4909_v54  ;;  %4395 = vmatprep.mubr.msk.f32.mxu1 %vm326_vm1, %v6883_v14  ;;  %v5550_v43 = vpop.eup %5549  ;;  %v5373_v54 = vunpack.i.l.bf16 %v5372_v6 }
 0x5f8   :  { %4914 = vmatprep.subr.bf16.mxu1 %v4913_v0  ;;  %2226 = vadd.xlane.f32.xlu0 %v7035_v1  ;;  %v868_v39 = vmul.f32 %v5550_v43, %v7528_v31  ;;  %v5552_v59 = vpop.eup %5551  ;;  %v7541_v31 = vld [vmem:[#allocation31_spill] sm:$0xff] }
 0x5f9   :  { %2973 = vmax.xlane.f32.xlu1 %v7039_v5  ;;  %v5554_v10 = vpop.eup %5553 }
 0x5fa   :  { %4396 = vmatmul.mubr.msk.f32.gmra.mrb[36].mxu1 %vm326_vm1, %v862_v51  ;;  %v7055_v14 = vpop.xlane.xlu1 %2164  ;;  %v5556_v20 = vpop.eup %5555  ;;  %v871_v28 = vmul.f32 %v5554_v10, %v7530_v42  ;;  %v4933_v51 = vpack.c.bf16 %v5374_v23, %v5373_v54  ;;  %v5689_v10 = vld [vmem:[%s7442_s5 + $0x48] sm:$0xff]  ;;  %v5690_v54 = vld [vmem:[%s7442_s5 + $0x50] sm:$0xff] }
 0x5fb   :  { %4916 = vmatpush3.bf16.msra.mxu1 %v4913_v0  ;;  %4398 = vmatprep.mubr.msk.f32.mxu1 %vm326_vm1, %v863_v63  ;;  %v870_v0 = vmul.f32 %v5552_v59, %v7529_v38  ;;  %v872_v63 = vmul.f32 %v5556_v20, %v7531_v18  ;;  %v5691_v38 = vld [vmem:[%s7442_s5 + $0x40] sm:$0xff] }
 0x5fc   :  { %4918 = vmatprep.subr.bf16.mxu1 %v4917_v49  ;;  %2230 = vadd.xlane.f32.xlu0 %v7051_v32 }
 0x5fe   :  { %4399 = vmatmul.mubr.msk.f32.gmra.mrb[38].mxu1 %vm326_vm1, %v864_v17  ;;  %v7070_v9 = vpop.xlane.xlu1 %2168  ;;  %v2185_v17 = vsub.f32 %v7534_v25, %v7055_v14 }
 0x5ff   :  { %4920 = vmatpush3.bf16.msra.mxu1 %v4917_v49  ;;  %4401 = vmatprep.mubr.msk.f32.mxu1 %vm326_vm1, %v865_v16  ;;  %v2187_v16 = vsub.f32 %v7537_v15, %v7070_v9  ;;  %v5693_v15 = vld [vmem:[%s7442_s5 + $0x68] sm:$0xff] }
 0x600   :  { %4922 = vmatprep.subr.bf16.mxu1 %v4921_v34  ;;  %2232 = vadd.xlane.f32.xlu0 %v7066_v29 }
 0x602   :  { %4402 = vmatmul.mubr.msk.f32.gmra.mrb[40].mxu1 %vm326_vm1, %v866_v56  ;;  %v7083_v7 = vpop.xlane.xlu1 %2172  ;;  %v7540_v56 = vld [vmem:[#allocation14_spill] sm:$0xff] }
 0x603   :  { %4924 = vmatpush3.bf16.msra.mxu1 %v4921_v34  ;;  %4404 = vmatprep.mubr.msk.f32.mxu1 %vm326_vm1, %v6893_v62  ;;  %v2180_v62 = vsub.f32 %v6824_v19, %v6942_v45  ;;  %v2182_v19 = vsub.f32 %v6830_v13, %v6949_v57  ;;  %v7532_v13 = vld [vmem:[#allocation36_spill] sm:$0xff]  ;;  %v2189_v43 = vsub.f32 %v7540_v56, %v7083_v7 }
 0x604   :  { %4926 = vmatprep.subr.bf16.mxu1 %v4925_v30  ;;  %2969 = vmax.xlane.f32.xlu0 %v7078_v61  ;;  %v2184_v57 = vsub.f32 %v7532_v13, %v6952_v11  ;;  %v2212_v11 = vmul.f32 1.442695, %v2185_v17  ;;  %v5688_v7 = vld [vmem:[%s7442_s5 + $0x38] sm:$0xff] }
 0x605   :  { %v2202_v45 = vmul.f32 1.442695, %v2180_v62  ;;  %v2206_v8 = vmul.f32 1.442695, %v2182_v19  ;;  %v2220_v4 = vmul.f32 1.442695, %v2189_v43 }
 0x606   :  { %4405 = vmatmul.mubr.msk.f32.gmra.mrb[42].mxu1 %vm326_vm1, %v868_v39  ;;  %v5377_v35 = vpop.permute.xlu1 %5376  ;;  %v7149_v39 = vadd.f32 %v5688_v7, %v7541_v31 }
 0x607   :  { %4928 = vmatpush3.bf16.msra.mxu1 %v4925_v30  ;;  %4407 = vmatprep.mubr.msk.f32.mxu1 %vm326_vm1, %v6896_v12  ;;  %v5379_v41 = vunpack.i.h.bf16 %v5377_v35  ;;  %v5378_v60 = vunpack.i.l.bf16 %v5377_v35  ;;  %5557 = vpow2.f32 %v2202_v45  ;;  %v7543_v35 = vld [vmem:[#allocation35_spill] sm:$0xff] }
 0x608   :  { %4930 = vmatprep.subr.bf16.mxu1 %v4929_v26  ;;  %v7093_v55 = vpop.f32.mrb[78].mxu0  ;;  %5559 = vpow2.f32 %v2206_v8  ;;  %v7163_v62 = vadd.f32 %v5690_v54, %v7543_v35 }
 0x609   :  { %v7096_v46 = vpack.c.bf16 %v5379_v41, %v5378_v60  ;;  %v7101_v12 = vpop.f32.mrb[79].mxu0 }
 0x60a   :  { %5396 = vrot.lane.b32.xlu1 %v5909_v48, %s5734_s11  ;;  %4408 = vmatmul.mubr.msk.f32.gmra.mrb[44].mxu1 %vm326_vm1, %v870_v0  ;;  %v2183_v48 = vsub.f32 %v6813_v44, %v6940_v27  ;;  %v2210_v44 = vmul.f32 1.442695, %v2184_v57  ;;  %v7535_v27 = vld [vmem:[#allocation37_spill] sm:$0xff] }
 0x60b   :  { %4932 = vmatpush3.bf16.msra.mxu1 %v4929_v26  ;;  %4410 = vmatprep.mubr.msk.f32.mxu1 %vm326_vm1, %v871_v28  ;;  %v7542_v26 = vld [vmem:[#allocation32_spill] sm:$0xff]  ;;  %v7544_v0 = vld [vmem:[#allocation33_spill] sm:$0xff] }
 0x60c   :  { %4934 = vmatprep.subr.bf16.mxu1 %v4933_v51  ;;  %4986 = vmatprep.subr.bf16.mxu0 %v7096_v46  ;;  %v2208_v49 = vmul.f32 1.442695, %v2183_v48  ;;  %v7156_v23 = vadd.f32 %v5689_v10, %v7542_v26  ;;  %v7172_v20 = vadd.f32 %v5691_v38, %v7544_v0 }
 0x60d   :  { %4988 = vmatpush3.bf16.msra.mxu0 %v7096_v46 }
 0x60e   :  { %4411 = vmatmul.mubr.msk.f32.gmra.mrb[46].mxu1 %vm326_vm1, %v872_v63  ;;  %5561 = vpow2.f32 %v2208_v49  ;;  %v7546_v63 = vld [vmem:[#allocation39_spill] sm:$0xff] }
 0x60f   :  { %4936 = vmatpush3.bf16.msra.mxu1 %v4933_v51  ;;  %4501 = vmatprep.mubr.f32.mxu1 %v6925_v58  ;;  %v2186_v58 = vsub.f32 %v7535_v27, %v7060_v37  ;;  %5563 = vpow2.f32 %v2210_v44  ;;  %v2216_v37 = vmul.f32 1.442695, %v2187_v16  ;;  %v7545_v51 = vld [vmem:[#allocation7_spill] sm:$0xff]  ;;  %v7547_v44 = vld [vmem:[#allocation6_spill] sm:$0xff]  ;;  %v7203_v16 = vadd.f32 %v5693_v15, %v6972_v50 }
 0x610   :  { %4525 = vmatprep.subr.mxu1 %v276_v47  ;;  %5565 = vpow2.f32 %v2212_v11 }
 0x611   :  { %v2214_v14 = vmul.f32 1.442695, %v2186_v58  ;;  %v5558_v34 = vpop.eup %5557  ;;  %v5692_v58 = vld [vmem:[%s7442_s5 + $0x58] sm:$0xff] }
 0x612   :  { %4502 = vmatmul.mubr.f32.vlgmr.msra.gmra.mrb[48].mxu1 %v7533_v40 }
 0x613   :  { %4526 = vmatpush3.msra.mxu1 %v276_v47  ;;  %4504 = vmatprep.mubr.f32.mxu1 %v7035_v1  ;;  %v7538_v1 = vld [vmem:[#allocation28_spill] sm:$0xff]  ;;  %5567 = vpow2.f32 %v2214_v14 }
 0x614   :  { %5017 = vmatprep.subr.bf16.mxu1 %v7096_v46  ;;  %5569 = vpow2.f32 %v2216_v37  ;;  %v7549_v14 = vld [vmem:[#allocation20_spill] sm:$0xff] }
 0x616   :  { %4505 = vmatmul.mubr.f32.gmra.mrb[50].mxu1 %v7536_v52  ;;  %v7548_v52 = vld [vmem:[#allocation34_spill] sm:$0xff] }
 0x617   :  { %4507 = vmatprep.mubr.f32.mxu1 %v7051_v32  ;;  %v2171_v53 = vpop.xlane.xlu0 %2170  ;;  %v5560_v32 = vpop.eup %5559  ;;  %v7196_v11 = vadd.f32 %v5692_v58, %v7548_v52 }
 0x618   :  { %v2188_v33 = vsub.f32 %v7538_v1, %v2171_v53  ;;  %v5562_v30 = vpop.eup %5561 }
 0x619   :  { %v7133_v24 = vpop.eup %5563 }
 0x61a   :  { %5391 = vrot.lane.b32.xlu0 %v7539_v36, %s5734_s11  ;;  %4508 = vmatmul.mubr.f32.gmra.mrb[52].mxu1 %v7066_v29  ;;  %v2218_v9 = vmul.f32 1.442695, %v2188_v33  ;;  %v5566_v29 = vpop.eup %5565  ;;  %v7550_v33 = vld [vmem:[#allocation27_spill] sm:$0xff] }
 0x61b   :  { %4510 = vmatprep.mubr.f32.mxu1 %v5558_v34  ;;  %v5694_v36 = vld [vmem:[%s7442_s5 + $0x70] sm:$0xff] }
 0x61c   :  { %5571 = vpow2.f32 %v2218_v9  ;;  %v7212_v37 = vadd.f32 %v5694_v36, %v7101_v12  ;;  %v5695_v9 = vld [vmem:[%s7442_s5 + $0x78] sm:$0xff] }
 0x61d   :  { %5573 = vpow2.f32 %v2220_v4  ;;  %v7136_v2 = vpop.eup %5567 }
 0x61e   :  { %4511 = vmatmul.mubr.f32.gmra.mrb[54].mxu1 %v7025_v22  ;;  %v7139_v6 = vpop.eup %5569 }
 0x61f   :  { %4513 = vmatprep.mubr.f32.mxu1 %v5560_v32 }
 0x622   :  { %4514 = vmatmul.mubr.f32.gmra.mrb[56].mxu1 %v5562_v30 }
 0x623   :  { %4516 = vmatprep.mubr.f32.mxu1 %v7133_v24 }
 0x626   :  { %4517 = vmatmul.mubr.f32.gmra.mrb[58].mxu1 %v5566_v29  ;;  %v7141_v22 = vpop.eup %5571 }
 0x627   :  { %4519 = vmatprep.mubr.f32.mxu1 %v7136_v2  ;;  %v5574_v59 = vpop.eup %5573 }
 0x62a   :  { %4520 = vmatmul.mubr.f32.gmra.mrb[60].mxu1 %v7139_v6 }
 0x62b   :  { %4522 = vmatprep.mubr.f32.mxu1 %v7141_v22 }
 0x62e   :  { %2975 = vmax.xlane.f32.xlu1 %v7149_v39  ;;  %4523 = vmatmul.mubr.f32.gmra.mrb[62].mxu1 %v5574_v59 }
 0x632   :  { %2979 = vmax.xlane.f32.xlu1 %v7156_v23 }
 0x636   :  { %2244 = vadd.xlane.f32.xlu1 %v5566_v29 }
 0x637   :  { %v7165_v41 = vpop.xlane.xlu1 %2222 }
 0x639   :  { %2234 = vadd.xlane.f32.xlu0 %v5558_v34 }
 0x63a   :  { %2981 = vmax.xlane.f32.xlu1 %v7163_v62 }
 0x63b   :  { %v2964_v60 = vpop.xlane.xlu1 %2963 }
 0x63c   :  { %v2994_v53 = vsub.f32 %v7549_v14, %v2964_v60 }
 0x63d   :  { %2238 = vadd.xlane.f32.xlu0 %v5560_v32  ;;  %v7221_v32 = vadd.f32 %v5695_v9, %v7093_v55 }
 0x63e   :  { %v3011_v1 = vmul.f32 1.442695, %v2994_v53 }
 0x63f   :  { %v7174_v42 = vpop.xlane.xlu1 %2228 }
 0x641   :  { %2240 = vadd.xlane.f32.xlu0 %v5562_v30  ;;  %v7551_v30 = vld [vmem:[#allocation40_spill] sm:$0xff] }
 0x643   :  { %v2966_v28 = vpop.xlane.xlu1 %2965 }
 0x644   :  { %v2995_v34 = vsub.f32 %v7550_v33, %v2966_v28 }
 0x645   :  { %2977 = vmax.xlane.f32.xlu0 %v7172_v20 }
 0x646   :  { %v3013_v50 = vmul.f32 1.442695, %v2995_v34 }
 0x647   :  { %v5387_v18 = vpop.permute.xlu1 %5386 }
 0x648   :  { %v5389_v8 = vunpack.i.h.bf16 %v5387_v18  ;;  %v5388_v57 = vunpack.i.l.bf16 %v5387_v18 }
 0x64a   :  { %v7184_v17 = vpack.c.bf16 %v5389_v8, %v5388_v57 }
 0x64b   :  { %5406 = vrot.lane.b32.xlu1 %v7545_v51, %s5734_s11  ;;  %v7179_v45 = vpop.xlane.xlu0 %2224 }
 0x64f   :  { %v2962_v19 = vpop.xlane.xlu0 %2961 }
 0x650   :  { %v2993_v47 = vsub.f32 %v7546_v63, %v2962_v19 }
 0x652   :  { %v3009_v48 = vmul.f32 1.442695, %v2993_v47 }
 0x653   :  { %v5382_v13 = vpop.permute.xlu0 %5381 }
 0x654   :  { %5575 = vpow2.f32 %v3009_v48  ;;  %v5384_v40 = vunpack.i.h.bf16 %v5382_v13  ;;  %v5383_v49 = vunpack.i.l.bf16 %v5382_v13 }
 0x655   :  { %5577 = vpow2.f32 %v3011_v1 }
 0x656   :  { %v7182_v25 = vpack.c.bf16 %v5384_v40, %v5383_v49  ;;  %5579 = vpow2.f32 %v3013_v50 }
 0x658   :  { %4990 = vmatprep.subr.bf16.mxu0 %v7182_v25 }
 0x659   :  { %4992 = vmatpush3.bf16.msra.mxu0 %v7182_v25 }
 0x65a   :  { %4994 = vmatprep.subr.bf16.mxu0 %v7184_v17 }
 0x65b   :  { %5401 = vrot.lane.b32.xlu0 %v7547_v44, %s5734_s11 }
 0x65d   :  { %4996 = vmatpush3.bf16.msra.mxu0 %v7184_v17 }
 0x65e   :  { %v5576_v27 = vpop.eup %5575 }
 0x65f   :  { %4639 = vmatprep.mubr.f32.mxu0 %v5576_v27  ;;  %v7234_v29 = vpop.eup %5577 }
 0x660   :  { %v7242_v7 = vpop.eup %5579 }
 0x66f   :  { %2983 = vmax.xlane.f32.xlu1 %v7196_v11 }
 0x673   :  { %2987 = vmax.xlane.f32.xlu1 %v7203_v16 }
 0x677   :  { %2252 = vadd.xlane.f32.xlu1 %v5574_v59 }
 0x678   :  { %v2968_v56 = vpop.xlane.xlu1 %2967 }
 0x679   :  { %v2996_v43 = vsub.f32 %v6999_v21, %v2968_v56  ;;  %v5696_v21 = vld [vmem:[%s7442_s5 + $0x60] sm:$0xff] }
 0x67a   :  { %2242 = vadd.xlane.f32.xlu0 %v7133_v24  ;;  %v7230_v24 = vadd.f32 %v5696_v21, %v7551_v30 }
 0x67b   :  { %2989 = vmax.xlane.f32.xlu1 %v7212_v37  ;;  %v3015_v12 = vmul.f32 1.442695, %v2996_v43 }
 0x67c   :  { %v2972_v4 = vpop.xlane.xlu1 %2971 }
 0x67d   :  { %5581 = vpow2.f32 %v3015_v12  ;;  %v2998_v13 = vsub.f32 %v7011_v3, %v2972_v4 }
 0x67e   :  { %2246 = vadd.xlane.f32.xlu0 %v7136_v2 }
 0x67f   :  { %2991 = vmax.xlane.f32.xlu1 %v7221_v32  ;;  %v3019_v57 = vmul.f32 1.442695, %v2998_v13 }
 0x681   :  { %v7236_v2 = vpop.xlane.xlu1 %2236 }
 0x682   :  { %2248 = vadd.xlane.f32.xlu0 %v7139_v6 }
 0x683   :  { %3041 = vadd.xlane.f32.xlu1 %v5576_v27 }
 0x685   :  { %v7232_v55 = vpop.xlane.xlu0 %2226 }
 0x686   :  { %2985 = vmax.xlane.f32.xlu0 %v7230_v24  ;;  %v2974_v31 = vpop.xlane.xlu1 %2973 }
 0x687   :  { %3043 = vadd.xlane.f32.xlu1 %v7234_v29  ;;  %v7247_v10 = vpop.eup %5581  ;;  %v2999_v26 = vsub.f32 %v7039_v5, %v2974_v31  ;;  %v7552_v5 = vld [vmem:[#allocation8_spill] sm:$0xff] }
 0x689   :  { %v7240_v6 = vpop.xlane.xlu0 %2230  ;;  %v3021_v0 = vmul.f32 1.442695, %v2999_v26 }
 0x68a   :  { %v5397_v35 = vpop.permute.xlu1 %5396 }
 0x68b   :  { %3045 = vadd.xlane.f32.xlu1 %v7242_v7  ;;  %v5399_v28 = vunpack.i.h.bf16 %v5397_v35  ;;  %v5398_v19 = vunpack.i.l.bf16 %v5397_v35 }
 0x68d   :  { %v7245_v59 = vpop.xlane.xlu0 %2232  ;;  %v7254_v48 = vpack.c.bf16 %v5399_v28, %v5398_v19 }
 0x68f   :  { %3047 = vadd.xlane.f32.xlu1 %v7247_v10 }
 0x691   :  { %v2970_v54 = vpop.xlane.xlu0 %2969 }
 0x692   :  { %v2997_v60 = vsub.f32 %v7078_v61, %v2970_v54 }
 0x694   :  { %v3017_v38 = vmul.f32 1.442695, %v2997_v60 }
 0x695   :  { %v5392_v51 = vpop.permute.xlu0 %5391 }
 0x696   :  { %5583 = vpow2.f32 %v3017_v38  ;;  %v5394_v18 = vunpack.i.h.bf16 %v5392_v51  ;;  %v5393_v63 = vunpack.i.l.bf16 %v5392_v51 }
 0x697   :  { %5585 = vpow2.f32 %v3021_v0 }
 0x698   :  { %v7252_v47 = vpack.c.bf16 %v5394_v18, %v5393_v63  ;;  %5587 = vpow2.f32 %v3019_v57 }
 0x69a   :  { %4998 = vmatprep.subr.bf16.mxu0 %v7252_v47 }
 0x69b   :  { %5000 = vmatpush3.bf16.msra.mxu0 %v7252_v47 }
 0x69c   :  { %5411 = vrot.lane.b32.xlu0 %v7552_v5, %s5734_s11  ;;  %5002 = vmatprep.subr.bf16.mxu0 %v7254_v48 }
 0x69f   :  { %5004 = vmatpush3.bf16.msra.mxu0 %v7254_v48 }
 0x6a0   :  { %v7262_v61 = vpop.eup %5583 }
 0x6a1   :  { %3049 = vadd.xlane.f32.xlu1 %v7262_v61  ;;  %v7265_v8 = vpop.eup %5585 }
 0x6a2   :  { %v7271_v44 = vpop.eup %5587 }
 0x6a5   :  { %3053 = vadd.xlane.f32.xlu1 %v7265_v8 }
 0x6bb   :  { %v2976_v40 = vpop.xlane.xlu1 %2975  ;;  %2250 = vadd.xlane.f32.xlu0 %v7141_v22 }
 0x6bc   :  { %v3000_v49 = vsub.f32 %v7149_v39, %v2976_v40 }
 0x6be   :  { %v3023_v27 = vmul.f32 1.442695, %v3000_v49 }
 0x6bf   :  { %v2980_v58 = vpop.xlane.xlu1 %2979  ;;  %3051 = vadd.xlane.f32.xlu0 %v7271_v44 }
 0x6c0   :  { %5589 = vpow2.f32 %v3023_v27  ;;  %v3002_v52 = vsub.f32 %v7156_v23, %v2980_v58 }
 0x6c2   :  { %v3027_v15 = vmul.f32 1.442695, %v3002_v52 }
 0x6c3   :  { %v7275_v3 = vpop.xlane.xlu1 %2244 }
 0x6c4   :  { %5591 = vpow2.f32 %v3027_v15 }
 0x6c6   :  { %v2235_v14 = vpop.xlane.xlu0 %2234 }
 0x6c7   :  { %v2982_v22 = vpop.xlane.xlu1 %2981 }
 0x6c8   :  { %v3003_v34 = vsub.f32 %v7163_v62, %v2982_v22 }
 0x6ca   :  { %v7277_v53 = vpop.eup %5589  ;;  %v2239_v1 = vpop.xlane.xlu0 %2238  ;;  %v3029_v43 = vmul.f32 1.442695, %v3003_v34 }
 0x6cb   :  { %3055 = vadd.xlane.f32.xlu0 %v7277_v53  ;;  %v5407_v23 = vpop.permute.xlu1 %5406 }
 0x6cc   :  { %v5409_v9 = vunpack.i.h.bf16 %v5407_v23  ;;  %v5408_v4 = vunpack.i.l.bf16 %v5407_v23 }
 0x6ce   :  { %v7280_v39 = vpop.eup %5591  ;;  %v2241_v33 = vpop.xlane.xlu0 %2240  ;;  %v7288_v26 = vpack.c.bf16 %v5409_v9, %v5408_v4 }
 0x6cf   :  { %3059 = vadd.xlane.f32.xlu0 %v7280_v39 }
 0x6d2   :  { %v2978_v36 = vpop.xlane.xlu0 %2977 }
 0x6d3   :  { %v3001_v56 = vsub.f32 %v7172_v20, %v2978_v36 }
 0x6d5   :  { %v3025_v50 = vmul.f32 1.442695, %v3001_v56 }
 0x6d6   :  { %v5402_v12 = vpop.permute.xlu0 %5401 }
 0x6d7   :  { %5593 = vpow2.f32 %v3025_v50  ;;  %v5404_v21 = vunpack.i.h.bf16 %v5402_v12  ;;  %v5403_v30 = vunpack.i.l.bf16 %v5402_v12 }
 0x6d8   :  { %5595 = vrcp.f32 %v7179_v45 }
 0x6d9   :  { %v7285_v31 = vpack.c.bf16 %v5404_v21, %v5403_v30  ;;  %5597 = vpow2.f32 %v3029_v43 }
 0x6da   :  { %5599 = vrcp.f32 %v7165_v41 }
 0x6db   :  { %5006 = vmatprep.subr.bf16.mxu0 %v7285_v31  ;;  %5601 = vrcp.f32 %v7174_v42 }
 0x6dc   :  { %5008 = vmatpush3.bf16.msra.mxu0 %v7285_v31  ;;  %5603 = vrcp.f32 %v7232_v55 }
 0x6dd   :  { %5010 = vmatprep.subr.bf16.mxu0 %v7288_v26  ;;  %5605 = vrcp.f32 %v7245_v59 }
 0x6de   :  { %5607 = vrcp.f32 %v7240_v6 }
 0x6df   :  { %5609 = vrcp.f32 %v7236_v2 }
 0x6e0   :  { %5012 = vmatpush3.bf16.msra.mxu0 %v7288_v26  ;;  %5611 = vrcp.f32 %v2235_v14 }
 0x6e1   :  { %v7297_v62 = vpop.eup %5593  ;;  %5613 = vrcp.f32 %v2239_v1 }
 0x6e2   :  { %3057 = vadd.xlane.f32.xlu1 %v7297_v62  ;;  %v5596_v20 = vpop.eup %5595  ;;  %5615 = vrcp.f32 %v2241_v33 }
 0x6e3   :  { %v7302_v41 = vpop.eup %5597 }
 0x6e4   :  { %v5600_v54 = vpop.eup %5599 }
 0x6e5   :  { %v4503_v45 = vpop.f32.mrb[48].mxu1  ;;  %v5602_v60 = vpop.eup %5601 }
 0x6e6   :  { %v2464_v35 = vmul.f32 %v5596_v20, %v4503_v45  ;;  %3061 = vadd.xlane.f32.xlu1 %v7302_v41  ;;  %v2368_v42 = vpop.f32.mrb[49].mxu1  ;;  %v5604_v59 = vpop.eup %5603 }
 0x6e7   :  { %v2463_v55 = vmul.f32 %v5600_v54, %v2368_v42  ;;  %v5606_v51 = vpop.eup %5605 }
 0x6e8   :  { %v5608_v19 = vpop.eup %5607 }
 0x6e9   :  { %v4506_v38 = vpop.f32.mrb[50].mxu1  ;;  %4527 = vmatprep.mubr.msk.f32.mxu1 %vm326_vm1, %v2463_v55  ;;  %v5610_v13 = vpop.eup %5609 }
 0x6ea   :  { %v2466_v0 = vmul.f32 %v5602_v60, %v4506_v38  ;;  %v2378_v28 = vpop.f32.mrb[51].mxu1  ;;  %4528 = vmatmul.mubr.msk.f32.vlgmr.msra.gmra.mrb[32].mxu1 %vm326_vm1, %v2464_v35  ;;  %v5612_v57 = vpop.eup %5611 }
 0x6eb   :  { %v2465_v6 = vmul.f32 %v5604_v59, %v2378_v28  ;;  %5025 = vmatpush3.bf16.msra.mxu1 %v7096_v46 }
 0x6ec   :  { %5018 = vmatprep.subr.bf16.mxu1 %v7182_v25 }
 0x6ed   :  { %v4509_v2 = vpop.f32.mrb[52].mxu1  ;;  %4530 = vmatprep.mubr.msk.f32.mxu1 %vm326_vm1, %v2465_v6 }
 0x6ee   :  { %v2468_v18 = vmul.f32 %v5606_v51, %v4509_v2  ;;  %v2388_v63 = vpop.f32.mrb[53].mxu1  ;;  %4531 = vmatmul.mubr.msk.f32.gmra.mrb[34].mxu1 %vm326_vm1, %v2466_v0 }
 0x6ef   :  { %v2467_v5 = vmul.f32 %v5608_v19, %v2388_v63  ;;  %5026 = vmatpush3.bf16.msra.mxu1 %v7182_v25  ;;  %v5614_v25 = vpop.eup %5613 }
 0x6f0   :  { %5019 = vmatprep.subr.bf16.mxu1 %v7184_v17  ;;  %v5616_v15 = vpop.eup %5615 }
 0x6f1   :  { %v4512_v46 = vpop.f32.mrb[54].mxu1  ;;  %4533 = vmatprep.mubr.msk.f32.mxu1 %vm326_vm1, %v2467_v5 }
 0x6f2   :  { %v2470_v40 = vmul.f32 %v5610_v13, %v4512_v46  ;;  %v2398_v49 = vpop.f32.mrb[55].mxu1  ;;  %4534 = vmatmul.mubr.msk.f32.gmra.mrb[36].mxu1 %vm326_vm1, %v2468_v18 }
 0x6f3   :  { %v2469_v27 = vmul.f32 %v5612_v57, %v2398_v49  ;;  %5027 = vmatpush3.bf16.msra.mxu1 %v7184_v17 }
 0x6f4   :  { %5020 = vmatprep.subr.bf16.mxu1 %v7252_v47 }
 0x6f5   :  { %v4515_v58 = vpop.f32.mrb[56].mxu1  ;;  %4536 = vmatprep.mubr.msk.f32.mxu1 %vm326_vm1, %v2469_v27 }
 0x6f6   :  { %v2408_v52 = vpop.f32.mrb[57].mxu1  ;;  %4537 = vmatmul.mubr.msk.f32.gmra.mrb[38].mxu1 %vm326_vm1, %v2470_v40  ;;  %v2472_v1 = vmul.f32 %v5616_v15, %v4515_v58 }
 0x6f7   :  { %v2471_v14 = vmul.f32 %v5614_v25, %v2408_v52  ;;  %5028 = vmatpush3.bf16.msra.mxu1 %v7252_v47 }
 0x6f8   :  { %5021 = vmatprep.subr.bf16.mxu1 %v7254_v48 }
 0x6f9   :  { %v4518_v22 = vpop.f32.mrb[58].mxu1  ;;  %4539 = vmatprep.mubr.msk.f32.mxu1 %vm326_vm1, %v2471_v14 }
 0x6fa   :  { %v2418_v17 = vpop.f32.mrb[59].mxu1  ;;  %4540 = vmatmul.mubr.msk.f32.gmra.mrb[40].mxu1 %vm326_vm1, %v2472_v1 }
 0x6fb   :  { %5029 = vmatpush3.bf16.msra.mxu1 %v7254_v48 }
 0x6fc   :  { %v2984_v33 = vpop.xlane.xlu1 %2983  ;;  %5022 = vmatprep.subr.bf16.mxu1 %v7285_v31 }
 0x6fd   :  { %v3004_v34 = vsub.f32 %v7196_v11, %v2984_v33  ;;  %v4521_v36 = vpop.f32.mrb[60].mxu1 }
 0x6fe   :  { %v2428_v23 = vpop.f32.mrb[61].mxu1 }
 0x6ff   :  { %v3031_v56 = vmul.f32 1.442695, %v3004_v34  ;;  %5030 = vmatpush3.bf16.msra.mxu1 %v7285_v31 }
 0x700   :  { %v2988_v47 = vpop.xlane.xlu1 %2987  ;;  %5023 = vmatprep.subr.bf16.mxu1 %v7288_v26 }
 0x701   :  { %5617 = vpow2.f32 %v3031_v56  ;;  %v3006_v50 = vsub.f32 %v7203_v16, %v2988_v47  ;;  %v4524_v43 = vpop.f32.mrb[62].mxu1 }
 0x702   :  { %v7330_v9 = vpop.f32.mrb[63].mxu1 }
 0x703   :  { %v3035_v48 = vmul.f32 1.442695, %v3006_v50  ;;  %5031 = vmatpush3.bf16.msra.mxu1 %v7288_v26 }
 0x704   :  { %v2253_v12 = vpop.xlane.xlu1 %2252 }
 0x705   :  { %5619 = vpow2.f32 %v3035_v48 }
 0x706   :  { %5621 = vrcp.f32 %v2253_v12 }
 0x707   :  { %v2243_v11 = vpop.xlane.xlu0 %2242 }
 0x708   :  { %5623 = vrcp.f32 %v2243_v11  ;;  %v2990_v4 = vpop.xlane.xlu1 %2989 }
 0x709   :  { %5625 = vrcp.f32 %v7275_v3  ;;  %v3007_v59 = vsub.f32 %v7212_v37, %v2990_v4 }
 0x70b   :  { %v5618_v21 = vpop.eup %5617  ;;  %v2247_v30 = vpop.xlane.xlu0 %2246  ;;  %v3037_v2 = vmul.f32 1.442695, %v3007_v59 }
 0x70c   :  { %5627 = vrcp.f32 %v2247_v30  ;;  %3063 = vadd.xlane.f32.xlu0 %v5618_v21  ;;  %v2992_v31 = vpop.xlane.xlu1 %2991 }
 0x70d   :  { %v3008_v16 = vsub.f32 %v7221_v32, %v2992_v31 }
 0x70f   :  { %v5620_v20 = vpop.eup %5619  ;;  %v3039_v45 = vmul.f32 1.442695, %v3008_v16  ;;  %v2249_v54 = vpop.xlane.xlu0 %2248 }
 0x710   :  { %v5622_v35 = vpop.eup %5621  ;;  %5629 = vrcp.f32 %v2249_v54  ;;  %3067 = vadd.xlane.f32.xlu0 %v5620_v20 }
 0x711   :  { %5631 = vpow2.f32 %v3039_v45  ;;  %v2478_v26 = vmul.f32 %v5622_v35, %v4524_v43 }
 0x712   :  { %v5624_v42 = vpop.eup %5623 }
 0x713   :  { %v5626_v55 = vpop.eup %5625  ;;  %v2986_v60 = vpop.xlane.xlu0 %2985  ;;  %v2473_v38 = vmul.f32 %v5624_v42, %v2418_v17 }
 0x714   :  { %v2474_v3 = vmul.f32 %v5626_v55, %v4518_v22  ;;  %v3005_v0 = vsub.f32 %v7230_v24, %v2986_v60 }
 0x715   :  { %4542 = vmatprep.mubr.msk.f32.mxu1 %vm326_vm1, %v2473_v38 }
 0x716   :  { %v5628_v32 = vpop.eup %5627  ;;  %v3033_v28 = vmul.f32 1.442695, %v3005_v0  ;;  %4543 = vmatmul.mubr.msk.f32.gmra.mrb[42].mxu1 %vm326_vm1, %v2474_v3 }
 0x717   :  { %v5412_v6 = vpop.permute.xlu0 %5411  ;;  %v2475_v51 = vmul.f32 %v5628_v32, %v2428_v23 }
 0x718   :  { %5633 = vpow2.f32 %v3033_v28  ;;  %v5414_v19 = vunpack.i.h.bf16 %v5412_v6  ;;  %v5413_v18 = vunpack.i.l.bf16 %v5412_v6 }
 0x719   :  { %4545 = vmatprep.mubr.msk.f32.mxu1 %vm326_vm1, %v2475_v51  ;;  %5635 = vpow2.f32 %v3037_v2 }
 0x71a   :  { %v5630_v63 = vpop.eup %5629  ;;  %v5013_v5 = vpack.c.bf16 %v5414_v19, %v5413_v18 }
 0x71b   :  { %v5632_v13 = vpop.eup %5631  ;;  %v2476_v37 = vmul.f32 %v5630_v63, %v4521_v36 }
 0x71c   :  { %3071 = vadd.xlane.f32.xlu0 %v5632_v13  ;;  %5014 = vmatprep.subr.bf16.mxu0 %v5013_v5 }
 0x71d   :  { %5024 = vmatprep.subr.bf16.mxu1 %v5013_v5  ;;  %4546 = vmatmul.mubr.msk.f32.gmra.mrb[44].mxu1 %vm326_vm1, %v2476_v37 }
 0x71e   :  { %5016 = vmatpush3.bf16.msra.mxu0 %v5013_v5  ;;  %5032 = vmatpush3.bf16.msra.mxu1 %v5013_v5 }
 0x721   :  { %4640 = vmatmul.mubr.f32.vlgmr.msra.gmra.mrb[80].mxu0 %v7234_v29 }
 0x722   :  { %v5634_v24 = vpop.eup %5633  ;;  %4642 = vmatprep.mubr.f32.mxu0 %v7242_v7 }
 0x723   :  { %3065 = vadd.xlane.f32.xlu1 %v5634_v24  ;;  %v5636_v46 = vpop.eup %5635 }
 0x725   :  { %4643 = vmatmul.mubr.f32.gmra.mrb[82].mxu0 %v7247_v10 }
 0x726   :  { %4645 = vmatprep.mubr.f32.mxu0 %v7262_v61  ;;  %v277_v61 = vld [vmem:[#allocation2 + $0x18] sm:$0xff] }
 0x727   :  { %3069 = vadd.xlane.f32.xlu1 %v5636_v46  ;;  %4663 = vmatprep.subr.mxu1 %v277_v61 }
 0x729   :  { %4646 = vmatmul.mubr.f32.gmra.mrb[84].mxu0 %v7271_v44 }
 0x72a   :  { %4648 = vmatprep.mubr.f32.mxu0 %v7265_v8  ;;  %v3042_v8 = vpop.xlane.xlu1 %3041 }
 0x72d   :  { %4649 = vmatmul.mubr.f32.gmra.mrb[86].mxu0 %v7277_v53 }
 0x72e   :  { %4651 = vmatprep.mubr.f32.mxu0 %v7297_v62  ;;  %v3044_v44 = vpop.xlane.xlu1 %3043 }
 0x731   :  { %4652 = vmatmul.mubr.f32.gmra.mrb[88].mxu0 %v7280_v39 }
 0x732   :  { %4654 = vmatprep.mubr.f32.mxu0 %v7302_v41  ;;  %v3046_v53 = vpop.xlane.xlu1 %3045 }
 0x735   :  { %4655 = vmatmul.mubr.f32.gmra.mrb[90].mxu0 %v5618_v21 }
 0x736   :  { %4657 = vmatprep.mubr.f32.mxu0 %v5634_v24  ;;  %v3048_v39 = vpop.xlane.xlu1 %3047 }
 0x739   :  { %4658 = vmatmul.mubr.f32.gmra.mrb[92].mxu0 %v5620_v20 }
 0x73a   :  { %v3050_v62 = vpop.xlane.xlu1 %3049 }
 0x73e   :  { %v3054_v40 = vpop.xlane.xlu1 %3053 }
 0x748   :  { %v2251_v29 = vpop.xlane.xlu0 %2250 }
 0x749   :  { %5637 = vrcp.f32 %v2251_v29 }
 0x74a   :  { %5639 = vrcp.f32 %v3042_v8  ;;  %v3760_v8 = vld [vmem:[%s7441_s4] ss:$0 sm:$0xff] }
 0x74b   :  { %5641 = vrcp.f32 %v3044_v44 }
 0x74c   :  { %v3052_v41 = vpop.xlane.xlu0 %3051  ;;  %5643 = vrcp.f32 %v3046_v53 }
 0x74d   :  { %5645 = vrcp.f32 %v3048_v39 }
 0x74e   :  { %5647 = vrcp.f32 %v3050_v62 }
 0x74f   :  { %5649 = vrcp.f32 %v3052_v41 }
 0x750   :  { %5651 = vrcp.f32 %v3054_v40 }
 0x753   :  { %v5638_v7 = vpop.eup %5637 }
 0x754   :  { %v2477_v10 = vmul.f32 %v5638_v7, %v7330_v9  ;;  %v5640_v27 = vpop.eup %5639 }
 0x755   :  { %v5642_v25 = vpop.eup %5641 }
 0x756   :  { %4548 = vmatprep.mubr.msk.f32.mxu1 %vm326_vm1, %v2477_v10  ;;  %v5644_v17 = vpop.eup %5643 }
 0x757   :  { %4549 = vmatmul.mubr.msk.f32.gmra.mrb[46].mxu1 %vm326_vm1, %v2478_v26  ;;  %v5646_v34 = vpop.eup %5645 }
 0x758   :  { %4660 = vmatprep.mubr.f32.mxu1 %v5636_v46  ;;  %v3056_v57 = vpop.xlane.xlu0 %3055  ;;  %v5648_v43 = vpop.eup %5647 }
 0x759   :  { %5653 = vrcp.f32 %v3056_v57  ;;  %v5650_v48 = vpop.eup %5649 }
 0x75a   :  { %v5652_v30 = vpop.eup %5651 }
 0x75b   :  { %4661 = vmatmul.mubr.f32.vlgmr.msra.gmra.mrb[64].mxu1 %v5632_v13 }
 0x75c   :  { %4664 = vmatpush3.msra.mxu1 %v277_v61  ;;  %v3060_v14 = vpop.xlane.xlu0 %3059 }
 0x763   :  { %v5654_v20 = vpop.eup %5653 }
 0x76f   :  { %v3058_v52 = vpop.xlane.xlu1 %3057 }
 0x770   :  { %5655 = vrcp.f32 %v3058_v52 }
 0x771   :  { %5657 = vrcp.f32 %v3060_v14 }
 0x773   :  { %v3062_v47 = vpop.xlane.xlu1 %3061 }
 0x774   :  { %5659 = vrcp.f32 %v3062_v47 }
 0x77a   :  { %v5656_v26 = vpop.eup %5655 }
 0x77b   :  { %v5658_v55 = vpop.eup %5657 }
 0x77e   :  { %v5660_v59 = vpop.eup %5659 }
 0x799   :  { %v3064_v23 = vpop.xlane.xlu0 %3063 }
 0x79a   :  { %5661 = vrcp.f32 %v3064_v23 }
 0x79d   :  { %v3068_v31 = vpop.xlane.xlu0 %3067 }
 0x7a4   :  { %v5662_v32 = vpop.eup %5661 }
 0x7a9   :  { %v3072_v37 = vpop.xlane.xlu0 %3071 }
 0x7b0   :  { %v3066_v4 = vpop.xlane.xlu1 %3065 }
 0x7b1   :  { %5663 = vrcp.f32 %v3066_v4 }
 0x7b2   :  { %5665 = vrcp.f32 %v3068_v31 }
 0x7b4   :  { %v3070_v13 = vpop.xlane.xlu1 %3069 }
 0x7b5   :  { %5667 = vrcp.f32 %v3070_v13 }
 0x7b6   :  { %5669 = vrcp.f32 %v3072_v37 }
 0x7bb   :  { %v5664_v2 = vpop.eup %5663 }
 0x7bc   :  { %v5666_v18 = vpop.eup %5665 }
 0x7bf   :  { %v5668_v46 = vpop.eup %5667 }
 0x7c0   :  { %v5670_v7 = vpop.eup %5669 }
 0x7f4   :  { %v4641_v49 = vpop.f32.mrb[80].mxu0 }
 0x7f5   :  { %v3187_v58 = vpop.f32.mrb[81].mxu0  ;;  %v3283_v1 = vmul.f32 %v5642_v25, %v4641_v49 }
 0x7f6   :  { %v3282_v15 = vmul.f32 %v5640_v27, %v3187_v58 }
 0x7f8   :  { %v4644_v22 = vpop.f32.mrb[82].mxu0  ;;  %4665 = vmatprep.mubr.msk.f32.mxu1 %vm326_vm1, %v3282_v15 }
 0x7f9   :  { %v3197_v33 = vpop.f32.mrb[83].mxu0  ;;  %4666 = vmatmul.mubr.msk.f32.vlgmr.msra.gmra.mrb[32].mxu1 %vm326_vm1, %v3283_v1  ;;  %v3285_v56 = vmul.f32 %v5646_v34, %v4644_v22 }
 0x7fa   :  { %v3284_v36 = vmul.f32 %v5644_v17, %v3197_v33 }
 0x7fc   :  { %v4647_v50 = vpop.f32.mrb[84].mxu0  ;;  %4668 = vmatprep.mubr.msk.f32.mxu1 %vm326_vm1, %v3284_v36 }
 0x7fd   :  { %v3207_v9 = vpop.f32.mrb[85].mxu0  ;;  %4669 = vmatmul.mubr.msk.f32.gmra.mrb[34].mxu1 %vm326_vm1, %v3285_v56  ;;  %v3287_v11 = vmul.f32 %v5650_v48, %v4647_v50 }
 0x7fe   :  { %v3286_v12 = vmul.f32 %v5648_v43, %v3207_v9 }
 0x800   :  { %v4650_v21 = vpop.f32.mrb[86].mxu0  ;;  %4671 = vmatprep.mubr.msk.f32.mxu1 %vm326_vm1, %v3286_v12 }
 0x801   :  { %v3217_v16 = vpop.f32.mrb[87].mxu0  ;;  %4672 = vmatmul.mubr.msk.f32.gmra.mrb[36].mxu1 %vm326_vm1, %v3287_v11  ;;  %v3289_v54 = vmul.f32 %v5654_v20, %v4650_v21 }
 0x802   :  { %v3288_v45 = vmul.f32 %v5652_v30, %v3217_v16 }
 0x804   :  { %v4653_v35 = vpop.f32.mrb[88].mxu0  ;;  %4674 = vmatprep.mubr.msk.f32.mxu1 %vm326_vm1, %v3288_v45 }
 0x805   :  { %v3227_v42 = vpop.f32.mrb[89].mxu0  ;;  %4675 = vmatmul.mubr.msk.f32.gmra.mrb[38].mxu1 %vm326_vm1, %v3289_v54  ;;  %v3291_v38 = vmul.f32 %v5658_v55, %v4653_v35 }
 0x806   :  { %v3290_v60 = vmul.f32 %v5656_v26, %v3227_v42 }
 0x808   :  { %v4656_v3 = vpop.f32.mrb[90].mxu0  ;;  %4677 = vmatprep.mubr.msk.f32.mxu1 %vm326_vm1, %v3290_v60 }
 0x809   :  { %v3237_v0 = vpop.f32.mrb[91].mxu0  ;;  %4678 = vmatmul.mubr.msk.f32.gmra.mrb[40].mxu1 %vm326_vm1, %v3291_v38  ;;  %v3293_v6 = vmul.f32 %v5662_v32, %v4656_v3 }
 0x80a   :  { %v3292_v28 = vmul.f32 %v5660_v59, %v3237_v0 }
 0x80c   :  { %v4659_v51 = vpop.f32.mrb[92].mxu0  ;;  %4680 = vmatprep.mubr.msk.f32.mxu1 %vm326_vm1, %v3292_v28 }
 0x80d   :  { %v3247_v19 = vpop.f32.mrb[93].mxu0  ;;  %4681 = vmatmul.mubr.msk.f32.gmra.mrb[42].mxu1 %vm326_vm1, %v3293_v6  ;;  %v3295_v5 = vmul.f32 %v5666_v18, %v4659_v51 }
 0x80e   :  { %v3294_v63 = vmul.f32 %v5664_v2, %v3247_v19 }
 0x810   :  { %4683 = vmatprep.mubr.msk.f32.mxu1 %vm326_vm1, %v3294_v63 }
 0x811   :  { %4684 = vmatmul.mubr.msk.f32.gmra.mrb[44].mxu1 %vm326_vm1, %v3295_v5 }
 0x82e   :  { %v4662_v24 = vpop.f32.mrb[64].mxu1 }
 0x82f   :  { %v3257_v29 = vpop.f32.mrb[65].mxu1  ;;  %v3297_v61 = vmul.f32 %v5670_v7, %v4662_v24 }
 0x830   :  { %v3296_v10 = vmul.f32 %v5668_v46, %v3257_v29 }
 0x832   :  { %4686 = vmatprep.mubr.msk.f32.mxu1 %vm326_vm1, %v3296_v10 }
 0x833   :  { %4687 = vmatmul.mubr.msk.f32.gmra.mrb[46].mxu1 %vm326_vm1, %v3297_v61 }
 0x8cc   :  { %v4667_v44 = vpop.f32.mrb[32].mxu1 }
 0x8cd   :  { %v3515_v53 = vadd.f32 %v4667_v44, %v3760_v8  ;;  %v3412_v39 = vpop.f32.mrb[33].mxu1 }
 0x8ce   :  { %v3514_v62 = vadd.f32 %v3760_v8, %v3412_v39 }
 0x8cf   :  { %3531 = vst.msk [vmem:[%s7443_s6 + $0x8] sm:$0xff] %vm64_vm0, %v3515_v53 }
 0x8d0   :  { %3530 = vst.msk [vmem:[%s7443_s6] sm:$0xff] %vm64_vm0, %v3514_v62  ;;  %v4670_v41 = vpop.f32.mrb[34].mxu1 }
 0x8d1   :  { %v3517_v57 = vadd.f32 %v4670_v41, %v3760_v8  ;;  %v3422_v40 = vpop.f32.mrb[35].mxu1 }
 0x8d2   :  { %v3516_v49 = vadd.f32 %v3760_v8, %v3422_v40 }
 0x8d3   :  { %3533 = vst.msk [vmem:[%s7443_s6 + $0x18] sm:$0xff] %vm64_vm0, %v3517_v57 }
 0x8d4   :  { %3532 = vst.msk [vmem:[%s7443_s6 + $0x10] sm:$0xff] %vm64_vm0, %v3516_v49  ;;  %v4673_v27 = vpop.f32.mrb[36].mxu1 }
 0x8d5   :  { %v3519_v58 = vadd.f32 %v4673_v27, %v3760_v8  ;;  %v3432_v25 = vpop.f32.mrb[37].mxu1 }
 0x8d6   :  { %v3518_v52 = vadd.f32 %v3760_v8, %v3432_v25 }
 0x8d7   :  { %3535 = vst.msk [vmem:[%s7443_s6 + $0x28] sm:$0xff] %vm64_vm0, %v3519_v58 }
 0x8d8   :  { %3534 = vst.msk [vmem:[%s7443_s6 + $0x20] sm:$0xff] %vm64_vm0, %v3518_v52  ;;  %v4676_v15 = vpop.f32.mrb[38].mxu1 }
 0x8d9   :  { %v3521_v14 = vadd.f32 %v4676_v15, %v3760_v8  ;;  %v3442_v1 = vpop.f32.mrb[39].mxu1 }
 0x8da   :  { %v3520_v22 = vadd.f32 %v3760_v8, %v3442_v1 }
 0x8db   :  { %3537 = vst.msk [vmem:[%s7443_s6 + $0x38] sm:$0xff] %vm64_vm0, %v3521_v14 }
 0x8dc   :  { %3536 = vst.msk [vmem:[%s7443_s6 + $0x30] sm:$0xff] %vm64_vm0, %v3520_v22  ;;  %v4679_v17 = vpop.f32.mrb[40].mxu1 }
 0x8dd   :  { %v3523_v33 = vadd.f32 %v4679_v17, %v3760_v8  ;;  %v3452_v34 = vpop.f32.mrb[41].mxu1 }
 0x8de   :  { %v3522_v36 = vadd.f32 %v3760_v8, %v3452_v34 }
 0x8df   :  { %3539 = vst.msk [vmem:[%s7443_s6 + $0x48] sm:$0xff] %vm64_vm0, %v3523_v33 }
 0x8e0   :  { %3538 = vst.msk [vmem:[%s7443_s6 + $0x40] sm:$0xff] %vm64_vm0, %v3522_v36  ;;  %v4682_v23 = vpop.f32.mrb[42].mxu1 }
 0x8e1   :  { %v3525_v56 = vadd.f32 %v4682_v23, %v3760_v8  ;;  %v3462_v47 = vpop.f32.mrb[43].mxu1 }
 0x8e2   :  { %v3524_v50 = vadd.f32 %v3760_v8, %v3462_v47 }
 0x8e3   :  { %3541 = vst.msk [vmem:[%s7443_s6 + $0x58] sm:$0xff] %vm64_vm0, %v3525_v56 }
 0x8e4   :  { %3540 = vst.msk [vmem:[%s7443_s6 + $0x50] sm:$0xff] %vm64_vm0, %v3524_v50  ;;  %v4685_v43 = vpop.f32.mrb[44].mxu1 }
 0x8e5   :  { %v3527_v9 = vadd.f32 %v4685_v43, %v3760_v8  ;;  %v3472_v48 = vpop.f32.mrb[45].mxu1 }
 0x8e6   :  { %v3526_v12 = vadd.f32 %v3760_v8, %v3472_v48 }
 0x8e7   :  { %3543 = vst.msk [vmem:[%s7443_s6 + $0x68] sm:$0xff] %vm64_vm0, %v3527_v9 }
 0x8e8   :  { %3542 = vst.msk [vmem:[%s7443_s6 + $0x60] sm:$0xff] %vm64_vm0, %v3526_v12 }
 0x906   :  { %v4688_v11 = vpop.f32.mrb[46].mxu1 }
 0x907   :  { %v3529_v4 = vadd.f32 %v4688_v11, %v3760_v8  ;;  %v3482_v21 = vpop.f32.mrb[47].mxu1 }
 0x908   :  { %v3528_v30 = vadd.f32 %v3760_v8, %v3482_v21 }
 0x909   :  { %3545 = vst.msk [vmem:[%s7443_s6 + $0x78] sm:$0xff] %vm64_vm0, %v3529_v4 }
 0x90a   :  { %3544 = vst.msk [vmem:[%s7443_s6 + $0x70] sm:$0xff] %vm64_vm0, %v3528_v30 }
 0x90b   :  { %3550 = vsyncpa [#allocation3], 1 }

</bundles_post_ra>
